<compile_context>
chip_gen: v6e
topology: v6e:2x2x1
jax: 0.10.0
libtpu: 0.0.40
codegen_flags: <defaults>
</compile_context>

<pallas_src>
import jax
import jax.numpy as jnp
from jax.experimental import pallas as pl
from jax.experimental.pallas import tpu as pltpu


# ----------------------------------------------------------------------------
# Pallas kernel: full forward for TB batch elements per grid step
# ----------------------------------------------------------------------------
def disc_kernel(x_ref,
                w1, b1, w2, b2, w3, b3, w4, b4,
                wf1, bf1, wf2, bf2, wf3, bf3, wf4, bf4,
                out_ref):
    f32 = jnp.float32
    bf16 = jnp.bfloat16
    relu = lambda v: jnp.maximum(v, 0.0)

    def mm(a_f32, w_ref):
        # bf16 MXU matmul with f32 accumulation (weights pre-cast to bf16).
        return jnp.dot(a_f32.astype(bf16), w_ref[...],
                       preferred_element_type=f32)

    TB, N, _ = x_ref.shape
    x = x_ref[...].reshape(TB * N, 3)                     # (TB*N, 3) f32

    # conv1 (1x3) + bn1 + relu on the VPU: three broadcast FMAs.
    w1v = w1[...]                                         # (3, 64) f32
    h1 = relu(x[:, 0:1] * w1v[0:1, :]
              + x[:, 1:2] * w1v[1:2, :]
              + x[:, 2:3] * w1v[2:3, :]
              + b1[...])                                  # (TB*N, 64)

    # conv2..conv4 (1x1) + bn + relu as flattened per-point matmuls.
    h2 = relu(mm(h1, w2) + b2[...])                       # (TB*N, 64)
    h3 = relu(mm(h2, w3) + b3[...])                       # (TB*N, 128)
    h4 = relu(mm(h3, w4) + b4[...])                       # (TB*N, 256)

    # MaxPool2d((crop_point_num, 1)) == max over the point axis, per element.
    f64 = jnp.max(h2.reshape(TB, N, 64), axis=1)          # (TB, 64)
    f128 = jnp.max(h3.reshape(TB, N, 128), axis=1)        # (TB, 128)
    f256 = jnp.max(h4.reshape(TB, N, 256), axis=1)        # (TB, 256)

    # cat([x_256, x_128, x_64], dim=1): pieces start at lane offsets 0/256/384.
    feat = jnp.concatenate([f256, f128, f64], axis=1)     # (TB, 448)

    # FC stack batched over the TB elements of this block.
    g1 = relu(mm(feat, wf1) + bf1[...])                   # (TB, 256)
    g2 = relu(mm(g1, wf2) + bf2[...])                     # (TB, 128)
    g3 = relu(mm(g2, wf3) + bf3[...])                     # (TB, 16)

    # fc4 (16 -> 1) in f32, contracted so the result lands lane-dense as (1, TB).
    y = jax.lax.dot_general(wf4[...], g3,
                            dimension_numbers=(((0,), (1,)), ((), ())),
                            preferred_element_type=f32)   # (1, TB)
    out_ref[...] = y + bf4[...]


# ----------------------------------------------------------------------------
# Wrapper: batch-blocked grid, resident VMEM weights, lane-dense output
# ----------------------------------------------------------------------------
def netlocald_pallas(x_bn3, kernel_params, *, tb=None):
    """x_bn3: (B, N, 3) float32; kernel_params: list of (W, bias) in kernel order."""
    B, N, Cin = x_bn3.shape

    if tb is None:
        # Pack several batch elements per block (amortize ~0.35us/step, fill the
        # MXU sublanes), but keep >= 2 grid steps so both v7x cores get work.
        # TB <= 16 keeps f32 activations at N=512 comfortably inside v7x's
        # 32 MiB scoped VMEM.
        tb = 1 if B <= 1 else min(16, pl.cdiv(B, 2))

    nb = pl.cdiv(B, tb)
    Bp = nb * tb
    if Bp != B:
        x_bn3 = jnp.pad(x_bn3, ((0, Bp - B), (0, 0), (0, 0)))

    in_specs = [pl.BlockSpec((tb, N, Cin), lambda b: (b, 0, 0))]
    args = []
    for w, bias in kernel_params:
        # Constant operands: full-array, resident in VMEM, no double buffering.
        in_specs.append(pl.BlockSpec(memory_space=pltpu.MemorySpace.VMEM))
        in_specs.append(pl.BlockSpec(memory_space=pltpu.MemorySpace.VMEM))
        args.extend([w, bias])

    out = pl.pallas_call(
        disc_kernel,
        out_shape=jax.ShapeDtypeStruct((nb, 1, tb), jnp.float32),
        grid=(nb,),
        in_specs=in_specs,
        out_specs=pl.BlockSpec((None, 1, tb), lambda b: (b, 0, 0)),
        compiler_params=pltpu.CompilerParams(
            dimension_semantics=("parallel",),
            vmem_limit_bytes=32 * 1024 * 1024),
    )(x_bn3, *args)

    return out.reshape(Bp, 1)[:B]


# ----------------------------------------------------------------------------
# Deterministic parameter construction (PyTorch-default-style uniform init)
# ----------------------------------------------------------------------------
def init_params(key):
    ks = jax.random.split(key, 24)

    def uni(k, shape, fan_in):
        bound = 1.0 / jnp.sqrt(jnp.float32(fan_in))
        return jax.random.uniform(k, shape, jnp.float32, -bound, bound)

    def bn_params(k, c):
        k1, k2, k3, k4 = jax.random.split(k, 4)
        gamma = jax.random.uniform(k1, (c,), jnp.float32, 0.8, 1.2)
        beta = jax.random.uniform(k2, (c,), jnp.float32, -0.1, 0.1)
        mean = jax.random.uniform(k3, (c,), jnp.float32, -0.1, 0.1)
        var = jax.random.uniform(k4, (c,), jnp.float32, 0.9, 1.1)
        return (gamma, beta, mean, var)

    p = {}
    # conv / fc weights stored as (in, out) so the kernel computes x @ W
    p['w1'] = uni(ks[0], (3, 64), 3);        p['b1'] = uni(ks[1], (1, 64), 3)
    p['w2'] = uni(ks[2], (64, 64), 64);      p['b2'] = uni(ks[3], (1, 64), 64)
    p['w3'] = uni(ks[4], (64, 128), 64);     p['b3'] = uni(ks[5], (1, 128), 64)
    p['w4'] = uni(ks[6], (128, 256), 128);   p['b4'] = uni(ks[7], (1, 256), 128)
    p['wf1'] = uni(ks[8], (448, 256), 448);  p['bf1'] = uni(ks[9], (1, 256), 448)
    p['wf2'] = uni(ks[10], (256, 128), 256); p['bf2'] = uni(ks[11], (1, 128), 256)
    p['wf3'] = uni(ks[12], (128, 16), 128);  p['bf3'] = uni(ks[13], (1, 16), 128)
    p['wf4'] = uni(ks[14], (16, 1), 16);     p['bf4'] = uni(ks[15], (1, 1), 16)
    p['bn1'] = bn_params(ks[16], 64)
    p['bn2'] = bn_params(ks[17], 64)
    p['bn3'] = bn_params(ks[18], 128)
    p['bn4'] = bn_params(ks[19], 256)
    p['bn_1'] = bn_params(ks[20], 256)
    p['bn_2'] = bn_params(ks[21], 128)
    p['bn_3'] = bn_params(ks[22], 16)
    return p


def fold_bn(w, b, bn, eps=1e-5):
    """Fold eval-mode BatchNorm into the preceding affine op (W is (in, out))."""
    gamma, beta, mean, var = bn
    scale = gamma / jnp.sqrt(var + eps)
    shift = beta - mean * scale
    return w * scale[None, :], b * scale[None, :] + shift[None, :]


def to_kernel_dtypes(folded):
    """Cast MXU matmul weights to bf16; keep VPU conv1, final fc4 and biases f32."""
    (w1, b1), (w2, b2), (w3, b3), (w4, b4), \
        (wf1, bf1), (wf2, bf2), (wf3, bf3), (wf4, bf4) = folded
    bf = lambda a: a.astype(jnp.bfloat16)
    return [(w1, b1),
            (bf(w2), b2), (bf(w3), b3), (bf(w4), b4),
            (bf(wf1), bf1), (bf(wf2), bf2), (bf(wf3), bf3),
            (wf4, bf4)]


# ----------------------------------------------------------------------------
# Pure-JAX reference (unfolded BN, f32; matches the PyTorch forward in eval mode)
# ----------------------------------------------------------------------------
def reference_forward(x_bn3, p, eps=1e-5):
    hp = jax.lax.Precision.HIGHEST
    relu = jax.nn.relu

    def bn(v, bnp):
        g, bta, m, var = bnp
        return g * (v - m) / jnp.sqrt(var + eps) + bta

    mm = lambda a, w: jnp.einsum('bnc,co->bno', a, w, precision=hp)
    h1 = relu(bn(mm(x_bn3, p['w1']) + p['b1'], p['bn1']))
    h2 = relu(bn(mm(h1, p['w2']) + p['b2'], p['bn2']))
    h3 = relu(bn(mm(h2, p['w3']) + p['b3'], p['bn3']))
    h4 = relu(bn(mm(h3, p['w4']) + p['b4'], p['bn4']))

    f64 = jnp.max(h2, axis=1)     # (B, 64)
    f128 = jnp.max(h3, axis=1)    # (B, 128)
    f256 = jnp.max(h4, axis=1)    # (B, 256)
    feat = jnp.concatenate([f256, f128, f64], axis=1)   # (B, 448)

    fmm = lambda a, w: jnp.dot(a, w, precision=hp)
    g1 = relu(bn(fmm(feat, p['wf1']) + p['bf1'], p['bn_1']))
    g2 = relu(bn(fmm(g1, p['wf2']) + p['bf2'], p['bn_2']))
    g3 = relu(bn(fmm(g2, p['wf3']) + p['bf3'], p['bn_3']))
    return fmm(g3, p['wf4']) + p['bf4']                  # (B, 1)


if __name__ == "__main__":
    B = 8                  # small batch; blocked as 2 grid steps of TB=4
    CROP_POINT_NUM = 64    # small N for the demo; original PF-Net uses 512

    key = jax.random.PRNGKey(0)
    kx, kp = jax.random.split(key)

    # PyTorch-style NCHW input (B, 1, N, 3)
    x_nchw = jax.random.normal(kx, (B, 1, CROP_POINT_NUM, 3), dtype=jnp.float32)
    # kernel layout: (B, N, 3)
    x_bn3 = x_nchw[:, 0, :, :]

    params = init_params(kp)

    folded = [
        fold_bn(params['w1'], params['b1'], params['bn1']),
        fold_bn(params['w2'], params['b2'], params['bn2']),
        fold_bn(params['w3'], params['b3'], params['bn3']),
        fold_bn(params['w4'], params['b4'], params['bn4']),
        fold_bn(params['wf1'], params['bf1'], params['bn_1']),
        fold_bn(params['wf2'], params['bf2'], params['bn_2']),
        fold_bn(params['wf3'], params['bf3'], params['bn_3']),
        (params['wf4'], params['bf4']),   # fc4 has no BN
    ]
    kernel_params = to_kernel_dtypes(folded)

    out = netlocald_pallas(x_bn3, kernel_params)
    out = jax.block_until_ready(out)

    ref = reference_forward(x_bn3, params)
    err = float(jnp.max(jnp.abs(out - ref)))
    assert out.shape == (B, 1), out.shape
    # bf16 MXU operands (f32 accumulation) -> loosened tolerance vs f32 reference
    assert err < 5e-2, f"mismatch vs reference: max abs err = {err}"

    print("KERNEL_OK")
</pallas_src>

<mosaic_0001>
module attributes {stable_mosaic.version = 11 : i64} {
  func.func @disc_kernel(%arg0: i32, %arg1: memref<4x64x3xf32, #tpu.memory_space<vmem>>, %arg2: memref<3x64xf32, #tpu.memory_space<vmem>>, %arg3: memref<1x64xf32, #tpu.memory_space<vmem>>, %arg4: memref<64x64xbf16, #tpu.memory_space<vmem>>, %arg5: memref<1x64xf32, #tpu.memory_space<vmem>>, %arg6: memref<64x128xbf16, #tpu.memory_space<vmem>>, %arg7: memref<1x128xf32, #tpu.memory_space<vmem>>, %arg8: memref<128x256xbf16, #tpu.memory_space<vmem>>, %arg9: memref<1x256xf32, #tpu.memory_space<vmem>>, %arg10: memref<448x256xbf16, #tpu.memory_space<vmem>>, %arg11: memref<1x256xf32, #tpu.memory_space<vmem>>, %arg12: memref<256x128xbf16, #tpu.memory_space<vmem>>, %arg13: memref<1x128xf32, #tpu.memory_space<vmem>>, %arg14: memref<128x16xbf16, #tpu.memory_space<vmem>>, %arg15: memref<1x16xf32, #tpu.memory_space<vmem>>, %arg16: memref<16x1xf32, #tpu.memory_space<vmem>>, %arg17: memref<1x1xf32, #tpu.memory_space<vmem>>, %arg18: memref<1x1x4xf32, #tpu.memory_space<vmem>>) attributes {dimension_semantics = [#tpu.dimension_semantics<parallel>], iteration_bounds = array<i64: 2>, scalar_prefetch = 0 : i64, scratch_operands = 0 : i64, tpu.core_type = #tpu.core_type<tc>, window_params = [{transform_indices = @transform_0, window_bounds = array<i64: 4, 64, 3>}, {pipeline_mode = #tpu.pipeline_mode<synchronous>, transform_indices = @transform_1, window_bounds = array<i64: 3, 64>}, {pipeline_mode = #tpu.pipeline_mode<synchronous>, transform_indices = @transform_2, window_bounds = array<i64: 1, 64>}, {pipeline_mode = #tpu.pipeline_mode<synchronous>, transform_indices = @transform_3, window_bounds = array<i64: 64, 64>}, {pipeline_mode = #tpu.pipeline_mode<synchronous>, transform_indices = @transform_4, window_bounds = array<i64: 1, 64>}, {pipeline_mode = #tpu.pipeline_mode<synchronous>, transform_indices = @transform_5, window_bounds = array<i64: 64, 128>}, {pipeline_mode = #tpu.pipeline_mode<synchronous>, transform_indices = @transform_6, window_bounds = array<i64: 1, 128>}, {pipeline_mode = #tpu.pipeline_mode<synchronous>, transform_indices = @transform_7, window_bounds = array<i64: 128, 256>}, {pipeline_mode = #tpu.pipeline_mode<synchronous>, transform_indices = @transform_8, window_bounds = array<i64: 1, 256>}, {pipeline_mode = #tpu.pipeline_mode<synchronous>, transform_indices = @transform_9, window_bounds = array<i64: 448, 256>}, {pipeline_mode = #tpu.pipeline_mode<synchronous>, transform_indices = @transform_10, window_bounds = array<i64: 1, 256>}, {pipeline_mode = #tpu.pipeline_mode<synchronous>, transform_indices = @transform_11, window_bounds = array<i64: 256, 128>}, {pipeline_mode = #tpu.pipeline_mode<synchronous>, transform_indices = @transform_12, window_bounds = array<i64: 1, 128>}, {pipeline_mode = #tpu.pipeline_mode<synchronous>, transform_indices = @transform_13, window_bounds = array<i64: 128, 16>}, {pipeline_mode = #tpu.pipeline_mode<synchronous>, transform_indices = @transform_14, window_bounds = array<i64: 1, 16>}, {pipeline_mode = #tpu.pipeline_mode<synchronous>, transform_indices = @transform_15, window_bounds = array<i64: 16, 1>}, {pipeline_mode = #tpu.pipeline_mode<synchronous>, transform_indices = @transform_16, window_bounds = array<i64: 1, 1>}, {transform_indices = @transform_17, window_bounds = array<i64: 1, 1, 4>}]} {
    %c0 = arith.constant 0 : index
    %c0_0 = arith.constant 0 : index
    %c0_1 = arith.constant 0 : index
    %0 = vector.load %arg1[%c0, %c0_0, %c0_1] : memref<4x64x3xf32, #tpu.memory_space<vmem>>, vector<4x64x3xf32>
    %1 = vector.shape_cast %0 : vector<4x64x3xf32> to vector<256x3xf32>
    %c0_2 = arith.constant 0 : index
    %c0_3 = arith.constant 0 : index
    %2 = vector.load %arg2[%c0_2, %c0_3] : memref<3x64xf32, #tpu.memory_space<vmem>>, vector<3x64xf32>
    %3 = vector.extract_strided_slice %1 {offsets = [0, 0], sizes = [256, 1], strides = [1, 1]} : vector<256x3xf32> to vector<256x1xf32>
    %4 = vector.extract_strided_slice %2 {offsets = [0, 0], sizes = [1, 64], strides = [1, 1]} : vector<3x64xf32> to vector<1x64xf32>
    %5 = vector.broadcast %3 : vector<256x1xf32> to vector<256x64xf32>
    %6 = vector.broadcast %4 : vector<1x64xf32> to vector<256x64xf32>
    %7 = arith.mulf %5, %6 : vector<256x64xf32>
    %8 = vector.extract_strided_slice %1 {offsets = [0, 1], sizes = [256, 1], strides = [1, 1]} : vector<256x3xf32> to vector<256x1xf32>
    %9 = vector.extract_strided_slice %2 {offsets = [1, 0], sizes = [1, 64], strides = [1, 1]} : vector<3x64xf32> to vector<1x64xf32>
    %10 = vector.broadcast %8 : vector<256x1xf32> to vector<256x64xf32>
    %11 = vector.broadcast %9 : vector<1x64xf32> to vector<256x64xf32>
    %12 = arith.mulf %10, %11 : vector<256x64xf32>
    %13 = arith.addf %7, %12 : vector<256x64xf32>
    %14 = vector.extract_strided_slice %1 {offsets = [0, 2], sizes = [256, 1], strides = [1, 1]} : vector<256x3xf32> to vector<256x1xf32>
    %15 = vector.extract_strided_slice %2 {offsets = [2, 0], sizes = [1, 64], strides = [1, 1]} : vector<3x64xf32> to vector<1x64xf32>
    %16 = vector.broadcast %14 : vector<256x1xf32> to vector<256x64xf32>
    %17 = vector.broadcast %15 : vector<1x64xf32> to vector<256x64xf32>
    %18 = arith.mulf %16, %17 : vector<256x64xf32>
    %19 = arith.addf %13, %18 : vector<256x64xf32>
    %c0_4 = arith.constant 0 : index
    %c0_5 = arith.constant 0 : index
    %20 = vector.load %arg3[%c0_4, %c0_5] : memref<1x64xf32, #tpu.memory_space<vmem>>, vector<1x64xf32>
    %21 = vector.broadcast %20 : vector<1x64xf32> to vector<256x64xf32>
    %22 = arith.addf %19, %21 : vector<256x64xf32>
    %cst = arith.constant 0.000000e+00 : f32
    %23 = vector.broadcast %cst : f32 to vector<256x64xf32>
    %24 = arith.maximumf %22, %23 : vector<256x64xf32>
    %25 = arith.truncf %24 : vector<256x64xf32> to vector<256x64xbf16>
    %c0_6 = arith.constant 0 : index
    %c0_7 = arith.constant 0 : index
    %26 = vector.load %arg4[%c0_6, %c0_7] : memref<64x64xbf16, #tpu.memory_space<vmem>>, vector<64x64xbf16>
    %cst_8 = arith.constant dense<0.000000e+00> : vector<256x64xf32>
    %27 = tpu.matmul %25, %26, %cst_8 {dimension_numbers = #tpu.dot_dimension_numbers<[1], [0], [0], [1], [0, 0, 1, 1], [], []>} : vector<256x64xbf16>, vector<64x64xbf16>, vector<256x64xf32> -> vector<256x64xf32>
    %c0_9 = arith.constant 0 : index
    %c0_10 = arith.constant 0 : index
    %28 = vector.load %arg5[%c0_9, %c0_10] : memref<1x64xf32, #tpu.memory_space<vmem>>, vector<1x64xf32>
    %29 = vector.broadcast %28 : vector<1x64xf32> to vector<256x64xf32>
    %30 = arith.addf %27, %29 : vector<256x64xf32>
    %cst_11 = arith.constant 0.000000e+00 : f32
    %31 = vector.broadcast %cst_11 : f32 to vector<256x64xf32>
    %32 = arith.maximumf %30, %31 : vector<256x64xf32>
    %33 = arith.truncf %32 : vector<256x64xf32> to vector<256x64xbf16>
    %c0_12 = arith.constant 0 : index
    %c0_13 = arith.constant 0 : index
    %34 = vector.load %arg6[%c0_12, %c0_13] : memref<64x128xbf16, #tpu.memory_space<vmem>>, vector<64x128xbf16>
    %cst_14 = arith.constant dense<0.000000e+00> : vector<256x128xf32>
    %35 = tpu.matmul %33, %34, %cst_14 {dimension_numbers = #tpu.dot_dimension_numbers<[1], [0], [0], [1], [0, 0, 1, 1], [], []>} : vector<256x64xbf16>, vector<64x128xbf16>, vector<256x128xf32> -> vector<256x128xf32>
    %c0_15 = arith.constant 0 : index
    %c0_16 = arith.constant 0 : index
    %36 = vector.load %arg7[%c0_15, %c0_16] : memref<1x128xf32, #tpu.memory_space<vmem>>, vector<1x128xf32>
    %37 = vector.broadcast %36 : vector<1x128xf32> to vector<256x128xf32>
    %38 = arith.addf %35, %37 : vector<256x128xf32>
    %cst_17 = arith.constant 0.000000e+00 : f32
    %39 = vector.broadcast %cst_17 : f32 to vector<256x128xf32>
    %40 = arith.maximumf %38, %39 : vector<256x128xf32>
    %41 = arith.truncf %40 : vector<256x128xf32> to vector<256x128xbf16>
    %c0_18 = arith.constant 0 : index
    %c0_19 = arith.constant 0 : index
    %42 = vector.load %arg8[%c0_18, %c0_19] : memref<128x256xbf16, #tpu.memory_space<vmem>>, vector<128x256xbf16>
    %cst_20 = arith.constant dense<0.000000e+00> : vector<256x256xf32>
    %43 = tpu.matmul %41, %42, %cst_20 {dimension_numbers = #tpu.dot_dimension_numbers<[1], [0], [0], [1], [0, 0, 1, 1], [], []>} : vector<256x128xbf16>, vector<128x256xbf16>, vector<256x256xf32> -> vector<256x256xf32>
    %c0_21 = arith.constant 0 : index
    %c0_22 = arith.constant 0 : index
    %44 = vector.load %arg9[%c0_21, %c0_22] : memref<1x256xf32, #tpu.memory_space<vmem>>, vector<1x256xf32>
    %45 = vector.broadcast %44 : vector<1x256xf32> to vector<256x256xf32>
    %46 = arith.addf %43, %45 : vector<256x256xf32>
    %cst_23 = arith.constant 0.000000e+00 : f32
    %47 = vector.broadcast %cst_23 : f32 to vector<256x256xf32>
    %48 = arith.maximumf %46, %47 : vector<256x256xf32>
    %49 = vector.shape_cast %32 : vector<256x64xf32> to vector<4x64x64xf32>
    %cst_24 = arith.constant dense<0xFF800000> : vector<4x64xf32>
    %50 = vector.multi_reduction <maximumf>, %49, %cst_24 [1] : vector<4x64x64xf32> to vector<4x64xf32>
    %51 = vector.shape_cast %40 : vector<256x128xf32> to vector<4x64x128xf32>
    %cst_25 = arith.constant dense<0xFF800000> : vector<4x128xf32>
    %52 = vector.multi_reduction <maximumf>, %51, %cst_25 [1] : vector<4x64x128xf32> to vector<4x128xf32>
    %53 = vector.shape_cast %48 : vector<256x256xf32> to vector<4x64x256xf32>
    %cst_26 = arith.constant dense<0xFF800000> : vector<4x256xf32>
    %54 = vector.multi_reduction <maximumf>, %53, %cst_26 [1] : vector<4x64x256xf32> to vector<4x256xf32>
    %55 = tpu.concatenate %54, %52, %50 in 1 : vector<4x256xf32>, vector<4x128xf32>, vector<4x64xf32> -> vector<4x448xf32>
    %56 = arith.truncf %55 : vector<4x448xf32> to vector<4x448xbf16>
    %c0_27 = arith.constant 0 : index
    %c0_28 = arith.constant 0 : index
    %57 = vector.load %arg10[%c0_27, %c0_28] : memref<448x256xbf16, #tpu.memory_space<vmem>>, vector<448x256xbf16>
    %cst_29 = arith.constant dense<0.000000e+00> : vector<4x256xf32>
    %58 = tpu.matmul %56, %57, %cst_29 {dimension_numbers = #tpu.dot_dimension_numbers<[1], [0], [0], [1], [0, 0, 1, 1], [], []>} : vector<4x448xbf16>, vector<448x256xbf16>, vector<4x256xf32> -> vector<4x256xf32>
    %c0_30 = arith.constant 0 : index
    %c0_31 = arith.constant 0 : index
    %59 = vector.load %arg11[%c0_30, %c0_31] : memref<1x256xf32, #tpu.memory_space<vmem>>, vector<1x256xf32>
    %60 = vector.broadcast %59 : vector<1x256xf32> to vector<4x256xf32>
    %61 = arith.addf %58, %60 : vector<4x256xf32>
    %cst_32 = arith.constant 0.000000e+00 : f32
    %62 = vector.broadcast %cst_32 : f32 to vector<4x256xf32>
    %63 = arith.maximumf %61, %62 : vector<4x256xf32>
    %64 = arith.truncf %63 : vector<4x256xf32> to vector<4x256xbf16>
    %c0_33 = arith.constant 0 : index
    %c0_34 = arith.constant 0 : index
    %65 = vector.load %arg12[%c0_33, %c0_34] : memref<256x128xbf16, #tpu.memory_space<vmem>>, vector<256x128xbf16>
    %cst_35 = arith.constant dense<0.000000e+00> : vector<4x128xf32>
    %66 = tpu.matmul %64, %65, %cst_35 {dimension_numbers = #tpu.dot_dimension_numbers<[1], [0], [0], [1], [0, 0, 1, 1], [], []>} : vector<4x256xbf16>, vector<256x128xbf16>, vector<4x128xf32> -> vector<4x128xf32>
    %c0_36 = arith.constant 0 : index
    %c0_37 = arith.constant 0 : index
    %67 = vector.load %arg13[%c0_36, %c0_37] : memref<1x128xf32, #tpu.memory_space<vmem>>, vector<1x128xf32>
    %68 = vector.broadcast %67 : vector<1x128xf32> to vector<4x128xf32>
    %69 = arith.addf %66, %68 : vector<4x128xf32>
    %cst_38 = arith.constant 0.000000e+00 : f32
    %70 = vector.broadcast %cst_38 : f32 to vector<4x128xf32>
    %71 = arith.maximumf %69, %70 : vector<4x128xf32>
    %72 = arith.truncf %71 : vector<4x128xf32> to vector<4x128xbf16>
    %c0_39 = arith.constant 0 : index
    %c0_40 = arith.constant 0 : index
    %73 = vector.load %arg14[%c0_39, %c0_40] : memref<128x16xbf16, #tpu.memory_space<vmem>>, vector<128x16xbf16>
    %cst_41 = arith.constant dense<0.000000e+00> : vector<4x16xf32>
    %74 = tpu.matmul %72, %73, %cst_41 {dimension_numbers = #tpu.dot_dimension_numbers<[1], [0], [0], [1], [0, 0, 1, 1], [], []>} : vector<4x128xbf16>, vector<128x16xbf16>, vector<4x16xf32> -> vector<4x16xf32>
    %c0_42 = arith.constant 0 : index
    %c0_43 = arith.constant 0 : index
    %75 = vector.load %arg15[%c0_42, %c0_43] : memref<1x16xf32, #tpu.memory_space<vmem>>, vector<1x16xf32>
    %76 = vector.broadcast %75 : vector<1x16xf32> to vector<4x16xf32>
    %77 = arith.addf %74, %76 : vector<4x16xf32>
    %cst_44 = arith.constant 0.000000e+00 : f32
    %78 = vector.broadcast %cst_44 : f32 to vector<4x16xf32>
    %79 = arith.maximumf %77, %78 : vector<4x16xf32>
    %c0_45 = arith.constant 0 : index
    %c0_46 = arith.constant 0 : index
    %80 = vector.load %arg16[%c0_45, %c0_46] : memref<16x1xf32, #tpu.memory_space<vmem>>, vector<16x1xf32>
    %cst_47 = arith.constant dense<0.000000e+00> : vector<1x4xf32>
    %81 = tpu.matmul %80, %79, %cst_47 {dimension_numbers = #tpu.dot_dimension_numbers<[0], [1], [1], [0], [0, 1, 1, 0], [], []>} : vector<16x1xf32>, vector<4x16xf32>, vector<1x4xf32> -> vector<1x4xf32>
    %c0_48 = arith.constant 0 : index
    %c0_49 = arith.constant 0 : index
    %82 = vector.load %arg17[%c0_48, %c0_49] : memref<1x1xf32, #tpu.memory_space<vmem>>, vector<1x1xf32>
    %83 = vector.broadcast %82 : vector<1x1xf32> to vector<1x4xf32>
    %84 = arith.addf %81, %83 : vector<1x4xf32>
    %c0_50 = arith.constant 0 : index
    %c0_51 = arith.constant 0 : index
    %c0_52 = arith.constant 0 : index
    %85 = vector.load %arg18[%c0_50, %c0_51, %c0_52] : memref<1x1x4xf32, #tpu.memory_space<vmem>>, vector<1x1x4xf32>
    %86 = vector.shape_cast %85 : vector<1x1x4xf32> to vector<1x4xf32>
    %87 = vector.shape_cast %84 : vector<1x4xf32> to vector<1x1x4xf32>
    tpu.vector_store %arg18[%c0_50, %c0_51, %c0_52], %87 {strides = array<i32>} : memref<1x1x4xf32, #tpu.memory_space<vmem>>, vector<1x1x4xf32>,
    return
  }
  func.func @transform_0(%arg0: i32) -> (i32, i32, i32) {
    %c0_i32 = arith.constant 0 : i32
    %c0_i32_0 = arith.constant 0 : i32
    %c0_i32_1 = arith.constant 0 : i32
    return %arg0, %c0_i32, %c0_i32_0 : i32, i32, i32
  }
  func.func @transform_1(%arg0: i32) -> (i32, i32) {
    %c0_i32 = arith.constant 0 : i32
    %c0_i32_0 = arith.constant 0 : i32
    %c0_i32_1 = arith.constant 0 : i32
    return %c0_i32, %c0_i32_0 : i32, i32
  }
  func.func @transform_2(%arg0: i32) -> (i32, i32) {
    %c0_i32 = arith.constant 0 : i32
    %c0_i32_0 = arith.constant 0 : i32
    %c0_i32_1 = arith.constant 0 : i32
    return %c0_i32, %c0_i32_0 : i32, i32
  }
  func.func @transform_3(%arg0: i32) -> (i32, i32) {
    %c0_i32 = arith.constant 0 : i32
    %c0_i32_0 = arith.constant 0 : i32
    %c0_i32_1 = arith.constant 0 : i32
    return %c0_i32, %c0_i32_0 : i32, i32
  }
  func.func @transform_4(%arg0: i32) -> (i32, i32) {
    %c0_i32 = arith.constant 0 : i32
    %c0_i32_0 = arith.constant 0 : i32
    %c0_i32_1 = arith.constant 0 : i32
    return %c0_i32, %c0_i32_0 : i32, i32
  }
  func.func @transform_5(%arg0: i32) -> (i32, i32) {
    %c0_i32 = arith.constant 0 : i32
    %c0_i32_0 = arith.constant 0 : i32
    %c0_i32_1 = arith.constant 0 : i32
    return %c0_i32, %c0_i32_0 : i32, i32
  }
  func.func @transform_6(%arg0: i32) -> (i32, i32) {
    %c0_i32 = arith.constant 0 : i32
    %c0_i32_0 = arith.constant 0 : i32
    %c0_i32_1 = arith.constant 0 : i32
    return %c0_i32, %c0_i32_0 : i32, i32
  }
  func.func @transform_7(%arg0: i32) -> (i32, i32) {
    %c0_i32 = arith.constant 0 : i32
    %c0_i32_0 = arith.constant 0 : i32
    %c0_i32_1 = arith.constant 0 : i32
    return %c0_i32, %c0_i32_0 : i32, i32
  }
  func.func @transform_8(%arg0: i32) -> (i32, i32) {
    %c0_i32 = arith.constant 0 : i32
    %c0_i32_0 = arith.constant 0 : i32
    %c0_i32_1 = arith.constant 0 : i32
    return %c0_i32, %c0_i32_0 : i32, i32
  }
  func.func @transform_9(%arg0: i32) -> (i32, i32) {
    %c0_i32 = arith.constant 0 : i32
    %c0_i32_0 = arith.constant 0 : i32
    %c0_i32_1 = arith.constant 0 : i32
    return %c0_i32, %c0_i32_0 : i32, i32
  }
  func.func @transform_10(%arg0: i32) -> (i32, i32) {
    %c0_i32 = arith.constant 0 : i32
    %c0_i32_0 = arith.constant 0 : i32
    %c0_i32_1 = arith.constant 0 : i32
    return %c0_i32, %c0_i32_0 : i32, i32
  }
  func.func @transform_11(%arg0: i32) -> (i32, i32) {
    %c0_i32 = arith.constant 0 : i32
    %c0_i32_0 = arith.constant 0 : i32
    %c0_i32_1 = arith.constant 0 : i32
    return %c0_i32, %c0_i32_0 : i32, i32
  }
  func.func @transform_12(%arg0: i32) -> (i32, i32) {
    %c0_i32 = arith.constant 0 : i32
    %c0_i32_0 = arith.constant 0 : i32
    %c0_i32_1 = arith.constant 0 : i32
    return %c0_i32, %c0_i32_0 : i32, i32
  }
  func.func @transform_13(%arg0: i32) -> (i32, i32) {
    %c0_i32 = arith.constant 0 : i32
    %c0_i32_0 = arith.constant 0 : i32
    %c0_i32_1 = arith.constant 0 : i32
    return %c0_i32, %c0_i32_0 : i32, i32
  }
  func.func @transform_14(%arg0: i32) -> (i32, i32) {
    %c0_i32 = arith.constant 0 : i32
    %c0_i32_0 = arith.constant 0 : i32
    %c0_i32_1 = arith.constant 0 : i32
    return %c0_i32, %c0_i32_0 : i32, i32
  }
  func.func @transform_15(%arg0: i32) -> (i32, i32) {
    %c0_i32 = arith.constant 0 : i32
    %c0_i32_0 = arith.constant 0 : i32
    %c0_i32_1 = arith.constant 0 : i32
    return %c0_i32, %c0_i32_0 : i32, i32
  }
  func.func @transform_16(%arg0: i32) -> (i32, i32) {
    %c0_i32 = arith.constant 0 : i32
    %c0_i32_0 = arith.constant 0 : i32
    %c0_i32_1 = arith.constant 0 : i32
    return %c0_i32, %c0_i32_0 : i32, i32
  }
  func.func @transform_17(%arg0: i32) -> (i32, i32, i32) {
    %c0_i32 = arith.constant 0 : i32
    %c0_i32_0 = arith.constant 0 : i32
    %c0_i32_1 = arith.constant 0 : i32
    return %arg0, %c0_i32, %c0_i32_0 : i32, i32, i32
  }
}

</mosaic_0001>

<bundles_post_ra>
// kernel: tpu_custom_call.1
= control target key start
LH: loop header
LB: loop body
LE: loop exit
PB: predicated region body
PF: predicated region fallthrough
CT: control target
= control target key end

     0   :  { %s5804_s0 = inlined_call_operand.vmem [shape: f32[8,64,3], index: 0, kind: input, shape index: {}]   ;;  %s5805_s1 = inlined_call_operand.hbm [shape: f32[3,64], index: 1, kind: input, shape index: {}]   ;;  %s5806_s2 = inlined_call_operand.hbm [shape: f32[1,64], index: 2, kind: input, shape index: {}]   ;;  %s5807_s3 = inlined_call_operand.vmem [shape: bf16[64,64], index: 3, kind: input, shape index: {}]   ;;  %s5808_s4 = inlined_call_operand.hbm [shape: f32[1,64], index: 4, kind: input, shape index: {}]   ;;  %s5809_s5 = inlined_call_operand.vmem [shape: bf16[64,128], index: 5, kind: input, shape index: {}]   ;;  %s5810_s6 = inlined_call_operand.hbm [shape: f32[1,128], index: 6, kind: input, shape index: {}]   ;;  %s5811_s7 = inlined_call_operand.vmem [shape: bf16[128,256], index: 7, kind: input, shape index: {}]   ;;  %s5812_s8 = inlined_call_operand.hbm [shape: f32[1,256], index: 8, kind: input, shape index: {}]   ;;  %s5813_s9 = inlined_call_operand.vmem [shape: bf16[448,256], index: 9, kind: input, shape index: {}]   ;;  %s5814_s10 = inlined_call_operand.hbm [shape: f32[1,256], index: 10, kind: input, shape index: {}]   ;;  %s5815_s11 = inlined_call_operand.hbm [shape: bf16[256,128], index: 11, kind: input, shape index: {}]   ;;  %s5816_s12 = inlined_call_operand.hbm [shape: f32[1,128], index: 12, kind: input, shape index: {}]   ;;  %s5817_s13 = inlined_call_operand.vmem [shape: bf16[128,16], index: 13, kind: input, shape index: {}]   ;;  %s5818_s14 = inlined_call_operand.hbm [shape: f32[1,16], index: 14, kind: input, shape index: {}]   ;;  %s5819_s15 = inlined_call_operand.vmem [shape: f32[16,1], index: 15, kind: input, shape index: {}]   ;;  %s5820_s16 = inlined_call_operand.<no memory space> [shape: f32[1,1], index: 16, kind: input, shape index: {}]   ;;  %s5821_s17 = inlined_call_operand.hbm [shape: f32[2,1,4], index: 17, kind: output, shape index: {}]  }
   0x1   :  { %5830 = sst [smem:[#allocation30_spill]] %s5804_s0  ;;  %v22_v0 = vstv %s5820_s16 }
   0x2   :  { %5831 = sst [smem:[#allocation31_spill]] %s5805_s1  ;;  %23 = vst [vmem:[#allocation2] sm:$0x1] %v22_v0 }
   0x3   :  { %5832 = sst [smem:[#allocation32_spill]] %s5806_s2 }
   0x4   :  { %5833 = sst [smem:[#allocation33_spill]] %s5808_s4 }
   0x5   :  { %24 = vsyncpa [#allocation4], 0 }
   0x6   :  { %25 = vsyncpa [#allocation7], 0 }
   0x7   :  { %26 = vsyncpa [#allocation10], 0 }
   0x8   :  { %27 = vsyncpa [#allocation13], 0 }
   0x9   :  { %28 = vsyncpa [#allocation16], 0 }
   0xa   :  { %29 = vsyncpa [#allocation5], 0 }
   0xb   :  { %31 = vsyncpa [#allocation5 + $0x1], 0  ;;  %s4721_s26 = smov 0   ;;  %s4723_s27 = smov 0  }
   0xc   :  { %s4725_s28 = smov 0   ;;  %s4727_s29 = smov 0  }
   0xd LB: > { %5834 = sst [smem:[#allocation25_spill]] %s4597_s26  ;;  %s4742_s16 = sadd.s32 4294967295, %s4609_s29   ;;  %s4609_s29 = sphi %s4727_s29, %s5863_s29   ;;  %s4605_s28 = sphi %s4725_s28, %s5865_s28   ;;  %s4601_s27 = sphi %s4723_s27, %s5867_s27   ;;  %s4597_s26 = sphi %s4721_s26, %s5866_s26  }
   0xe   : > { %5835 = sst [smem:[#allocation26_spill]] %s4605_s28  ;;  %s3619_s0 = sadd.s32 4294967294, %s4609_s29  }
   0xf   : > { %s4746_s30 = sadd.s32 1, %s4609_s29   ;;  %s406_s18 = sadd.s32 1, %s4605_s28 }
  0x10   : > { %5836 = sst [smem:[#allocation27_spill]] %s4746_s30  ;;  %s403_s19 = ssub.s32 %s4609_s29, %s4746_s30 }
  0x11   : > { %p416_p0 = scmp.ne.s32.totalorder %s4605_s28, %s4601_s27  ;;  %p404_p1 = scmp.eq.s32.totalorder %s403_s19, 0 }
  0x12   : > { %p417_p2 = scmp.eq.s32.totalorder %s4742_s16, 1  ;;  %p422_p3 = scmp.ne.s32.totalorder %s4601_s27, %s4597_s26 }
  0x13   : > { %p423_p4 = scmp.eq.s32.totalorder %s3619_s0, 1  ;;  %p3620_p7 = scmp.ge.s32.totalorder %s4609_s29, 1 }
  0x14   : > { %s4757_s1 = scalar_select %p404_p1, %s4605_s28, %s406_s18  }
  0x15   : > { %p4759_p5 = por %p417_p2, %p416_p0  ;;  %p4763_p6 = por %p423_p4, %p422_p3 }
  0x16   : > { %5837 = sst [smem:[#allocation28_spill]] %s4757_s1  ;;  %p430_p8 = scmp.lt.s32.totalorder %s4609_s29, 3 }
  0x17   : > { %s5838_s20 = scalar_select %p4759_p5, 1, 0 }
  0x18   : > { %s5839_s21 = scalar_select %p4763_p6, 1, 0 }
  0x19   : > { %p5826_p9 = scmp.eq.s32.totalorder %s4742_s16, 0  ;;  %p4770_p10 = pnand %p3620_p7, %p430_p8 }
  0x1a   : > { %5840 = sst [smem:[#allocation29_spill]] %s5839_s21  ;;  %s4611_s23 = smov [#allocation6]  }
  0x1b   : > { %s5841_s22 = scalar_select %p4770_p10, 1, 0 }
  0x1c   : > { %s454_s24 = sshll.u32 %s4611_s23, 4  ;;  %p4008_p11 = pneg %p4770_p10  ;;  %s455_s24 = int_to_ptr.vmem [resolvable:$true] %s454_s24 }
  0x1d   : > { %s4612_s25 = smov [#allocation9]   ;;  %s4613_s19 = smov [#allocation12]  }
  0x1e   : > { %s482_s0 = sshll.u32 %s4612_s25, 4  ;;  %p4778_p12 = pnand %p5826_p9, %p4008_p11  ;;  %s483_s0 = int_to_ptr.vmem [resolvable:$true] %s482_s0 }
  0x1f   : > { %s510_s1 = sshll.u32 %s4613_s19, 4  ;;  %s4306_s23 = scalar_lea.vmem %s455_s24, 16  ;;  %s4782_s1 = int_to_ptr.vmem [resolvable:$true] %s510_s1 }
  0x20   : > { %p4786_p13 = pneg %p4778_p12  ;;  %p4307_p0 = scmp.ne.s32.totalorder %s455_s24, %s4306_s23 }
  0x21   : > { %s4313_s25 = scalar_lea.vmem %s455_s24, 32  ;;  %p4314_p3 = scmp.lt.s32.totalorder %s455_s24, %s455_s24 }
  0x22   : > { %p4309_p1 = pnand %p4307_p0, %p4786_p13  ;;  %p4315_p4 = scmp.lt.s32.totalorder %s4313_s25, %s4306_s23 }
  0x24   : > { %p4310_p2 = pneg %p4309_p1  ;;  %p4316_p7 = por %p4315_p4, %p4314_p3 }
  0x26   : > { %p4317_p8 = pnand %p4316_p7, %p4310_p2 }
  0x28   : > { %4320 = shalt.err (!%p4317_p8)
}
  0x29   : > { %s5844_s2 = sld [smem:[#allocation32_spill]]  ;;  %s4332_s21 = scalar_lea.vmem %s483_s0, 16 }
  0x2a   : > { %p4333_p11 = scmp.ne.s32.totalorder %s483_s0, %s4332_s21  ;;  %s4339_s26 = scalar_lea.vmem %s483_s0, 32 }
  0x2b   : > { %p4340_p0 = scmp.lt.s32.totalorder %s483_s0, %s483_s0  ;;  %p4341_p1 = scmp.lt.s32.totalorder %s4339_s26, %s4332_s21 }
  0x2c   : > { %p4335_p9 = pnand %p4333_p11, %p4786_p13 }
  0x2d   : > { %p4342_p5 = por %p4341_p1, %p4340_p0 }
  0x2e   : > { %p4336_p6 = pneg %p4335_p9 }
  0x2f   : > { %4014 = dma.hbm_to_vmem [thread:$0]  (!%p4778_p12), %s5844_s2, 16, %s455_s24, [#allocation7]  }
  0x30   : > { %p4343_p10 = pnand %p4342_p5, %p4336_p6 }
  0x32   : > { %4346 = shalt.err (!%p4343_p10)
}
  0x33   : > { %4020 = dma.hbm_to_vmem [thread:$0]  (!%p4778_p12), %s5810_s6, 16, %s483_s0, [#allocation10]  }
  0x34   : > { %s4358_s30 = scalar_lea.vmem %s4782_s1, 32  ;;  %p4366_p4 = scmp.lt.s32.totalorder %s4782_s1, %s4782_s1 }
  0x35   : > { %p4359_p2 = scmp.ne.s32.totalorder %s4782_s1, %s4358_s30  ;;  %p4367_p7 = scmp.lt.s32.totalorder %s4358_s30, %s4358_s30 }
  0x37   : > { %p4361_p9 = pnand %p4359_p2, %p4786_p13  ;;  %p4368_p5 = por %p4367_p7, %p4366_p4 }
  0x39   : > { %p4362_p3 = pneg %p4361_p9 }
  0x3b   : > { %p4369_p6 = pnand %p4368_p5, %p4362_p3 }
  0x3d   : > { %4372 = shalt.err (!%p4369_p6)
}
  0x3e   : > { %4026 = dma.hbm_to_vmem [thread:$0]  (!%p4778_p12), %s5814_s10, 32, %s4782_s1, [#allocation13]  }
  0x3f   : > { %s4614_s24 = smov [#allocation15]   ;;  %s4615_s19 = smov [#allocation3]  }
  0x40   : > { %s534_s0 = sshll.u32 %s4614_s24, 4  ;;  %s443_s23 = sshll.u32 %s4615_s19, 4  ;;  %s535_s0 = int_to_ptr.vmem [resolvable:$true] %s534_s0  ;;  %s444_s23 = int_to_ptr.vmem [resolvable:$true] %s443_s23 }
  0x41   : > { %s4384_s25 = scalar_lea.vmem %s535_s0, 16  ;;  %s4391_s30 = scalar_lea.vmem %s535_s0, 32 }
  0x42   : > { %p4385_p10 = scmp.ne.s32.totalorder %s535_s0, %s4384_s25  ;;  %p4392_p0 = scmp.lt.s32.totalorder %s535_s0, %s535_s0 }
  0x43   : > { %p4393_p1 = scmp.lt.s32.totalorder %s4391_s30, %s4384_s25 }
  0x44   : > { %p4387_p8 = pnand %p4385_p10, %p4786_p13 }
  0x45   : > { %p4394_p2 = por %p4393_p1, %p4392_p0 }
  0x46   : > { %p4388_p11 = pneg %p4387_p8 }
  0x48   : > { %p4395_p9 = pnand %p4394_p2, %p4388_p11 }
  0x4a   : > { %4398 = shalt.err (!%p4395_p9)
}
  0x4b   : > { %4032 = dma.hbm_to_vmem [thread:$0]  (!%p4778_p12), %s5816_s12, 16, %s535_s0, [#allocation16]  }
  0x4c   : > { %s4410_s21 = scalar_lea.vmem %s444_s23, 64  ;;  %p4418_p5 = scmp.lt.s32.totalorder %s444_s23, %s444_s23 }
  0x4d   : > { %p4411_p3 = scmp.ne.s32.totalorder %s444_s23, %s4410_s21  ;;  %p4419_p6 = scmp.lt.s32.totalorder %s4410_s21, %s4410_s21 }
  0x4f   : > { %p4413_p4 = pnand %p4411_p3, %p4786_p13  ;;  %p4420_p10 = por %p4419_p6, %p4418_p5 }
  0x51   : > { %p4414_p7 = pneg %p4413_p4 }
  0x53   : > { %p4421_p8 = pnand %p4420_p10, %p4414_p7 }
  0x55   : > { %4424 = shalt.err (!%p4421_p8)
}
  0x56   : > { %s5845_s25 = sld [smem:[#allocation31_spill]]  ;;  %s4616_s30 = smov [#allocation8]  }
  0x57   : > { %s468_s0 = sshll.u32 %s4616_s30, 4  ;;  %s4617_s26 = smov [#allocation11]   ;;  %s469_s0 = int_to_ptr.vmem [resolvable:$true] %s468_s0 }
  0x58   : > { %s496_s1 = sshll.u32 %s4617_s26, 4  ;;  %s4436_s2 = scalar_lea.vmem %s469_s0, 16  ;;  %s497_s1 = int_to_ptr.vmem [resolvable:$true] %s496_s1 }
  0x59   : > { %p4437_p11 = scmp.ne.s32.totalorder %s469_s0, %s4436_s2  ;;  %s4443_s21 = scalar_lea.vmem %s469_s0, 32 }
  0x5a   : > { %p4444_p2 = scmp.lt.s32.totalorder %s469_s0, %s469_s0  ;;  %p4445_p9 = scmp.lt.s32.totalorder %s4443_s21, %s4436_s2 }
  0x5b   : > { %p4439_p0 = pnand %p4437_p11, %p4786_p13 }
  0x5c   : > { %4011 = dma.hbm_to_vmem [thread:$0]  (!%p4778_p12), %s5845_s25, 64, %s444_s23, [#allocation4]  }
  0x5d   : > { %p4440_p1 = pneg %p4439_p0  ;;  %p4446_p3 = por %p4445_p9, %p4444_p2 }
  0x5f   : > { %p4447_p4 = pnand %p4446_p3, %p4440_p1 }
  0x61   : > { %4450 = shalt.err (!%p4447_p4)
}
  0x62   : > { %s5846_s4 = sld [smem:[#allocation33_spill]]  ;;  %s4462_s19 = scalar_lea.vmem %s497_s1, 32 }
  0x63   : > { %p4463_p7 = scmp.ne.s32.totalorder %s497_s1, %s4462_s19  ;;  %p4470_p10 = scmp.lt.s32.totalorder %s497_s1, %s497_s1 }
  0x64   : > { %p4471_p8 = scmp.lt.s32.totalorder %s4462_s19, %s4462_s19 }
  0x65   : > { %p4465_p5 = pnand %p4463_p7, %p4786_p13 }
  0x66   : > { %p4472_p11 = por %p4471_p8, %p4470_p10 }
  0x67   : > { %p4466_p6 = pneg %p4465_p5 }
  0x68   : > { %4017 = dma.hbm_to_vmem [thread:$0]  (!%p4778_p12), %s5846_s4, 16, %s469_s0, [#allocation7]  }
  0x69   : > { %p4473_p0 = pnand %p4472_p11, %p4466_p6 }
  0x6b   : > { %4476 = shalt.err (!%p4473_p0)
}
  0x6c   : > { %4023 = dma.hbm_to_vmem [thread:$0]  (!%p4778_p12), %s5812_s8, 32, %s497_s1, [#allocation10]  }
  0x6d   : > { %s4618_s30 = smov [#allocation14]  }
  0x6e   : > { %s520_s0 = sshll.u32 %s4618_s30, 4  ;;  %s521_s0 = int_to_ptr.vmem [resolvable:$true] %s520_s0 }
  0x6f   : > { %s4488_s26 = scalar_lea.vmem %s521_s0, 2048  ;;  %p4496_p3 = scmp.lt.s32.totalorder %s521_s0, %s521_s0 }
  0x70   : > { %p4489_p1 = scmp.ne.s32.totalorder %s521_s0, %s4488_s26  ;;  %p4497_p4 = scmp.lt.s32.totalorder %s4488_s26, %s4488_s26 }
  0x72   : > { %p4491_p2 = pnand %p4489_p1, %p4786_p13  ;;  %p4498_p7 = por %p4497_p4, %p4496_p3 }
  0x74   : > { %p4492_p9 = pneg %p4491_p2 }
  0x76   : > { %p4499_p5 = pnand %p4498_p7, %p4492_p9 }
  0x78   : > { %4502 = shalt.err (!%p4499_p5)
}
  0x79   : > { %s4619_s21 = smov 64   ;;  %s4620_s24 = smov 4  }
  0x7a   : > { %4029 = dma.hbm_to_vmem [thread:$0]  (!%p4778_p12), %s5815_s11, 2048, %s521_s0, [#allocation13], %s4619_s21, %s4619_s21, %s4620_s24  }
  0x7b   : > { %s4621_s19 = smov [#allocation17]  }
  0x7c   : > { %s548_s2 = sshll.u32 %s4621_s19, 4  ;;  %s549_s2 = int_to_ptr.vmem [resolvable:$true] %s548_s2 }
  0x7d   : > { %s4514_s25 = scalar_lea.vmem %s549_s2, 16  ;;  %s4521_s30 = scalar_lea.vmem %s549_s2, 32 }
  0x7e   : > { %p4515_p6 = scmp.ne.s32.totalorder %s549_s2, %s4514_s25  ;;  %p4522_p11 = scmp.lt.s32.totalorder %s549_s2, %s549_s2 }
  0x7f   : > { %p4523_p0 = scmp.lt.s32.totalorder %s4521_s30, %s4514_s25 }
  0x80   : > { %p4517_p10 = pnand %p4515_p6, %p4786_p13 }
  0x81   : > { %p4524_p1 = por %p4523_p0, %p4522_p11 }
  0x82   : > { %p4518_p8 = pneg %p4517_p10 }
  0x84   : > { %p4525_p2 = pnand %p4524_p1, %p4518_p8 }
  0x86   : > { %4528 = shalt.err (!%p4525_p2)
}
  0x87   : > { %4035 = dma.hbm_to_vmem [thread:$0]  (!%p4778_p12), %s5818_s14, 16, %s549_s2, [#allocation16]  }
  0x88   : > { %p5847_p9 = scmp.ne.s32.totalorder %s5841_s22, 0 }
  0x89   : > { %p5848_p3 = scmp.eq.s32.totalorder (!%p5847_p9), %s4742_s16, 0 }
  0x8a   : > { %577 = sbr.rel (%p5847_p9) target bundleno = 2069 (0x815), region = 88 }
  0x8f   : > { %4572 = dma.done.wait (%p5848_p3), [#allocation4], 64   ;;  %p5849_p13 = pmov %p5848_p3 }
  0x90   : > { %p5850_p4 = pmov %p5848_p3 }
  0x91   : > { %4574 = vsyncadd (%p5849_p13), [#allocation4], 4294967232 }
  0x92   : > { %4576 = dma.done.wait (%p5850_p4), [#allocation7], 32   ;;  %p5851_p7 = pmov %p5848_p3 }
  0x93   : > { %p5852_p5 = pmov %p5848_p3 }
  0x94   : > { %4578 = vsyncadd (%p5851_p7), [#allocation7], 4294967264 }
  0x95   : > { %4580 = dma.done.wait (%p5852_p5), [#allocation10], 48   ;;  %p5853_p12 = pmov %p5848_p3 }
  0x96   : > { %p5854_p6 = pmov %p5848_p3 }
  0x97   : > { %4582 = vsyncadd (%p5853_p12), [#allocation10], 4294967248 }
  0x98   : > { %4584 = dma.done.wait (%p5854_p6), [#allocation13], 2080   ;;  %p5855_p10 = pmov %p5848_p3 }
  0x99   : > { %p5856_p8 = pmov %p5848_p3 }
  0x9a   : > { %4586 = vsyncadd (%p5855_p10), [#allocation13], 4294965216 }
  0x9b   : > { %4588 = dma.done.wait (%p5856_p8), [#allocation16], 32   ;;  %p5857_p11 = pmov %p5848_p3 }
  0x9c   : > { %s3641_s4 = sshll.u32 %s4742_s16, 2  ;;  %v4622_v1 = vmov 1   ;;  %s5858_s0 = sld [smem:[#allocation30_spill]]  ;;  %v4623_v5 = vmov 2   ;;  %v4624_v8 = vmov 0   ;;  %v4155_v11 = vld [vmem:[%s5807_s3 + $0x18] sm:$0xff]   ;;  %v862_v37 = vlaneseq }
  0x9d   : > { %4590 = vsyncadd (%p5857_p11), [#allocation16], 4294967264  ;;  %4109 = vset.pattern.permute.xlu0 %v4622_v1  ;;  %4107 = vset.pattern.permute.xlu1 %v4622_v1  ;;  %p662_p0 = scmp.lt.s32.totalorder %s3641_s4, 7  ;;  %v4156_v12 = vld [vmem:[%s5807_s3 + $0x10] sm:$0xff]   ;;  %v4157_v14 = vld [vmem:[%s5807_s3 + $0x8] sm:$0xff]   ;;  %vm1416_vm0 = vcmask 523264  }
  0x9e   : > { %3865 = vmatprep.subr.bf16.mxu0 %v4155_v11  ;;  %v4158_v15 = vld [vmem:[%s5807_s3] sm:$0xff]   ;;  %v863_v41 = vshrl.u32 %v862_v37, 7  ;;  %vm2583_vm1 = vcmask 1041409   ;;  %vm2585_vm2 = vcmask 1042434   ;;  %vm2587_vm3 = vcmask 1043459   ;;  %p5859_p2 = scmp.ne.s32.totalorder %s5838_s20, 0 }
  0x9f   : > { %s5869_s4 = smov (!%p662_p0, %s3641_s4), 7  ;;  %3866 = vmatpush3.bf16.msra.mxu0 %v4155_v11  ;;  %v701_v46 = vld [vmem:[#allocation3] sm:$0x7]  ;;  %vm4626_vm4 = vmmov 0   ;;  %vm3384_vm5 = vcmask 130048   ;;  %vm3461_vm6 = vcmask 24576  }
  0xa0   : > { %s3791_s28 = sshll.u32 %s5869_s4, 6  ;;  %3867 = vmatprep.subr.bf16.mxu0 %v4156_v12  ;;  %v4993_v45 = vsub.s32 1, %v863_v41  ;;  %v1224_v48 = vsub.s32 2, %v863_v41  ;;  %v5000_v49 = vsub.s32 0, %v863_v41 }
  0xa2   : > { %s4886_s21 = scalar_lea.vmem %s5858_s0, %s3791_s28  ;;  %v5006_v51 = vrot.slane %v701_v46, %v4993_v45  ;;  %v5009_v53 = vrot.slane %v701_v46, %v1224_v48  ;;  %v5012_v54 = vrot.slane %v701_v46, %v5000_v49  ;;  %s659_s0 = sand.u32 1, %s4601_s27  }
  0xa3   : > { %v671_v2 = vld [vmem:[%s4886_s21 + $0x10] sm:$0xff]  ;;  %v669_v3 = vld [vmem:[%s4886_s21] sm:$0xff]  ;;  %v670_v4 = vld [vmem:[%s4886_s21 + $0x8] sm:$0xff]  ;;  %3868 = vmatpush3.bf16.msra.mxu0 %v4156_v12  ;;  %s660_s24 = scalar_lea.vmem [#allocation18], %s659_s0  ;;  %s3464_s25 = scalar_lea.sflag [#allocation5], %s659_s0 }
  0xa4   : > { %907 = vperm.xlu0 %4109, %v671_v2   ;;  %899 = vperm.xlu1 %4107, %v669_v3   ;;  %v673_v6 = vld [vmem:[%s4886_s21 + $0x20] sm:$0xff]  ;;  %v672_v7 = vld [vmem:[%s4886_s21 + $0x18] sm:$0xff]  ;;  %v678_v10 = vld [vmem:[%s4886_s21 + $0x48] sm:$0xff]  ;;  %s3476_s23 = sshll.u32 %s660_s24, 4  ;;  %s3477_s23 = int_to_ptr.vmem [resolvable:$true] %s3476_s23 }
  0xa5   : > { %v676_v9 = vld [vmem:[%s4886_s21 + $0x38] sm:$0xff]  ;;  %v674_v13 = vld [vmem:[%s4886_s21 + $0x28] sm:$0xff]  ;;  %3869 = vmatprep.subr.bf16.mxu0 %v4157_v14  ;;  %v679_v16 = vld [vmem:[%s4886_s21 + $0x50] sm:$0xff]  ;;  %s4529_s30 = scalar_lea.vmem %s3477_s23, 16 }
  0xa6   : > { %v675_v17 = vld [vmem:[%s4886_s21 + $0x30] sm:$0xff]  ;;  %v681_v18 = vld [vmem:[%s4886_s21 + $0x60] sm:$0xff]  ;;  %v4920_v19 = vld [vmem:[%s4886_s21 + $0x88] sm:$0xff]  ;;  %p4530_p1 = scmp.ne.s32.totalorder %s3477_s23, %s4529_s30 }
  0xa7   : > { %3870 = vmatpush3.bf16.msra.mxu0 %v4157_v14  ;;  %v4923_v20 = vld [vmem:[%s4886_s21 + $0x90] sm:$0xff]  ;;  %v677_v21 = vld [vmem:[%s4886_s21 + $0x40] sm:$0xff]  ;;  %v682_v22 = vld [vmem:[%s4886_s21 + $0x68] sm:$0xff] }
  0xa8   : > { %4112 = vset.pattern.permute.xlu0 %v4623_v5  ;;  %903 = vperm.xlu1 %4107, %v670_v4   ;;  %v683_v23 = vld [vmem:[%s4886_s21 + $0x70] sm:$0xff]  ;;  %v680_v24 = vld [vmem:[%s4886_s21 + $0x58] sm:$0xff]  ;;  %v4939_v25 = vld [vmem:[%s4886_s21 + $0xa8] sm:$0xff]  ;;  %p4531_p9 = pnand %p4530_p1, %p5859_p2 }
  0xa9   : > { %1099 = vperm.xlu0 %4112, %v670_v4   ;;  %3871 = vmatprep.subr.bf16.mxu0 %v4158_v15  ;;  %v4944_v26 = vld [vmem:[%s4886_s21 + $0xb0] sm:$0xff]  ;;  %v684_v27 = vld [vmem:[%s4886_s21 + $0x78] sm:$0xff]  ;;  %v4953_v28 = vld [vmem:[%s4886_s21 + $0xa0] sm:$0xff] }
  0xaa   : > { %v4957_v29 = vld [vmem:[%s4886_s21 + $0xb8] sm:$0xff]  ;;  %v4962_v30 = vld [vmem:[%s4886_s21 + $0xc8] sm:$0xff]  ;;  %v4971_v31 = vld [vmem:[%s4886_s21 + $0xd0] sm:$0xff]  ;;  %p4532_p3 = pneg %p4531_p9 }
  0xab   : > { %3872 = vmatpush3.bf16.msra.mxu0 %v4158_v15  ;;  %v4976_v34 = vld [vmem:[%s4886_s21 + $0xe0] sm:$0xff]  ;;  %v4989_v42 = vld [vmem:[%s4886_s21 + $0xe8] sm:$0xff]  ;;  %v4998_v47 = vld [vmem:[%s4886_s21 + $0xf0] sm:$0xff] }
  0xac   : > { %4108 = vset.pattern.permute.xlu1 %v4624_v8  ;;  %v4982_v40 = vld [vmem:[%s4886_s21 + $0x80] sm:$0xff]  ;;  %v688_v59 = vld [vmem:[%s4886_s21 + $0x98] sm:$0xff] }
  0xad   : > { %1111 = vperm.xlu0 %4112, %v673_v6   ;;  %719 = vperm.xlu1 %4108, %v672_v7  }
  0xb1   : > { %1123 = vperm.xlu0 %4112, %v676_v9   ;;  %4110 = vset.pattern.permute.xlu1 %v4622_v1 }
  0xb2   : > { %911 = vperm.xlu1 %4110, %v672_v7  }
  0xb5   : > { %1131 = vperm.xlu0 %4112, %v678_v10  }
  0xb6   : > { %4111 = vset.pattern.permute.xlu1 %v4623_v5 }
  0xb7   : > { %1095 = vperm.xlu1 %4111, %v669_v3  }
  0xb9   : > { %4123 = vset.pattern.permute.xlu0 %v4624_v8 }
  0xba   : > { %704 = vperm.xlu0 %4123, %v669_v3  }
  0xbb   : > { %1103 = vperm.xlu1 %4111, %v671_v2  }
  0xbe   : > { %709 = vperm.xlu0 %4123, %v670_v4  }
  0xbf   : > { %1107 = vperm.xlu1 %4111, %v672_v7  }
  0xc2   : > { %714 = vperm.xlu0 %4123, %v671_v2  }
  0xc3   : > { %4113 = vset.pattern.permute.xlu1 %v4624_v8 }
  0xc4   : > { %729 = vperm.xlu1 %4113, %v674_v13  }
  0xc6   : > { %724 = vperm.xlu0 %4123, %v673_v6  }
  0xc8   : > { %4114 = vset.pattern.permute.xlu1 %v4622_v1 }
  0xc9   : > { %915 = vperm.xlu1 %4114, %v673_v6  }
  0xca   : > { %749 = vperm.xlu0 %4123, %v678_v10  }
  0xcd   : > { %4115 = vset.pattern.permute.xlu1 %v4624_v8 }
  0xce   : > { %754 = vperm.xlu0 %4123, %v679_v16   ;;  %734 = vperm.xlu1 %4115, %v675_v17  }
  0xd2   : > { %764 = vperm.xlu0 %4123, %v681_v18   ;;  %739 = vperm.xlu1 %4115, %v676_v9  }
  0xd6   : > { %789 = vperm.xlu0 %4123, %v4920_v19   ;;  %4116 = vset.pattern.permute.xlu1 %v4622_v1 }
  0xd7   : > { %927 = vperm.xlu1 %4116, %v676_v9   ;;  %v5028_v9 = vld [vmem:[%s4886_s21 + $0xf8] sm:$0xff] }
  0xda   : > { %794 = vperm.xlu0 %4123, %v4923_v20  }
  0xdb   : > { %4117 = vset.pattern.permute.xlu1 %v4623_v5 }
  0xdc   : > { %1115 = vperm.xlu1 %4117, %v674_v13  }
  0xde   : > { %4131 = vset.pattern.permute.xlu0 %v4622_v1 }
  0xdf   : > { %919 = vperm.xlu0 %4131, %v674_v13  }
  0xe0   : > { %1119 = vperm.xlu1 %4117, %v675_v17  }
  0xe3   : > { %923 = vperm.xlu0 %4131, %v675_v17  }
  0xe4   : > { %4118 = vset.pattern.permute.xlu1 %v4624_v8 }
  0xe5   : > { %744 = vperm.xlu1 %4118, %v677_v21  }
  0xe7   : > { %939 = vperm.xlu0 %4131, %v679_v16  }
  0xe9   : > { %4119 = vset.pattern.permute.xlu1 %v4622_v1 }
  0xea   : > { %931 = vperm.xlu1 %4119, %v677_v21  }
  0xeb   : > { %951 = vperm.xlu0 %4131, %v682_v22  }
  0xee   : > { %935 = vperm.xlu1 %4119, %v678_v10   ;;  %v5030_v10 = vld [vmem:[#allocation6] ss:$0 sm:$0xff] }
  0xef   : > { %955 = vperm.xlu0 %4131, %v683_v23  }
  0xf2   : > { %4120 = vset.pattern.permute.xlu1 %v4624_v8 }
  0xf3   : > { %759 = vperm.xlu1 %4120, %v680_v24   ;;  %971 = vperm.xlu0 %4131, %v4923_v20  }
  0xf7   : > { %4121 = vset.pattern.permute.xlu1 %v4622_v1  ;;  %983 = vperm.xlu0 %4131, %v4939_v25  }
  0xf8   : > { %943 = vperm.xlu1 %4121, %v680_v24  }
  0xfb   : > { %987 = vperm.xlu0 %4131, %v4944_v26  }
  0xfc   : > { %4122 = vset.pattern.permute.xlu1 %v4623_v5 }
  0xfd   : > { %1127 = vperm.xlu1 %4122, %v677_v21  }
  0xff   : > { %4138 = vset.pattern.permute.xlu0 %v4623_v5 }
 0x100   : > { %1143 = vperm.xlu0 %4138, %v681_v18  }
 0x101   : > { %1135 = vperm.xlu1 %4122, %v679_v16  }
 0x104   : > { %1155 = vperm.xlu0 %4138, %v684_v27  }
 0x105   : > { %1139 = vperm.xlu1 %4122, %v680_v24  }
 0x108   : > { %1163 = vperm.xlu0 %4138, %v4920_v19  }
 0x109   : > { %4124 = vset.pattern.permute.xlu1 %v4624_v8 }
 0x10a   : > { %769 = vperm.xlu1 %4124, %v682_v22  }
 0x10c   : > { %1175 = vperm.xlu0 %4138, %v4953_v28  }
 0x10e   : > { %4125 = vset.pattern.permute.xlu1 %v4622_v1 }
 0x10f   : > { %947 = vperm.xlu1 %4125, %v681_v18  }
 0x110   : > { %1187 = vperm.xlu0 %4138, %v4957_v29  }
 0x113   : > { %4126 = vset.pattern.permute.xlu1 %v4624_v8 }
 0x114   : > { %774 = vperm.xlu1 %4126, %v683_v23   ;;  %1195 = vperm.xlu0 %4138, %v4962_v30  }
 0x118   : > { %779 = vperm.xlu1 %4126, %v684_v27   ;;  %4146 = vset.pattern.permute.xlu0 %v4624_v8 }
 0x119   : > { %804 = vperm.xlu0 %4146, %v4953_v28  }
 0x11c   : > { %4127 = vset.pattern.permute.xlu1 %v4622_v1 }
 0x11d   : > { %959 = vperm.xlu1 %4127, %v684_v27   ;;  %829 = vperm.xlu0 %4146, %v4962_v30  }
 0x11f   : > { %v900_v32 = vpop.permute.xlu1 %899  ;;  %v908_v33 = vpop.permute.xlu0 %907 }
 0x120   : > { %v1030_v56 = vmul.f32 %v5006_v51, %v900_v32  ;;  %v1032_v12 = vmul.f32 %v5006_v51, %v908_v33 }
 0x121   : > { %4128 = vset.pattern.permute.xlu1 %v4623_v5  ;;  %834 = vperm.xlu0 %4146, %v4971_v31  }
 0x122   : > { %1147 = vperm.xlu1 %4128, %v682_v22  }
 0x123   : > { %v904_v35 = vpop.permute.xlu1 %903 }
 0x124   : > { %v1100_v36 = vpop.permute.xlu0 %1099  ;;  %v1031_v63 = vmul.f32 %v5006_v51, %v904_v35 }
 0x125   : > { %844 = vperm.xlu0 %4146, %v4976_v34   ;;  %v1227_v2 = vmul.f32 %v5009_v53, %v1100_v36 }
 0x126   : > { %1151 = vperm.xlu1 %4128, %v683_v23  }
 0x128   : > { %v720_v38 = vpop.permute.xlu1 %719  ;;  %v4979_v39 = vpop.permute.xlu0 %1111 }
 0x129   : > { %4147 = vset.pattern.permute.xlu0 %v4622_v1  ;;  %v869_v3 = vmul.f32 %v5012_v54, %v720_v38 }
 0x12a   : > { %4129 = vset.pattern.permute.xlu1 %v4624_v8  ;;  %1003 = vperm.xlu0 %4147, %v4971_v31  }
 0x12b   : > { %784 = vperm.xlu1 %4129, %v4982_v40  }
 0x12c   : > { %v4991_v43 = vpop.permute.xlu0 %1123 }
 0x12d   : > { %v912_v44 = vpop.permute.xlu1 %911 }
 0x12e   : > { %1015 = vperm.xlu0 %4147, %v4989_v42   ;;  %v1033_v60 = vmul.f32 %v5006_v51, %v912_v44 }
 0x12f   : > { %4130 = vset.pattern.permute.xlu1 %v4622_v1 }
 0x130   : > { %963 = vperm.xlu1 %4130, %v4982_v40   ;;  %v5003_v50 = vpop.permute.xlu0 %1131  ;;  %v1065_v13 = vadd.f32 %v1033_v60, %v869_v3 }
 0x132   : > { %v1096_v52 = vpop.permute.xlu1 %1095  ;;  %1019 = vperm.xlu0 %4147, %v4998_v47  }
 0x133   : > { %v1226_v61 = vmul.f32 %v5009_v53, %v1096_v52 }
 0x134   : > { %967 = vperm.xlu1 %4130, %v4920_v19  }
 0x135   : > { %v705_v55 = vpop.permute.xlu0 %704 }
 0x136   : > { %v866_v57 = vmul.f32 %v5012_v54, %v705_v55  ;;  %v1104_v58 = vpop.permute.xlu1 %1103  ;;  %4152 = vset.pattern.permute.xlu0 %v4623_v5 }
 0x137   : > { %1207 = vperm.xlu0 %4152, %v4976_v34   ;;  %v1228_v22 = vmul.f32 %v5009_v53, %v1104_v58 }
 0x138   : > { %v1062_v62 = vadd.f32 %v1030_v56, %v866_v57  ;;  %4132 = vset.pattern.permute.xlu1 %v4624_v8 }
 0x139   : > { %v710_v0 = vpop.permute.xlu0 %709  ;;  %799 = vperm.xlu1 %4132, %v688_v59  }
 0x13a   : > { %v1258_v4 = vadd.f32 %v1226_v61, %v1062_v62  ;;  %v867_v6 = vmul.f32 %v5012_v54, %v710_v0  ;;  %v1108_v7 = vpop.permute.xlu1 %1107 }
 0x13b   : > { %v1229_v11 = vmul.f32 %v5009_v53, %v1108_v7  ;;  %1219 = vperm.xlu0 %4152, %v5028_v9  }
 0x13c   : > { %v1063_v14 = vadd.f32 %v1031_v63, %v867_v6  ;;  %v1297_v19 = vadd.f32 %v5030_v10, %v1258_v4  ;;  %v1233_v4 = vmul.f32 %v5009_v53, %v4991_v43 }
 0x13d   : > { %v715_v15 = vpop.permute.xlu0 %714  ;;  %4133 = vset.pattern.permute.xlu1 %v4622_v1  ;;  %v1261_v17 = vadd.f32 %v1229_v11, %v1065_v13 }
 0x13e   : > { %v1259_v16 = vadd.f32 %v1227_v2, %v1063_v14  ;;  %v868_v18 = vmul.f32 %v5012_v54, %v715_v15  ;;  %975 = vperm.xlu1 %4133, %v688_v59   ;;  %v1329_v35 = vmax.f32 %v1297_v19, 0.0 }
 0x13f   : > { %v730_v21 = vpop.permute.xlu1 %729  ;;  %4154 = vset.pattern.permute.xlu0 %v4624_v8  ;;  %v1300_v32 = vadd.f32 %v5030_v10, %v1261_v17 }
 0x140   : > { %v1064_v23 = vadd.f32 %v1032_v12, %v868_v18  ;;  %v1298_v24 = vadd.f32 %v5030_v10, %v1259_v16 }
 0x141   : > { %v725_v27 = vpop.permute.xlu0 %724  ;;  %v1332_v46 = vmax.f32 %v1300_v32, 0.0 }
 0x142   : > { %v1260_v33 = vadd.f32 %v1228_v22, %v1064_v23  ;;  %4134 = vset.pattern.permute.xlu1 %v4623_v5  ;;  %v1330_v36 = vmax.f32 %v1298_v24, 0.0  ;;  %v870_v61 = vmul.f32 %v5012_v54, %v725_v27 }
 0x143   : > { %1159 = vperm.xlu1 %4134, %v4982_v40  }
 0x144   : > { %v1299_v37 = vadd.f32 %v5030_v10, %v1260_v33  ;;  %v916_v38 = vpop.permute.xlu1 %915  ;;  %v1361_v41 = vpack.c.bf16 %v1330_v36, %v1329_v35 }
 0x145   : > { %v5045_v44 = vpop.permute.xlu0 %749 }
 0x146   : > { %v1331_v48 = vmax.f32 %v1299_v37, 0.0  ;;  %3873 = vmatprep.mubr.msk.bf16.mxu0 %vm1416_vm0, %v1361_v41 }
 0x147   : > { %1167 = vperm.xlu1 %4134, %v4923_v20   ;;  %v1034_v20 = vmul.f32 %v5006_v51, %v916_v38 }
 0x148   : > { %v1362_v52 = vpack.c.bf16 %v1332_v46, %v1331_v48 }
 0x149   : > { %v735_v55 = vpop.permute.xlu1 %734  ;;  %v5049_v56 = vpop.permute.xlu0 %754  ;;  %v1066_v63 = vadd.f32 %v1034_v20, %v870_v61 }
 0x14a   : > { %3874 = vmatmul.mubr.msk.bf16.vlgmr.msra.gmra.mxu0 %vm1416_vm0, %v1362_v52  ;;  %v872_v15 = vmul.f32 %v5012_v54, %v735_v55 }
 0x14b   : > { %1171 = vperm.xlu1 %4134, %v688_v59   ;;  %v1230_v59 = vmul.f32 %v5009_v53, %v4979_v39 }
 0x14d   : > { %v740_v40 = vpop.permute.xlu1 %739  ;;  %v5052_v57 = vpop.permute.xlu0 %764  ;;  %v1262_v7 = vadd.f32 %v1230_v59, %v1066_v63 }
 0x14e   : > { %v873_v3 = vmul.f32 %v5012_v54, %v740_v40  ;;  %v875_v40 = vmul.f32 %v5012_v54, %v5045_v44 }
 0x14f   : > { %4135 = vset.pattern.permute.xlu1 %v4624_v8  ;;  %v1301_v43 = vadd.f32 %v5030_v10, %v1262_v7 }
 0x150   : > { %809 = vperm.xlu1 %4135, %v4939_v25  }
 0x151   : > { %v5056_v58 = vpop.permute.xlu0 %789  ;;  %v1333_v27 = vmax.f32 %v1301_v43, 0.0 }
 0x152   : > { %v928_v60 = vpop.permute.xlu1 %927 }
 0x153   : > { %v1037_v0 = vmul.f32 %v5006_v51, %v928_v60 }
 0x154   : > { %4136 = vset.pattern.permute.xlu1 %v4622_v1 }
 0x155   : > { %979 = vperm.xlu1 %4136, %v4953_v28   ;;  %v5062_v62 = vpop.permute.xlu0 %794  ;;  %v871_v28 = vmul.f32 %v5012_v54, %v730_v21  ;;  %v1069_v11 = vadd.f32 %v1037_v0, %v873_v3 }
 0x157   : > { %v1116_v2 = vpop.permute.xlu1 %1115  ;;  %v1265_v17 = vadd.f32 %v1233_v4, %v1069_v11 }
 0x158   : > { %v1231_v13 = vmul.f32 %v5009_v53, %v1116_v2 }
 0x159   : > { %4137 = vset.pattern.permute.xlu1 %v4624_v8  ;;  %v1304_v32 = vadd.f32 %v5030_v10, %v1265_v17 }
 0x15a   : > { %v920_v6 = vpop.permute.xlu0 %919  ;;  %814 = vperm.xlu1 %4137, %v4944_v26  }
 0x15b   : > { %v1035_v39 = vmul.f32 %v5006_v51, %v920_v6  ;;  %v1120_v12 = vpop.permute.xlu1 %1119  ;;  %v1336_v41 = vmax.f32 %v1304_v32, 0.0 }
 0x15c   : > { %v1232_v23 = vmul.f32 %v5009_v53, %v1120_v12  ;;  %v696_v12 = vld [vmem:[%s4886_s21 + $0xd8] sm:$0xff] }
 0x15d   : > { %v1067_v14 = vadd.f32 %v1035_v39, %v871_v28 }
 0x15e   : > { %v924_v16 = vpop.permute.xlu0 %923  ;;  %819 = vperm.xlu1 %4137, %v4957_v29  }
 0x15f   : > { %v1263_v18 = vadd.f32 %v1231_v13, %v1067_v14  ;;  %v1036_v19 = vmul.f32 %v5006_v51, %v924_v16 }
 0x160   : > { %v745_v21 = vpop.permute.xlu1 %744 }
 0x161   : > { %v1302_v22 = vadd.f32 %v5030_v10, %v1263_v18  ;;  %v1068_v24 = vadd.f32 %v1036_v19, %v872_v15  ;;  %v874_v44 = vmul.f32 %v5012_v54, %v745_v21 }
 0x162   : > { %4139 = vset.pattern.permute.xlu1 %v4622_v1  ;;  %v940_v61 = vpop.permute.xlu0 %939 }
 0x163   : > { %v1334_v33 = vmax.f32 %v1302_v22, 0.0  ;;  %v1264_v35 = vadd.f32 %v1232_v23, %v1068_v24  ;;  %991 = vperm.xlu1 %4139, %v4957_v29   ;;  %v693_v29 = vld [vmem:[%s4886_s21 + $0xc0] sm:$0xff]  ;;  %v1040_v2 = vmul.f32 %v5006_v51, %v940_v61  ;;  %v878_v61 = vmul.f32 %v5012_v54, %v5052_v57  ;;  %s3788_s21 = sshll.u32 %s4742_s16, 4  ;;  %s4627_s16 = smov [#allocation18]  }
 0x164   : > { %s5769_s2 = scalar_lea.hbm %s5821_s17, %s3788_s21  ;;  %s4533_s26 = sshll.u32 %s4627_s16, 4  ;;  %s4534_s26 = int_to_ptr.vmem [resolvable:$false] %s4533_s26 }
 0x165   : > { %v1303_v36 = vadd.f32 %v5030_v10, %v1264_v35  ;;  %v932_v37 = vpop.permute.xlu1 %931  ;;  %v1363_v38 = vpack.c.bf16 %v1334_v33, %v1333_v27  ;;  %v4159_v35 = vld [vmem:[%s5809_s5 + $0x18] sm:$0xff]   ;;  %s4535_s4 = scalar_lea.vmem %s4534_s26, 32  ;;  %p4536_p13 = scmp.lt.s32.totalorder %s3477_s23, %s4534_s26 }
 0x166   : > { %v1038_v63 = vmul.f32 %v5006_v51, %v932_v37  ;;  %v5103_v3 = vpop.permute.xlu0 %951  ;;  %3905 = vmatprep.subr.bf16.mxu1 %v4159_v35  ;;  %p4537_p4 = scmp.lt.s32.totalorder %s4535_s4, %s4529_s30 }
 0x167   : > { %v1335_v46 = vmax.f32 %v1303_v36, 0.0  ;;  %4140 = vset.pattern.permute.xlu1 %v4623_v5  ;;  %3877 = vmatprep.mubr.msk.bf16.mxu0 %vm1416_vm0, %v1363_v38 }
 0x168   : > { %1179 = vperm.xlu1 %4140, %v4939_v25   ;;  %v1235_v25 = vmul.f32 %v5009_v53, %v5003_v50  ;;  %v1070_v50 = vadd.f32 %v1038_v63, %v874_v44  ;;  %3906 = vmatpush3.bf16.msra.mxu1 %v4159_v35  ;;  %p4538_p7 = por %p4537_p4, %p4536_p13 }
 0x169   : > { %v936_v48 = vpop.permute.xlu1 %935  ;;  %v1364_v52 = vpack.c.bf16 %v1336_v41, %v1335_v46 }
 0x16a   : > { %v1039_v60 = vmul.f32 %v5006_v51, %v936_v48  ;;  %v5111_v14 = vpop.permute.xlu0 %955  ;;  %v4160_v48 = vld [vmem:[%s5809_s5 + $0x10] sm:$0xff]   ;;  %p4539_p5 = pnand %p4538_p7, %p4532_p3 }
 0x16b   : > { %3878 = vmatmul.mubr.msk.bf16.gmra.mxu0 %vm1416_vm0, %v1364_v52  ;;  %3907 = vmatprep.subr.bf16.mxu1 %v4160_v48 }
 0x16c   : > { %1183 = vperm.xlu1 %4140, %v4944_v26   ;;  %v1071_v20 = vadd.f32 %v1039_v60, %v875_v40  ;;  %v876_v26 = vmul.f32 %v5012_v54, %v5049_v56  ;;  %3908 = vmatpush3.bf16.msra.mxu1 %v4160_v48  ;;  %v4161_v40 = vld [vmem:[%s5809_s5 + $0x8] sm:$0xff]   ;;  %v4162_v60 = vld [vmem:[%s5809_s5] sm:$0xff]  }
 0x16d   : > { %3909 = vmatprep.subr.bf16.mxu1 %v4161_v40 }
 0x16e   : > { %v760_v55 = vpop.permute.xlu1 %759  ;;  %v1267_v0 = vadd.f32 %v1235_v25, %v1071_v20  ;;  %v1072_v7 = vadd.f32 %v1040_v2, %v876_v26  ;;  %v5118_v24 = vpop.permute.xlu0 %971 }
 0x16f   : > { %v877_v43 = vmul.f32 %v5012_v54, %v760_v55 }
 0x170   : > { %4141 = vset.pattern.permute.xlu1 %v4624_v8  ;;  %v1306_v28 = vadd.f32 %v5030_v10, %v1267_v0  ;;  %3910 = vmatpush3.bf16.msra.mxu1 %v4161_v40  ;;  %v1043_v0 = vmul.f32 %v5006_v51, %v5103_v3 }
 0x171   : > { %824 = vperm.xlu1 %4141, %v693_v29   ;;  %3911 = vmatprep.subr.bf16.mxu1 %v4162_v60 }
 0x172   : > { %v1338_v16 = vmax.f32 %v1306_v28, 0.0  ;;  %v5127_v41 = vpop.permute.xlu0 %983 }
 0x173   : > { %v944_v59 = vpop.permute.xlu1 %943 }
 0x174   : > { %v1041_v56 = vmul.f32 %v5006_v51, %v944_v59  ;;  %3912 = vmatpush3.bf16.msra.mxu1 %v4162_v60 }
 0x175   : > { %4142 = vset.pattern.permute.xlu1 %v4622_v1 }
 0x176   : > { %995 = vperm.xlu1 %4142, %v693_v29   ;;  %v1073_v19 = vadd.f32 %v1041_v56, %v877_v43  ;;  %v5134_v52 = vpop.permute.xlu0 %987 }
 0x178   : > { %v1128_v4 = vpop.permute.xlu1 %1127 }
 0x179   : > { %v1234_v6 = vmul.f32 %v5009_v53, %v1128_v4 }
 0x17a   : > { %999 = vperm.xlu1 %4142, %v4962_v30  }
 0x17b   : > { %v1266_v11 = vadd.f32 %v1234_v6, %v1070_v50  ;;  %v1144_v25 = vpop.permute.xlu0 %1143 }
 0x17c   : > { %v1136_v39 = vpop.permute.xlu1 %1135  ;;  %v1238_v59 = vmul.f32 %v5009_v53, %v1144_v25 }
 0x17d   : > { %v1305_v13 = vadd.f32 %v5030_v10, %v1266_v11  ;;  %v1236_v15 = vmul.f32 %v5009_v53, %v1136_v39 }
 0x17e   : > { %4143 = vset.pattern.permute.xlu1 %v4624_v8 }
 0x17f   : > { %v1337_v30 = vmax.f32 %v1305_v13, 0.0  ;;  %v1268_v17 = vadd.f32 %v1236_v15, %v1072_v7  ;;  %839 = vperm.xlu1 %4143, %v696_v12   ;;  %v1156_v44 = vpop.permute.xlu0 %1155  ;;  %v1044_v7 = vmul.f32 %v5006_v51, %v5111_v14 }
 0x180   : > { %v1140_v18 = vpop.permute.xlu1 %1139  ;;  %v1241_v6 = vmul.f32 %v5009_v53, %v1156_v44 }
 0x181   : > { %v1365_v21 = vpack.c.bf16 %v1338_v16, %v1337_v30  ;;  %v1237_v22 = vmul.f32 %v5009_v53, %v1140_v18  ;;  %v1307_v23 = vadd.f32 %v5030_v10, %v1268_v17 }
 0x183   : > { %v1269_v27 = vadd.f32 %v1237_v22, %v1073_v19  ;;  %4144 = vset.pattern.permute.xlu1 %v4622_v1  ;;  %3881 = vmatprep.mubr.msk.bf16.mxu0 %vm1416_vm0, %v1365_v21  ;;  %v1339_v36 = vmax.f32 %v1307_v23, 0.0 }
 0x184   : > { %1007 = vperm.xlu1 %4144, %v696_v12  }
 0x185   : > { %v1308_v32 = vadd.f32 %v5030_v10, %v1269_v27  ;;  %v770_v33 = vpop.permute.xlu1 %769 }
 0x186   : > { %v879_v57 = vmul.f32 %v5012_v54, %v770_v33 }
 0x187   : > { %v1340_v37 = vmax.f32 %v1308_v32, 0.0 }
 0x188   : > { %4145 = vset.pattern.permute.xlu1 %v4623_v5  ;;  %v1075_v11 = vadd.f32 %v1043_v0, %v879_v57 }
 0x189   : > { %v1366_v38 = vpack.c.bf16 %v1340_v37, %v1339_v36  ;;  %1191 = vperm.xlu1 %4145, %v693_v29  }
 0x18a   : > { %v948_v46 = vpop.permute.xlu1 %947 }
 0x18b   : > { %3882 = vmatmul.mubr.msk.bf16.gmra.mxu0 %vm1416_vm0, %v1366_v38  ;;  %v1164_v38 = vpop.permute.xlu0 %1163 }
 0x18d   : > { %1199 = vperm.xlu1 %4145, %v4971_v31   ;;  %v1042_v31 = vmul.f32 %v5006_v51, %v948_v46 }
 0x18f   : > { %v775_v55 = vpop.permute.xlu1 %774  ;;  %v1074_v20 = vadd.f32 %v1042_v31, %v878_v61 }
 0x190   : > { %v880_v39 = vmul.f32 %v5012_v54, %v775_v55 }
 0x191   : > { %1203 = vperm.xlu1 %4145, %v696_v12   ;;  %v1270_v4 = vadd.f32 %v1238_v59, %v1074_v20 }
 0x192   : > { %v1076_v15 = vadd.f32 %v1044_v7, %v880_v39 }
 0x193   : > { %v780_v29 = vpop.permute.xlu1 %779  ;;  %v1309_v12 = vadd.f32 %v5030_v10, %v1270_v4 }
 0x194   : > { %v881_v2 = vmul.f32 %v5012_v54, %v780_v29  ;;  %v1048_v29 = vmul.f32 %v5006_v51, %v5118_v24  ;;  %v1176_v24 = vpop.permute.xlu0 %1175 }
 0x195   : > { %4148 = vset.pattern.permute.xlu1 %v4624_v8  ;;  %v1341_v14 = vmax.f32 %v1309_v12, 0.0 }
 0x196   : > { %849 = vperm.xlu1 %4148, %v4989_v42  }
 0x198   : > { %v960_v63 = vpop.permute.xlu1 %959  ;;  %v1188_v39 = vpop.permute.xlu0 %1187 }
 0x199   : > { %v1045_v26 = vmul.f32 %v5006_v51, %v960_v63 }
 0x19a   : > { %4149 = vset.pattern.permute.xlu1 %v4622_v1 }
 0x19b   : > { %1011 = vperm.xlu1 %4149, %v4976_v34   ;;  %v1077_v50 = vadd.f32 %v1045_v26, %v881_v2 }
 0x19d   : > { %v1148_v28 = vpop.permute.xlu1 %1147  ;;  %v1273_v56 = vadd.f32 %v1241_v6, %v1077_v50 }
 0x19e   : > { %v1239_v3 = vmul.f32 %v5009_v53, %v1148_v28 }
 0x19f   : > { %4150 = vset.pattern.permute.xlu1 %v4624_v8  ;;  %v1312_v30 = vadd.f32 %v5030_v10, %v1273_v56 }
 0x1a0   : > { %v1271_v13 = vadd.f32 %v1239_v3, %v1075_v11  ;;  %854 = vperm.xlu1 %4150, %v4998_v47  }
 0x1a1   : > { %v1152_v34 = vpop.permute.xlu1 %1151  ;;  %v1344_v23 = vmax.f32 %v1312_v30, 0.0 }
 0x1a2   : > { %v1310_v16 = vadd.f32 %v5030_v10, %v1271_v13  ;;  %v1240_v43 = vmul.f32 %v5009_v53, %v1152_v34 }
 0x1a4   : > { %v1342_v17 = vmax.f32 %v1310_v16, 0.0  ;;  %v1272_v18 = vadd.f32 %v1240_v43, %v1076_v15  ;;  %859 = vperm.xlu1 %4150, %v5028_v9   ;;  %v1196_v15 = vpop.permute.xlu0 %1195 }
 0x1a6   : > { %v1367_v19 = vpack.c.bf16 %v1342_v17, %v1341_v14  ;;  %v1311_v21 = vadd.f32 %v5030_v10, %v1272_v18  ;;  %v785_v22 = vpop.permute.xlu1 %784  ;;  %v1246_v18 = vmul.f32 %v5009_v53, %v1176_v24 }
 0x1a8   : > { %v1343_v27 = vmax.f32 %v1311_v21, 0.0  ;;  %4151 = vset.pattern.permute.xlu1 %v4622_v1  ;;  %3885 = vmatprep.mubr.msk.bf16.mxu0 %vm1416_vm0, %v1367_v19  ;;  %v883_v1 = vmul.f32 %v5012_v54, %v5056_v58  ;;  %v805_v43 = vpop.permute.xlu0 %804 }
 0x1a9   : > { %1023 = vperm.xlu1 %4151, %v5028_v9   ;;  %v1243_v9 = vmul.f32 %v5009_v53, %v1164_v38  ;;  %v886_v30 = vmul.f32 %v5012_v54, %v805_v43 }
 0x1aa   : > { %v1368_v32 = vpack.c.bf16 %v1344_v23, %v1343_v27 }
 0x1ab   : > { %v964_v33 = vpop.permute.xlu1 %963 }
 0x1ac   : > { %3886 = vmatmul.mubr.msk.bf16.gmra.mxu0 %vm1416_vm0, %v1368_v32  ;;  %v1046_v55 = vmul.f32 %v5006_v51, %v964_v33  ;;  %v1051_v32 = vmul.f32 %v5006_v51, %v5127_v41  ;;  %v1249_v33 = vmul.f32 %v5009_v53, %v1188_v39 }
 0x1ad   : > { %4153 = vset.pattern.permute.xlu1 %v4623_v5  ;;  %v882_v5 = vmul.f32 %v5012_v54, %v785_v22 }
 0x1ae   : > { %1211 = vperm.xlu1 %4153, %v4989_v42  }
 0x1af   : > { %v968_v35 = vpop.permute.xlu1 %967  ;;  %v1078_v60 = vadd.f32 %v1046_v55, %v882_v5 }
 0x1b0   : > { %v1047_v37 = vmul.f32 %v5006_v51, %v968_v35 }
 0x1b2   : > { %1215 = vperm.xlu1 %4153, %v4998_v47   ;;  %v1079_v46 = vadd.f32 %v1047_v37, %v883_v1  ;;  %v884_v47 = vmul.f32 %v5012_v54, %v5062_v62 }
 0x1b4   : > { %v800_v36 = vpop.permute.xlu1 %799  ;;  %v1275_v40 = vadd.f32 %v1243_v9, %v1079_v46  ;;  %v1080_v20 = vadd.f32 %v1048_v29, %v884_v47  ;;  %v1052_v9 = vmul.f32 %v5006_v51, %v5134_v52 }
 0x1b5   : > { %v885_v62 = vmul.f32 %v5012_v54, %v800_v36 }
 0x1b6   : > { %v1314_v58 = vadd.f32 %v5030_v10, %v1275_v40 }
 0x1b8   : > { %v1346_v44 = vmax.f32 %v1314_v58, 0.0 }
 0x1b9   : > { %v976_v48 = vpop.permute.xlu1 %975 }
 0x1ba   : > { %v1049_v59 = vmul.f32 %v5006_v51, %v976_v48 }
 0x1bc   : > { %v1081_v4 = vadd.f32 %v1049_v59, %v885_v62 }
 0x1be   : > { %v1160_v42 = vpop.permute.xlu1 %1159 }
 0x1bf   : > { %v1242_v61 = vmul.f32 %v5009_v53, %v1160_v42 }
 0x1c1   : > { %v1274_v31 = vadd.f32 %v1242_v61, %v1078_v60 }
 0x1c2   : > { %v1168_v25 = vpop.permute.xlu1 %1167 }
 0x1c3   : > { %v1313_v63 = vadd.f32 %v5030_v10, %v1274_v31  ;;  %v1244_v26 = vmul.f32 %v5009_v53, %v1168_v25 }
 0x1c5   : > { %v1345_v0 = vmax.f32 %v1313_v63, 0.0  ;;  %v1276_v57 = vadd.f32 %v1244_v26, %v1080_v20 }
 0x1c6   : > { %v1172_v2 = vpop.permute.xlu1 %1171 }
 0x1c7   : > { %v1369_v50 = vpack.c.bf16 %v1346_v44, %v1345_v0  ;;  %v1245_v6 = vmul.f32 %v5009_v53, %v1172_v2  ;;  %v1315_v28 = vadd.f32 %v5030_v10, %v1276_v57  ;;  %v830_v44 = vpop.permute.xlu0 %829 }
 0x1c8   : > { %v891_v24 = vmul.f32 %v5012_v54, %v830_v44 }
 0x1c9   : > { %v1277_v7 = vadd.f32 %v1245_v6, %v1081_v4  ;;  %3889 = vmatprep.mubr.msk.bf16.mxu0 %vm1416_vm0, %v1369_v50  ;;  %v1347_v12 = vmax.f32 %v1315_v28, 0.0  ;;  %v1251_v28 = vmul.f32 %v5009_v53, %v1196_v15 }
 0x1cb   : > { %v1316_v11 = vadd.f32 %v5030_v10, %v1277_v7  ;;  %v810_v3 = vpop.permute.xlu1 %809  ;;  %v835_v0 = vpop.permute.xlu0 %834 }
 0x1cc   : > { %v887_v23 = vmul.f32 %v5012_v54, %v810_v3 }
 0x1cd   : > { %v1348_v56 = vmax.f32 %v1316_v11, 0.0 }
 0x1ce   : > { %v1083_v38 = vadd.f32 %v1051_v32, %v887_v23 }
 0x1cf   : > { %v1370_v13 = vpack.c.bf16 %v1348_v56, %v1347_v12  ;;  %v5218_v4 = vpop.permute.xlu0 %844  ;;  %v892_v12 = vmul.f32 %v5012_v54, %v835_v0 }
 0x1d0   : > { %v980_v34 = vpop.permute.xlu1 %979 }
 0x1d1   : > { %3890 = vmatmul.mubr.msk.bf16.gmra.mxu0 %vm1416_vm0, %v1370_v13  ;;  %v1050_v17 = vmul.f32 %v5006_v51, %v980_v34 }
 0x1d3   : > { %v1082_v19 = vadd.f32 %v1050_v17, %v886_v30  ;;  %v1004_v11 = vpop.permute.xlu0 %1003 }
 0x1d4   : > { %v1056_v13 = vmul.f32 %v5006_v51, %v1004_v11 }
 0x1d5   : > { %v815_v16 = vpop.permute.xlu1 %814  ;;  %v1278_v35 = vadd.f32 %v1246_v18, %v1082_v19 }
 0x1d6   : > { %v888_v1 = vmul.f32 %v5012_v54, %v815_v16  ;;  %v1088_v30 = vadd.f32 %v1056_v13, %v892_v12  ;;  %v894_v12 = vmul.f32 %v5012_v54, %v5218_v4 }
 0x1d7   : > { %v1317_v48 = vadd.f32 %v5030_v10, %v1278_v35 }
 0x1d8   : > { %v1084_v42 = vadd.f32 %v1052_v9, %v888_v1 }
 0x1d9   : > { %v820_v14 = vpop.permute.xlu1 %819  ;;  %v1349_v29 = vmax.f32 %v1317_v48, 0.0 }
 0x1da   : > { %v889_v27 = vmul.f32 %v5012_v54, %v820_v14 }
 0x1de   : > { %v992_v21 = vpop.permute.xlu1 %991 }
 0x1df   : > { %v1053_v22 = vmul.f32 %v5006_v51, %v992_v21 }
 0x1e1   : > { %v1085_v36 = vadd.f32 %v1053_v22, %v889_v27 }
 0x1e3   : > { %v1180_v37 = vpop.permute.xlu1 %1179  ;;  %v1281_v55 = vadd.f32 %v1249_v33, %v1085_v36  ;;  %v5231_v33 = vld [vmem:[#allocation8] ss:$0 sm:$0xff] }
 0x1e4   : > { %v1247_v46 = vmul.f32 %v5009_v53, %v1180_v37 }
 0x1e5   : > { %v1320_v60 = vadd.f32 %v5030_v10, %v1281_v55 }
 0x1e6   : > { %v1279_v5 = vadd.f32 %v1247_v46, %v1083_v38 }
 0x1e7   : > { %v1184_v40 = vpop.permute.xlu1 %1183  ;;  %v1352_v52 = vmax.f32 %v1320_v60, 0.0 }
 0x1e8   : > { %v1318_v41 = vadd.f32 %v5030_v10, %v1279_v5  ;;  %v1248_v47 = vmul.f32 %v5009_v53, %v1184_v40 }
 0x1ea   : > { %v1350_v61 = vmax.f32 %v1318_v41, 0.0  ;;  %v1280_v58 = vadd.f32 %v1248_v47, %v1084_v42 }
 0x1ec   : > { %v1371_v31 = vpack.c.bf16 %v1350_v61, %v1349_v29  ;;  %v1319_v25 = vadd.f32 %v5030_v10, %v1280_v58  ;;  %v825_v20 = vpop.permute.xlu1 %824 }
 0x1ed   : > { %v890_v39 = vmul.f32 %v5012_v54, %v825_v20 }
 0x1ee   : > { %v1351_v59 = vmax.f32 %v1319_v25, 0.0  ;;  %3893 = vmatprep.mubr.msk.bf16.mxu0 %vm1416_vm0, %v1371_v31 }
 0x1f0   : > { %v1372_v63 = vpack.c.bf16 %v1352_v52, %v1351_v59  ;;  %v1016_v52 = vpop.permute.xlu0 %1015 }
 0x1f1   : > { %v996_v26 = vpop.permute.xlu1 %995 }
 0x1f2   : > { %3894 = vmatmul.mubr.msk.bf16.gmra.mxu0 %vm1416_vm0, %v1372_v63  ;;  %v1054_v7 = vmul.f32 %v5006_v51, %v996_v26 }
 0x1f4   : > { %v1086_v34 = vadd.f32 %v1054_v7, %v890_v39 }
 0x1f5   : > { %v1000_v62 = vpop.permute.xlu1 %999 }
 0x1f6   : > { %v1055_v2 = vmul.f32 %v5006_v51, %v1000_v62 }
 0x1f8   : > { %v1087_v50 = vadd.f32 %v1055_v2, %v891_v24 }
 0x1fa   : > { %v840_v57 = vpop.permute.xlu1 %839  ;;  %v1283_v3 = vadd.f32 %v1251_v28, %v1087_v50 }
 0x1fb   : > { %v893_v27 = vmul.f32 %v5012_v54, %v840_v57 }
 0x1fc   : > { %v1322_v43 = vadd.f32 %v5030_v10, %v1283_v3 }
 0x1fe   : > { %v1354_v22 = vmax.f32 %v1322_v43, 0.0 }
 0x1ff   : > { %v1008_v6 = vpop.permute.xlu1 %1007 }
 0x200   : > { %v1057_v19 = vmul.f32 %v5006_v51, %v1008_v6  ;;  %v1020_v6 = vpop.permute.xlu0 %1019 }
 0x201   : > { %v1060_v4 = vmul.f32 %v5006_v51, %v1020_v6 }
 0x202   : > { %v1089_v1 = vadd.f32 %v1057_v19, %v893_v27 }
 0x204   : > { %v1192_v56 = vpop.permute.xlu1 %1191  ;;  %v1208_v3 = vpop.permute.xlu0 %1207 }
 0x205   : > { %v1250_v16 = vmul.f32 %v5009_v53, %v1192_v56  ;;  %v1254_v13 = vmul.f32 %v5009_v53, %v1208_v3 }
 0x207   : > { %v1282_v14 = vadd.f32 %v1250_v16, %v1086_v34 }
 0x208   : > { %v1200_v17 = vpop.permute.xlu1 %1199  ;;  %v1220_v16 = vpop.permute.xlu0 %1219 }
 0x209   : > { %v1321_v15 = vadd.f32 %v5030_v10, %v1282_v14  ;;  %v1252_v18 = vmul.f32 %v5009_v53, %v1200_v17  ;;  %v1257_v19 = vmul.f32 %v5009_v53, %v1220_v16  ;;  %v4174_v16 = vld [vmem:[%s5811_s7 + $0x44] ss:$8 sps:$4 sm:$0xff]  }
 0x20a   : > { %v3875_v21 = vpop.f32.mrf.mxu0 }
 0x20b   : > { %v1353_v23 = vmax.f32 %v1321_v15, 0.0  ;;  %v1284_v32 = vadd.f32 %v1252_v18, %v1088_v30  ;;  %v1508_v48 = vadd.f32 %v3875_v21, %v5231_v33  ;;  %v1059_v30 = vmul.f32 %v5006_v51, %v1016_v52 }
 0x20c   : > { %v1499_v35 = vpop.f32.mrf.mxu0  ;;  %v1204_v36 = vpop.permute.xlu1 %1203 }
 0x20d   : > { %v1373_v37 = vpack.c.bf16 %v1354_v22, %v1353_v23  ;;  %v1500_v38 = vadd.f32 %v5231_v33, %v1499_v35  ;;  %v1253_v46 = vmul.f32 %v5009_v53, %v1204_v36  ;;  %v1323_v5 = vadd.f32 %v5030_v10, %v1284_v32 }
 0x20e   : > { %v3876_v9 = vpop.f32.mrf.mxu0  ;;  %v1628_v58 = vmax.f32 %v1508_v48, 0.0 }
 0x20f   : > { %v1511_v55 = vadd.f32 %v3876_v9, %v5231_v33  ;;  %3897 = vmatprep.mubr.msk.bf16.mxu0 %vm1416_vm0, %v1373_v37  ;;  %v1285_v40 = vadd.f32 %v1253_v46, %v1089_v1  ;;  %v1626_v41 = vmax.f32 %v1500_v38, 0.0  ;;  %v1355_v25 = vmax.f32 %v1323_v5, 0.0 }
 0x210   : > { %v1502_v42 = vpop.f32.mrf.mxu0  ;;  %v2338_v24 = vsel %vm1416_vm0, %v1628_v58, -inf }
 0x211   : > { %v1503_v47 = vadd.f32 %v5231_v33, %v1502_v42  ;;  %v850_v29 = vpop.permute.xlu1 %849  ;;  %v1324_v60 = vadd.f32 %v5030_v10, %v1285_v40  ;;  %v1629_v61 = vmax.f32 %v1511_v55, 0.0  ;;  %v2335_v59 = vsel %vm1416_vm0, %v1626_v41, -inf }
 0x212   : > { %v895_v17 = vmul.f32 %v5012_v54, %v850_v29 }
 0x213   : > { %v1627_v31 = vmax.f32 %v1503_v47, 0.0  ;;  %v1356_v20 = vmax.f32 %v1324_v60, 0.0  ;;  %v1659_v62 = vpack.c.bf16 %v1629_v61, %v1628_v58  ;;  %v2340_v50 = vsel %vm1416_vm0, %v1629_v61, -inf }
 0x214   : > { %v1091_v22 = vadd.f32 %v1059_v30, %v895_v17 }
 0x215   : > { %v2336_v63 = vsel %vm1416_vm0, %v1627_v31, -inf  ;;  %v1658_v26 = vpack.c.bf16 %v1627_v31, %v1626_v41  ;;  %v1374_v44 = vpack.c.bf16 %v1356_v20, %v1355_v25 }
 0x216   : > { %v2337_v0 = vmax.f32 %v2335_v59, %v2336_v63  ;;  %v1012_v57 = vpop.permute.xlu1 %1011 }
 0x217   : > { %3913 = vmatprep.mubr.msk.bf16.mxu1 %vm1416_vm0, %v1658_v26  ;;  %3898 = vmatmul.mubr.msk.bf16.gmra.mxu0 %vm1416_vm0, %v1374_v44  ;;  %v1058_v11 = vmul.f32 %v5006_v51, %v1012_v57 }
 0x218   : > { %v2339_v2 = vmax.f32 %v2337_v0, %v2338_v24  ;;  %3914 = vmatmul.mubr.msk.bf16.vlgmr.msra.gmra.mxu1 %vm1416_vm0, %v1659_v62 }
 0x219   : > { %v1090_v56 = vadd.f32 %v1058_v11, %v894_v12  ;;  %v4168_v11 = vld [vmem:[%s5811_s7 + $0x64] ss:$8 sps:$4 sm:$0xff]   ;;  %v4171_v12 = vld [vmem:[%s5811_s7 + $0x54] ss:$8 sps:$4 sm:$0xff]  }
 0x21a   : > { %v2341_v28 = vmax.f32 %v2339_v2, %v2340_v50 }
 0x21b   : > { %v855_v7 = vpop.permute.xlu1 %854  ;;  %v1286_v15 = vadd.f32 %v1254_v13, %v1090_v56  ;;  %v4169_v13 = vld [vmem:[%s5811_s7 + $0x50] ss:$8 sps:$4 sm:$0xff]  }
 0x21c   : > { %v896_v23 = vmul.f32 %v5012_v54, %v855_v7  ;;  %v4163_v7 = vld [vmem:[%s5811_s7 + $0x70] ss:$8 sps:$4 sm:$0xff]  }
 0x21d   : > { %v1325_v32 = vadd.f32 %v5030_v10, %v1286_v15  ;;  %v4177_v15 = vld [vmem:[%s5811_s7 + $0x34] ss:$8 sps:$4 sm:$0xff]  }
 0x21e   : > { %v1092_v46 = vadd.f32 %v1060_v4, %v896_v23  ;;  %v4175_v4 = vld [vmem:[%s5811_s7 + $0x30] ss:$8 sps:$4 sm:$0xff]  }
 0x21f   : > { %v860_v39 = vpop.permute.xlu1 %859  ;;  %v1357_v5 = vmax.f32 %v1325_v32, 0.0 }
 0x220   : > { %v897_v43 = vmul.f32 %v5012_v54, %v860_v39  ;;  %v4166_v39 = vld [vmem:[%s5811_s7 + $0x60] ss:$8 sps:$4 sm:$0xff]  }
 0x224   : > { %v1024_v34 = vpop.permute.xlu1 %1023 }
 0x225   : > { %v1061_v14 = vmul.f32 %v5006_v51, %v1024_v34 }
 0x227   : > { %v1093_v18 = vadd.f32 %v1061_v14, %v897_v43  ;;  %v4172_v14 = vld [vmem:[%s5811_s7 + $0x40] ss:$8 sps:$4 sm:$0xff]  }
 0x229   : > { %v1212_v21 = vpop.permute.xlu1 %1211  ;;  %v1289_v35 = vadd.f32 %v1257_v19, %v1093_v18 }
 0x22a   : > { %v1255_v27 = vmul.f32 %v5009_v53, %v1212_v21 }
 0x22b   : > { %v3879_v36 = vpop.f32.mrf.mxu0  ;;  %v1328_v51 = vadd.f32 %v5030_v10, %v1289_v35 }
 0x22c   : > { %v1287_v37 = vadd.f32 %v1255_v27, %v1091_v22  ;;  %v1524_v42 = vadd.f32 %v3879_v36, %v5231_v33 }
 0x22d   : > { %v1515_v38 = vpop.f32.mrf.mxu0  ;;  %v1216_v1 = vpop.permute.xlu1 %1215  ;;  %v1360_v52 = vmax.f32 %v1328_v51, 0.0  ;;  %v4183_v51 = vld [vmem:[%s5811_s7 + $0x14] ss:$8 sps:$4 sm:$0xff]  }
 0x22e   : > { %v1326_v9 = vadd.f32 %v5030_v10, %v1287_v37  ;;  %v1516_v48 = vadd.f32 %v5231_v33, %v1515_v38  ;;  %v1256_v55 = vmul.f32 %v5009_v53, %v1216_v1  ;;  %v1632_v59 = vmax.f32 %v1524_v42, 0.0  ;;  %v4184_v42 = vld [vmem:[%s5811_s7] ss:$8 sps:$4 sm:$0xff]  }
 0x22f   : > { %v3880_v54 = vpop.f32.mrf.mxu0 }
 0x230   : > { %v1358_v40 = vmax.f32 %v1326_v9, 0.0  ;;  %v1630_v41 = vmax.f32 %v1516_v48, 0.0  ;;  %v1288_v47 = vadd.f32 %v1256_v55, %v1092_v46  ;;  %v1527_v29 = vadd.f32 %v3880_v54, %v5231_v33  ;;  %v4180_v46 = vld [vmem:[%s5811_s7 + $0x24] ss:$8 sps:$4 sm:$0xff]   ;;  %v4178_v48 = vld [vmem:[%s5811_s7 + $0x20] ss:$8 sps:$4 sm:$0xff]  }
 0x231   : > { %v1518_v60 = vpop.f32.mrf.mxu0  ;;  %v2346_v2 = vsel %vm1416_vm0, %v1632_v59, -inf  ;;  %v4181_v54 = vld [vmem:[%s5811_s7 + $0x10] ss:$8 sps:$4 sm:$0xff]  }
 0x232   : > { %v1375_v61 = vpack.c.bf16 %v1358_v40, %v1357_v5  ;;  %v2342_v58 = vsel %vm1416_vm0, %v1630_v41, -inf  ;;  %v1327_v31 = vadd.f32 %v5030_v10, %v1288_v47  ;;  %v1519_v25 = vadd.f32 %v5231_v33, %v1518_v60  ;;  %v4186_v40 = vld [vmem:[%s5811_s7 + $0x4] ss:$8 sps:$4 sm:$0xff]  }
 0x233   : > { %v2343_v53 = vmax.f32 %v2341_v28, %v2342_v58  ;;  %v1633_v20 = vmax.f32 %v1527_v29, 0.0  ;;  %v4165_v28 = vld [vmem:[%s5811_s7 + $0x74] ss:$8 sps:$4 sm:$0xff]  }
 0x234   : > { %v1359_v63 = vmax.f32 %v1327_v31, 0.0  ;;  %v1631_v26 = vmax.f32 %v1519_v25, 0.0  ;;  %3901 = vmatprep.mubr.msk.bf16.mxu0 %vm1416_vm0, %v1375_v61  ;;  %2078 = vmatprep.subr.bf16.mxu0 %v4165_v28 }
 0x235   : > { %v1661_v57 = vpack.c.bf16 %v1633_v20, %v1632_v59  ;;  %v2348_v50 = vsel %vm1416_vm0, %v1633_v20, -inf  ;;  %2079 = vmatpush1.bf16.msra.mxu0 %v4163_v7 }
 0x236   : > { %v1376_v44 = vpack.c.bf16 %v1360_v52, %v1359_v63  ;;  %v1660_v62 = vpack.c.bf16 %v1631_v26, %v1630_v41  ;;  %v2344_v0 = vsel %vm1416_vm0, %v1631_v26, -inf  ;;  %2080 = vmatprep.subr.bf16.mxu0 %v4168_v11 }
 0x237   : > { %v2345_v24 = vmax.f32 %v2343_v53, %v2344_v0 }
 0x238   : > { %3902 = vmatmul.mubr.msk.bf16.gmra.mxu0 %vm1416_vm0, %v1376_v44  ;;  %3917 = vmatprep.mubr.msk.bf16.mxu1 %vm1416_vm0, %v1660_v62 }
 0x239   : > { %v2347_v10 = vmax.f32 %v2345_v24, %v2346_v2  ;;  %3918 = vmatmul.mubr.msk.bf16.gmra.mxu1 %vm1416_vm0, %v1661_v57  ;;  %2110 = vmatprep.mubr.bf16.mxu0 %v4624_v8 }
 0x23a   : > { %2081 = vmatpush1.bf16.msra.mxu0 %v4166_v39 }
 0x23b   : > { %v5278_v6 = vmax.f32 %v2347_v10, %v2348_v50  ;;  %2082 = vmatprep.subr.bf16.mxu0 %v4171_v12 }
 0x23d   : > { %v2350_v52 = vrot.slane %v5278_v6, 4 }
 0x23e   : > { %2083 = vmatpush1.bf16.msra.mxu0 %v4169_v13 }
 0x23f   : > { %2084 = vmatprep.subr.bf16.mxu0 %v4174_v16  ;;  %v2351_v57 = vmax.f32 %v5278_v6, %v2350_v52 }
 0x241   : > { %v2352_v7 = vrot.slane %v2351_v57, 2 }
 0x242   : > { %2085 = vmatpush1.bf16.msra.mxu0 %v4172_v14 }
 0x243   : > { %2086 = vmatprep.subr.bf16.mxu0 %v4177_v15 }
 0x246   : > { %2087 = vmatpush1.bf16.msra.mxu0 %v4175_v4 }
 0x247   : > { %2088 = vmatprep.subr.bf16.mxu0 %v4180_v46 }
 0x24a   : > { %2089 = vmatpush1.bf16.msra.mxu0 %v4178_v48 }
 0x24b   : > { %v3883_v3 = vpop.f32.mrf.mxu0  ;;  %2090 = vmatprep.subr.bf16.mxu0 %v4183_v51 }
 0x24c   : > { %v1540_v30 = vadd.f32 %v3883_v3, %v5231_v33  ;;  %v2353_v3 = vmax.f32 %v2351_v57, %v2352_v7 }
 0x24d   : > { %v1531_v56 = vpop.f32.mrf.mxu0 }
 0x24e   : > { %v1532_v34 = vadd.f32 %v5231_v33, %v1531_v56  ;;  %v1636_v23 = vmax.f32 %v1540_v30, 0.0  ;;  %2091 = vmatpush1.bf16.msra.mxu0 %v4181_v54  ;;  %v2354_v13 = vrot.slane %v2353_v3, 1 }
 0x24f   : > { %v3884_v43 = vpop.f32.mrf.mxu0  ;;  %2092 = vmatprep.subr.bf16.mxu0 %v4186_v40 }
 0x250   : > { %v1543_v17 = vadd.f32 %v3884_v43, %v5231_v33  ;;  %v1634_v19 = vmax.f32 %v1532_v34, 0.0  ;;  %v2359_v1 = vsel %vm1416_vm0, %v1636_v23, -inf  ;;  %v2355_v16 = vmax.f32 %v2353_v3, %v2354_v13  ;;  %v5374_v13 = vld [vmem:[#allocation9] ss:$0 sm:$0xff] }
 0x251   : > { %v1534_v18 = vpop.f32.mrf.mxu0 }
 0x252   : > { %v1535_v21 = vadd.f32 %v5231_v33, %v1534_v18  ;;  %v1637_v22 = vmax.f32 %v1543_v17, 0.0  ;;  %v2356_v32 = vsel %vm1416_vm0, %v1634_v19, -inf  ;;  %2093 = vmatpush1.bf16.msra.mxu0 %v4184_v42 }
 0x254   : > { %v1635_v27 = vmax.f32 %v1535_v21, 0.0  ;;  %v1663_v37 = vpack.c.bf16 %v1637_v22, %v1636_v23  ;;  %v2361_v55 = vsel %vm1416_vm0, %v1637_v22, -inf }
 0x256   : > { %v1662_v35 = vpack.c.bf16 %v1635_v27, %v1634_v19  ;;  %v2357_v36 = vsel %vm1416_vm0, %v1635_v27, -inf }
 0x257   : > { %v2358_v38 = vmax.f32 %v2356_v32, %v2357_v36 }
 0x258   : > { %3921 = vmatprep.mubr.msk.bf16.mxu1 %vm1416_vm0, %v1662_v35 }
 0x259   : > { %v2360_v9 = vmax.f32 %v2358_v38, %v2359_v1  ;;  %3922 = vmatmul.mubr.msk.bf16.gmra.mxu1 %vm1416_vm0, %v1663_v37 }
 0x25b   : > { %v2362_v5 = vmax.f32 %v2360_v9, %v2361_v55 }
 0x26c   : > { %v3887_v41 = vpop.f32.mrf.mxu0 }
 0x26d   : > { %v1556_v61 = vadd.f32 %v3887_v41, %v5231_v33 }
 0x26e   : > { %v1547_v47 = vpop.f32.mrf.mxu0 }
 0x26f   : > { %v1548_v29 = vadd.f32 %v5231_v33, %v1547_v47  ;;  %v1640_v26 = vmax.f32 %v1556_v61, 0.0 }
 0x270   : > { %v3888_v60 = vpop.f32.mrf.mxu0 }
 0x271   : > { %v1638_v58 = vmax.f32 %v1548_v29, 0.0  ;;  %v1559_v31 = vadd.f32 %v3888_v60, %v5231_v33  ;;  %v2367_v10 = vsel %vm1416_vm0, %v1640_v26, -inf }
 0x272   : > { %v1550_v25 = vpop.f32.mrf.mxu0 }
 0x273   : > { %v2363_v53 = vsel %vm1416_vm0, %v1638_v58, -inf  ;;  %v1551_v20 = vadd.f32 %v5231_v33, %v1550_v25  ;;  %v1641_v63 = vmax.f32 %v1559_v31, 0.0 }
 0x274   : > { %v2364_v59 = vmax.f32 %v2362_v5, %v2363_v53 }
 0x275   : > { %v1639_v44 = vmax.f32 %v1551_v20, 0.0  ;;  %v1665_v24 = vpack.c.bf16 %v1641_v63, %v1640_v26  ;;  %v2369_v28 = vsel %vm1416_vm0, %v1641_v63, -inf }
 0x277   : > { %v1664_v62 = vpack.c.bf16 %v1639_v44, %v1638_v58  ;;  %v2365_v0 = vsel %vm1416_vm0, %v1639_v44, -inf }
 0x278   : > { %v2366_v2 = vmax.f32 %v2364_v59, %v2365_v0 }
 0x279   : > { %3925 = vmatprep.mubr.msk.bf16.mxu1 %vm1416_vm0, %v1664_v62 }
 0x27a   : > { %v2368_v50 = vmax.f32 %v2366_v2, %v2367_v10  ;;  %3926 = vmatmul.mubr.msk.bf16.gmra.mxu1 %vm1416_vm0, %v1665_v24 }
 0x27c   : > { %v2370_v11 = vmax.f32 %v2368_v50, %v2369_v28 }
 0x27e   : > { %v2371_v39 = vrot.slane %v2370_v11, 4 }
 0x280   : > { %v2372_v12 = vmax.f32 %v2370_v11, %v2371_v39 }
 0x282   : > { %v2373_v56 = vrot.slane %v2372_v12, 2 }
 0x284   : > { %v2374_v34 = vmax.f32 %v2372_v12, %v2373_v56 }
 0x286   : > { %v2375_v6 = vrot.slane %v2374_v34, 1 }
 0x288   : > { %v2376_v43 = vmax.f32 %v2374_v34, %v2375_v6 }
 0x28a   : > { %v2606_v14 = vsel %vm2583_vm1, %v2376_v43, %v2355_v16 }
 0x291   : > { %v3891_v30 = vpop.f32.mrf.mxu0 }
 0x292   : > { %v1572_v19 = vadd.f32 %v3891_v30, %v5231_v33 }
 0x293   : > { %v1563_v17 = vpop.f32.mrf.mxu0 }
 0x294   : > { %v1564_v15 = vadd.f32 %v5231_v33, %v1563_v17  ;;  %v1644_v32 = vmax.f32 %v1572_v19, 0.0 }
 0x295   : > { %v3892_v18 = vpop.f32.mrf.mxu0 }
 0x296   : > { %v1575_v21 = vadd.f32 %v3892_v18, %v5231_v33  ;;  %v1642_v4 = vmax.f32 %v1564_v15, 0.0  ;;  %v2380_v9 = vsel %vm1416_vm0, %v1644_v32, -inf }
 0x297   : > { %v1566_v22 = vpop.f32.mrf.mxu0 }
 0x298   : > { %v1567_v23 = vadd.f32 %v5231_v33, %v1566_v22  ;;  %v1645_v27 = vmax.f32 %v1575_v21, 0.0  ;;  %v2377_v36 = vsel %vm1416_vm0, %v1642_v4, -inf }
 0x29a   : > { %v1643_v35 = vmax.f32 %v1567_v23, 0.0  ;;  %v1667_v1 = vpack.c.bf16 %v1645_v27, %v1644_v32  ;;  %v2382_v55 = vsel %vm1416_vm0, %v1645_v27, -inf }
 0x29c   : > { %v1666_v37 = vpack.c.bf16 %v1643_v35, %v1642_v4  ;;  %v2378_v38 = vsel %vm1416_vm0, %v1643_v35, -inf }
 0x29d   : > { %v2379_v46 = vmax.f32 %v2377_v36, %v2378_v38 }
 0x29e   : > { %3929 = vmatprep.mubr.msk.bf16.mxu1 %vm1416_vm0, %v1666_v37 }
 0x29f   : > { %v2381_v48 = vmax.f32 %v2379_v46, %v2380_v9  ;;  %3930 = vmatmul.mubr.msk.bf16.gmra.mxu1 %vm1416_vm0, %v1667_v1 }
 0x2a1   : > { %v2383_v5 = vmax.f32 %v2381_v48, %v2382_v55 }
 0x2b2   : > { %v3895_v51 = vpop.f32.mrf.mxu0 }
 0x2b3   : > { %v1588_v41 = vadd.f32 %v3895_v51, %v5231_v33 }
 0x2b4   : > { %v1579_v54 = vpop.f32.mrf.mxu0 }
 0x2b5   : > { %v1580_v40 = vadd.f32 %v5231_v33, %v1579_v54  ;;  %v1648_v53 = vmax.f32 %v1588_v41, 0.0 }
 0x2b6   : > { %v3896_v42 = vpop.f32.mrf.mxu0 }
 0x2b7   : > { %v1646_v47 = vmax.f32 %v1580_v40, 0.0  ;;  %v1591_v29 = vadd.f32 %v3896_v42, %v5231_v33  ;;  %v2388_v44 = vsel %vm1416_vm0, %v1648_v53, -inf }
 0x2b8   : > { %v1582_v60 = vpop.f32.mrf.mxu0 }
 0x2b9   : > { %v2384_v61 = vsel %vm1416_vm0, %v1646_v47, -inf  ;;  %v1583_v58 = vadd.f32 %v5231_v33, %v1582_v60  ;;  %v1649_v25 = vmax.f32 %v1591_v29, 0.0 }
 0x2ba   : > { %v2385_v31 = vmax.f32 %v2383_v5, %v2384_v61 }
 0x2bb   : > { %v1647_v20 = vmax.f32 %v1583_v58, 0.0  ;;  %v1669_v63 = vpack.c.bf16 %v1649_v25, %v1648_v53  ;;  %v2390_v0 = vsel %vm1416_vm0, %v1649_v25, -inf }
 0x2bd   : > { %v1668_v52 = vpack.c.bf16 %v1647_v20, %v1646_v47  ;;  %v2386_v59 = vsel %vm1416_vm0, %v1647_v20, -inf }
 0x2be   : > { %v2387_v26 = vmax.f32 %v2385_v31, %v2386_v59 }
 0x2bf   : > { %3933 = vmatprep.mubr.msk.bf16.mxu1 %vm1416_vm0, %v1668_v52 }
 0x2c0   : > { %v2389_v62 = vmax.f32 %v2387_v26, %v2388_v44  ;;  %3934 = vmatmul.mubr.msk.bf16.gmra.mxu1 %vm1416_vm0, %v1669_v63 }
 0x2c2   : > { %v2391_v57 = vmax.f32 %v2389_v62, %v2390_v0 }
 0x2c4   : > { %v2392_v24 = vrot.slane %v2391_v57, 4 }
 0x2c6   : > { %v2393_v2 = vmax.f32 %v2391_v57, %v2392_v24 }
 0x2c8   : > { %v2394_v10 = vrot.slane %v2393_v2, 2 }
 0x2ca   : > { %v2395_v50 = vmax.f32 %v2393_v2, %v2394_v10 }
 0x2cc   : > { %v2396_v28 = vrot.slane %v2395_v50, 1 }
 0x2ce   : > { %v2397_v7 = vmax.f32 %v2395_v50, %v2396_v28 }
 0x2d0   : > { %v5372_v11 = vsel %vm2585_vm2, %v2397_v7, %v2606_v14 }
 0x2d7   : > { %v3899_v39 = vpop.f32.mrf.mxu0 }
 0x2d8   : > { %v3915_v3 = vpop.f32.mrf.mxu1  ;;  %v1604_v6 = vadd.f32 %v3899_v39, %v5231_v33 }
 0x2d9   : > { %v1595_v12 = vpop.f32.mrf.mxu0  ;;  %v1804_v15 = vadd.f32 %v3915_v3, %v5374_v13 }
 0x2da   : > { %v1795_v56 = vpop.f32.mrf.mxu1  ;;  %v1596_v34 = vadd.f32 %v5231_v33, %v1595_v12  ;;  %v1652_v4 = vmax.f32 %v1604_v6, 0.0 }
 0x2db   : > { %v3900_v16 = vpop.f32.mrf.mxu0  ;;  %v1796_v30 = vadd.f32 %v5374_v13, %v1795_v56  ;;  %v1924_v37 = vmax.f32 %v1804_v15, 0.0 }
 0x2dc   : > { %v3916_v43 = vpop.f32.mrf.mxu1  ;;  %v1607_v17 = vadd.f32 %v3900_v16, %v5231_v33  ;;  %v1650_v14 = vmax.f32 %v1596_v34, 0.0  ;;  %v2401_v51 = vsel %vm1416_vm0, %v1652_v4, -inf }
 0x2dd   : > { %v1598_v18 = vpop.f32.mrf.mxu0  ;;  %v1922_v27 = vmax.f32 %v1796_v30, 0.0  ;;  %v1807_v32 = vadd.f32 %v3916_v43, %v5374_v13 }
 0x2de   : > { %v1798_v19 = vpop.f32.mrf.mxu1  ;;  %v1599_v21 = vadd.f32 %v5231_v33, %v1598_v18  ;;  %v1653_v23 = vmax.f32 %v1607_v17, 0.0  ;;  %v2398_v38 = vsel %vm1416_vm0, %v1650_v14, -inf }
 0x2df   : > { %v1799_v22 = vadd.f32 %v5374_v13, %v1798_v19  ;;  %v1925_v54 = vmax.f32 %v1807_v32, 0.0 }
 0x2e0   : > { %v1651_v35 = vmax.f32 %v1599_v21, 0.0  ;;  %v1671_v55 = vpack.c.bf16 %v1653_v23, %v1652_v4  ;;  %v2403_v41 = vsel %vm1416_vm0, %v1653_v23, -inf }
 0x2e1   : > { %v1923_v36 = vmax.f32 %v1799_v22, 0.0  ;;  %v1955_v60 = vpack.c.bf16 %v1925_v54, %v1924_v37 }
 0x2e2   : > { %v1670_v1 = vpack.c.bf16 %v1651_v35, %v1650_v14  ;;  %v2399_v46 = vsel %vm1416_vm0, %v1651_v35, -inf }
 0x2e3   : > { %v1954_v9 = vpack.c.bf16 %v1923_v36, %v1922_v27  ;;  %v2419_v48 = vmax.f32 %v1922_v27, %v1923_v36  ;;  %v2400_v5 = vmax.f32 %v2398_v38, %v2399_v46 }
 0x2e4   : > { %3937 = vmatprep.mubr.msk.bf16.mxu1 %vm1416_vm0, %v1670_v1 }
 0x2e5   : > { %v2420_v40 = vmax.f32 %v2419_v48, %v1924_v37  ;;  %2111 = vmatmul.mubr.bf16.vlgmr.msra.gmra.mxu0 %v1954_v9  ;;  %v2402_v42 = vmax.f32 %v2400_v5, %v2401_v51  ;;  %3938 = vmatmul.mubr.msk.bf16.gmra.mxu1 %vm1416_vm0, %v1671_v55 }
 0x2e6   : > { %2120 = vmatprep.mubr.bf16.mxu0 %v4624_v8 }
 0x2e7   : > { %v2421_v47 = vmax.f32 %v2420_v40, %v1925_v54  ;;  %v2404_v29 = vmax.f32 %v2402_v42, %v2403_v41 }
 0x2ed   : > { %2121 = vmatmul.mubr.bf16.gmra.mxu0 %v1955_v60 }
 0x2ee   : > { %2130 = vmatprep.mubr.bf16.mxu0 %v4624_v8 }
 0x2f8   : > { %v3903_v61 = vpop.f32.mrf.mxu0 }
 0x2f9   : > { %v3919_v58 = vpop.f32.mrf.mxu1  ;;  %v1620_v59 = vadd.f32 %v3903_v61, %v5231_v33 }
 0x2fa   : > { %v1611_v31 = vpop.f32.mrf.mxu0  ;;  %v1820_v57 = vadd.f32 %v3919_v58, %v5374_v13 }
 0x2fb   : > { %v1612_v25 = vadd.f32 %v5231_v33, %v1611_v31  ;;  %v1811_v53 = vpop.f32.mrf.mxu1  ;;  %v1656_v3 = vmax.f32 %v1620_v59, 0.0 }
 0x2fc   : > { %v1812_v20 = vadd.f32 %v5374_v13, %v1811_v53  ;;  %v3904_v52 = vpop.f32.mrf.mxu0  ;;  %v1928_v6 = vmax.f32 %v1820_v57, 0.0 }
 0x2fd   : > { %v1654_v63 = vmax.f32 %v1612_v25, 0.0  ;;  %v1623_v26 = vadd.f32 %v3904_v52, %v5231_v33  ;;  %v3920_v44 = vpop.f32.mrf.mxu1 }
 0x2fe   : > { %v1926_v62 = vmax.f32 %v1812_v20, 0.0  ;;  %v1614_v0 = vpop.f32.mrf.mxu0  ;;  %v1823_v56 = vadd.f32 %v3920_v44, %v5374_v13 }
 0x2ff   : > { %v2405_v24 = vsel %vm1416_vm0, %v1654_v63, -inf  ;;  %v1615_v2 = vadd.f32 %v5231_v33, %v1614_v0  ;;  %v1814_v10 = vpop.f32.mrf.mxu1  ;;  %v1657_v7 = vmax.f32 %v1623_v26, 0.0  ;;  %v2409_v33 = vsel %vm1416_vm0, %v1656_v3, -inf }
 0x300   : > { %v2406_v50 = vmax.f32 %v2404_v29, %v2405_v24  ;;  %v2422_v28 = vmax.f32 %v2421_v47, %v1926_v62  ;;  %v1815_v39 = vadd.f32 %v5374_v13, %v1814_v10  ;;  %v1929_v18 = vmax.f32 %v1823_v56, 0.0 }
 0x301   : > { %v1655_v12 = vmax.f32 %v1615_v2, 0.0  ;;  %v1673_v30 = vpack.c.bf16 %v1657_v7, %v1656_v3  ;;  %v2411_v22 = vsel %vm1416_vm0, %v1657_v7, -inf }
 0x302   : > { %v1927_v34 = vmax.f32 %v1815_v39, 0.0  ;;  %v1957_v32 = vpack.c.bf16 %v1929_v18, %v1928_v6 }
 0x303   : > { %v1672_v16 = vpack.c.bf16 %v1655_v12, %v1654_v63  ;;  %v2407_v43 = vsel %vm1416_vm0, %v1655_v12, -inf }
 0x304   : > { %v2408_v17 = vmax.f32 %v2406_v50, %v2407_v43  ;;  %v1956_v15 = vpack.c.bf16 %v1927_v34, %v1926_v62  ;;  %v2423_v14 = vmax.f32 %v2422_v28, %v1927_v34 }
 0x305   : > { %3941 = vmatprep.mubr.msk.bf16.mxu1 %vm1416_vm0, %v1672_v16 }
 0x306   : > { %v2410_v19 = vmax.f32 %v2408_v17, %v2409_v33  ;;  %v2424_v21 = vmax.f32 %v2423_v14, %v1928_v6  ;;  %3942 = vmatmul.mubr.msk.bf16.gmra.mxu1 %vm1416_vm0, %v1673_v30  ;;  %2131 = vmatmul.mubr.bf16.gmra.mxu0 %v1956_v15 }
 0x307   : > { %2140 = vmatprep.mubr.bf16.mxu0 %v4624_v8 }
 0x308   : > { %v2412_v4 = vmax.f32 %v2410_v19, %v2411_v22  ;;  %v2425_v23 = vmax.f32 %v2424_v21, %v1929_v18 }
 0x30a   : > { %v2413_v27 = vrot.slane %v2412_v4, 4  ;;  %v2426_v44 = vrot.slane %v2425_v23, 4 }
 0x30c   : > { %v2414_v35 = vmax.f32 %v2412_v4, %v2413_v27  ;;  %v2427_v10 = vmax.f32 %v2425_v23, %v2426_v44 }
 0x30e   : > { %v2415_v36 = vrot.slane %v2414_v35, 2  ;;  %2141 = vmatmul.mubr.bf16.gmra.mxu0 %v1957_v32  ;;  %v2428_v12 = vrot.slane %v2427_v10, 2 }
 0x30f   : > { %2150 = vmatprep.mubr.bf16.mxu0 %v4624_v8 }
 0x310   : > { %v2416_v37 = vmax.f32 %v2414_v35, %v2415_v36  ;;  %v2429_v6 = vmax.f32 %v2427_v10, %v2428_v12 }
 0x312   : > { %v2417_v38 = vrot.slane %v2416_v37, 1  ;;  %v2430_v17 = vrot.slane %v2429_v6, 1 }
 0x314   : > { %v2418_v1 = vmax.f32 %v2416_v37, %v2417_v38  ;;  %v2431_v33 = vmax.f32 %v2429_v6, %v2430_v17 }
 0x316   : > { %v5410_v46 = vsel %vm2587_vm3, %v2418_v1, %v5372_v11 }
 0x319   : > { %v3923_v9 = vpop.f32.mrf.mxu1 }
 0x31a   : > { %v1836_v54 = vadd.f32 %v3923_v9, %v5374_v13 }
 0x31b   : > { %v1827_v48 = vpop.f32.mrf.mxu1 }
 0x31c   : > { %v1828_v5 = vadd.f32 %v5374_v13, %v1827_v48  ;;  %v1932_v29 = vmax.f32 %v1836_v54, 0.0 }
 0x31d   : > { %v3924_v55 = vpop.f32.mrf.mxu1 }
 0x31e   : > { %v1930_v42 = vmax.f32 %v1828_v5, 0.0  ;;  %v1839_v41 = vadd.f32 %v3924_v55, %v5374_v13 }
 0x31f   : > { %v1830_v51 = vpop.f32.mrf.mxu1 }
 0x320   : > { %v1831_v40 = vadd.f32 %v5374_v13, %v1830_v51  ;;  %v1933_v58 = vmax.f32 %v1839_v41, 0.0 }
 0x322   : > { %v1931_v47 = vmax.f32 %v1831_v40, 0.0  ;;  %v1959_v25 = vpack.c.bf16 %v1933_v58, %v1932_v29 }
 0x324   : > { %v1958_v60 = vpack.c.bf16 %v1931_v47, %v1930_v42  ;;  %v2432_v61 = vmax.f32 %v1930_v42, %v1931_v47 }
 0x326   : > { %v2433_v11 = vmax.f32 %v2432_v61, %v1932_v29  ;;  %2151 = vmatmul.mubr.bf16.gmra.mxu0 %v1958_v60 }
 0x327   : > { %2160 = vmatprep.mubr.bf16.mxu0 %v4624_v8 }
 0x328   : > { %v2434_v31 = vmax.f32 %v2433_v11, %v1933_v58 }
 0x32e   : > { %2161 = vmatmul.mubr.bf16.gmra.mxu0 %v1959_v25 }
 0x32f   : > { %2170 = vmatprep.mubr.bf16.mxu0 %v4624_v8 }
 0x33a   : > { %v3927_v53 = vpop.f32.mrf.mxu1 }
 0x33b   : > { %v1852_v62 = vadd.f32 %v3927_v53, %v5374_v13 }
 0x33c   : > { %v1843_v20 = vpop.f32.mrf.mxu1 }
 0x33d   : > { %v1844_v52 = vadd.f32 %v5374_v13, %v1843_v20  ;;  %v1936_v50 = vmax.f32 %v1852_v62, 0.0 }
 0x33e   : > { %v3928_v59 = vpop.f32.mrf.mxu1 }
 0x33f   : > { %v1934_v63 = vmax.f32 %v1844_v52, 0.0  ;;  %v1855_v24 = vadd.f32 %v3928_v59, %v5374_v13 }
 0x340   : > { %v1846_v26 = vpop.f32.mrf.mxu1 }
 0x341   : > { %v2435_v0 = vmax.f32 %v2434_v31, %v1934_v63  ;;  %v1847_v57 = vadd.f32 %v5374_v13, %v1846_v26  ;;  %v1937_v39 = vmax.f32 %v1855_v24, 0.0 }
 0x343   : > { %v1935_v2 = vmax.f32 %v1847_v57, 0.0  ;;  %v1961_v16 = vpack.c.bf16 %v1937_v39, %v1936_v50 }
 0x345   : > { %v1960_v28 = vpack.c.bf16 %v1935_v2, %v1934_v63  ;;  %v2436_v7 = vmax.f32 %v2435_v0, %v1935_v2 }
 0x347   : > { %v2437_v3 = vmax.f32 %v2436_v7, %v1936_v50  ;;  %2171 = vmatmul.mubr.bf16.gmra.mxu0 %v1960_v28  ;;  %v1986_v28 = vld [vmem:[#allocation11] sm:$0x3] }
 0x348   : > { %2180 = vmatprep.mubr.bf16.mxu0 %v4624_v8  ;;  %v5441_v7 = vrot.slane %v1986_v28, %v5000_v49  ;;  %v5444_v12 = vrot.slane %v1986_v28, %v4993_v45 }
 0x349   : > { %v2438_v56 = vmax.f32 %v2437_v3, %v1937_v39 }
 0x34b   : > { %v2439_v34 = vrot.slane %v2438_v56, 4 }
 0x34d   : > { %v2440_v43 = vmax.f32 %v2438_v56, %v2439_v34 }
 0x34f   : > { %v2441_v30 = vrot.slane %v2440_v43, 2  ;;  %2181 = vmatmul.mubr.bf16.gmra.mxu0 %v1961_v16 }
 0x350   : > { %2190 = vmatprep.mubr.bf16.mxu0 %v4624_v8 }
 0x351   : > { %v2442_v15 = vmax.f32 %v2440_v43, %v2441_v30 }
 0x353   : > { %v2443_v14 = vrot.slane %v2442_v15, 1 }
 0x355   : > { %v2444_v18 = vmax.f32 %v2442_v15, %v2443_v14 }
 0x357   : > { %v2598_v19 = vsel %vm2583_vm1, %v2444_v18, %v2431_v33 }
 0x35f   : > { %v3931_v21 = vpop.f32.mrf.mxu1 }
 0x360   : > { %v1868_v32 = vadd.f32 %v3931_v21, %v5374_v13 }
 0x361   : > { %v1859_v22 = vpop.f32.mrf.mxu1 }
 0x362   : > { %v1860_v23 = vadd.f32 %v5374_v13, %v1859_v22  ;;  %v1940_v1 = vmax.f32 %v1868_v32, 0.0 }
 0x363   : > { %v3932_v4 = vpop.f32.mrf.mxu1 }
 0x364   : > { %v1938_v36 = vmax.f32 %v1860_v23, 0.0  ;;  %v1871_v37 = vadd.f32 %v3932_v4, %v5374_v13 }
 0x365   : > { %v1862_v27 = vpop.f32.mrf.mxu1 }
 0x366   : > { %v1863_v35 = vadd.f32 %v5374_v13, %v1862_v27  ;;  %v1941_v55 = vmax.f32 %v1871_v37, 0.0 }
 0x368   : > { %v1939_v38 = vmax.f32 %v1863_v35, 0.0  ;;  %v1963_v54 = vpack.c.bf16 %v1941_v55, %v1940_v1 }
 0x36a   : > { %v1962_v9 = vpack.c.bf16 %v1939_v38, %v1938_v36  ;;  %v2445_v48 = vmax.f32 %v1938_v36, %v1939_v38 }
 0x36c   : > { %v2446_v5 = vmax.f32 %v2445_v48, %v1940_v1  ;;  %2191 = vmatmul.mubr.bf16.gmra.mxu0 %v1962_v9 }
 0x36d   : > { %2200 = vmatprep.mubr.bf16.mxu0 %v4624_v8 }
 0x36e   : > { %v2447_v51 = vmax.f32 %v2446_v5, %v1941_v55 }
 0x374   : > { %2201 = vmatmul.mubr.bf16.gmra.mxu0 %v1963_v54 }
 0x375   : > { %2210 = vmatprep.mubr.bf16.mxu0 %v4624_v8 }
 0x380   : > { %v3935_v40 = vpop.f32.mrf.mxu1 }
 0x381   : > { %v1884_v61 = vadd.f32 %v3935_v40, %v5374_v13 }
 0x382   : > { %v1875_v42 = vpop.f32.mrf.mxu1 }
 0x383   : > { %v1876_v41 = vadd.f32 %v5374_v13, %v1875_v42  ;;  %v1944_v53 = vmax.f32 %v1884_v61, 0.0 }
 0x384   : > { %v3936_v47 = vpop.f32.mrf.mxu1 }
 0x385   : > { %v1942_v29 = vmax.f32 %v1876_v41, 0.0  ;;  %v1887_v31 = vadd.f32 %v3936_v47, %v5374_v13 }
 0x386   : > { %v1878_v60 = vpop.f32.mrf.mxu1 }
 0x387   : > { %v2448_v58 = vmax.f32 %v2447_v51, %v1942_v29  ;;  %v1879_v11 = vadd.f32 %v5374_v13, %v1878_v60  ;;  %v1945_v59 = vmax.f32 %v1887_v31, 0.0 }
 0x389   : > { %v1943_v25 = vmax.f32 %v1879_v11, 0.0  ;;  %v1965_v62 = vpack.c.bf16 %v1945_v59, %v1944_v53 }
 0x38b   : > { %v1964_v20 = vpack.c.bf16 %v1943_v25, %v1942_v29  ;;  %v2449_v52 = vmax.f32 %v2448_v58, %v1943_v25 }
 0x38d   : > { %v2450_v63 = vmax.f32 %v2449_v52, %v1944_v53  ;;  %2211 = vmatmul.mubr.bf16.gmra.mxu0 %v1964_v20 }
 0x38e   : > { %2220 = vmatprep.mubr.bf16.mxu0 %v4624_v8 }
 0x38f   : > { %v2451_v26 = vmax.f32 %v2450_v63, %v1945_v59 }
 0x391   : > { %v2452_v44 = vrot.slane %v2451_v26, 4 }
 0x393   : > { %v2453_v0 = vmax.f32 %v2451_v26, %v2452_v44 }
 0x395   : > { %v2454_v57 = vrot.slane %v2453_v0, 2  ;;  %2221 = vmatmul.mubr.bf16.gmra.mxu0 %v1965_v62 }
 0x396   : > { %2230 = vmatprep.mubr.bf16.mxu0 %v4624_v8 }
 0x397   : > { %v2455_v24 = vmax.f32 %v2453_v0, %v2454_v57 }
 0x399   : > { %v2456_v2 = vrot.slane %v2455_v24, 1 }
 0x39b   : > { %v2457_v10 = vmax.f32 %v2455_v24, %v2456_v2 }
 0x39d   : > { %v5438_v50 = vsel %vm2585_vm2, %v2457_v10, %v2598_v19 }
 0x3a5   : > { %v2112_v39 = vpop.f32.mrf.mxu0  ;;  %v3939_v3 = vpop.f32.mrf.mxu1 }
 0x3a6   : > { %v2113_v34 = vadd.f32 %v2112_v39, %v5441_v7  ;;  %v1900_v22 = vadd.f32 %v3939_v3, %v5374_v13 }
 0x3a7   : > { %v2114_v56 = vpop.f32.mrf.mxu0  ;;  %v1891_v6 = vpop.f32.mrf.mxu1 }
 0x3a8   : > { %v2115_v43 = vadd.f32 %v2114_v56, %v5444_v12  ;;  %v1892_v15 = vadd.f32 %v5374_v13, %v1891_v6  ;;  %v2271_v33 = vmax.f32 %v2113_v34, 0.0  ;;  %v1948_v51 = vmax.f32 %v1900_v22, 0.0 }
 0x3a9   : > { %v2116_v16 = vpop.f32.mrf.mxu0  ;;  %v3940_v30 = vpop.f32.mrf.mxu1 }
 0x3aa   : > { %v2117_v17 = vadd.f32 %v2116_v16, %v5441_v7  ;;  %v2272_v27 = vmax.f32 %v2115_v43, 0.0  ;;  %v1946_v37 = vmax.f32 %v1892_v15, 0.0  ;;  %v1903_v38 = vadd.f32 %v3940_v30, %v5374_v13 }
 0x3ab   : > { %v2118_v14 = vpop.f32.mrf.mxu0  ;;  %v1894_v19 = vpop.f32.mrf.mxu1 }
 0x3ac   : > { %v2273_v18 = vmax.f32 %v2117_v17, 0.0  ;;  %v2119_v21 = vadd.f32 %v2118_v14, %v5444_v12  ;;  %v1895_v4 = vadd.f32 %v5374_v13, %v1894_v19  ;;  %v1949_v60 = vmax.f32 %v1903_v38, 0.0 }
 0x3ad   : > { %v2122_v23 = vpop.f32.mrf.mxu0 }
 0x3ae   : > { %v2471_v32 = vmax.f32 %v2271_v33, %v2273_v18  ;;  %v2274_v35 = vmax.f32 %v2119_v21, 0.0  ;;  %v2123_v36 = vadd.f32 %v2122_v23, %v5441_v7  ;;  %v1947_v1 = vmax.f32 %v1895_v4, 0.0 }
 0x3af   : > { %v2124_v9 = vpop.f32.mrf.mxu0  ;;  %v1967_v63 = vpack.c.bf16 %v1949_v60, %v1948_v51 }
 0x3b0   : > { %v2484_v48 = vmax.f32 %v2272_v27, %v2274_v35  ;;  %v2275_v55 = vmax.f32 %v2123_v36, 0.0  ;;  %v2125_v5 = vadd.f32 %v2124_v9, %v5444_v12  ;;  %v1966_v54 = vpack.c.bf16 %v1947_v1, %v1946_v37 }
 0x3b1   : > { %v2458_v40 = vmax.f32 %v1946_v37, %v1947_v1  ;;  %v2126_v42 = vpop.f32.mrf.mxu0 }
 0x3b2   : > { %v2472_v41 = vmax.f32 %v2471_v32, %v2275_v55  ;;  %v2276_v47 = vmax.f32 %v2125_v5, 0.0  ;;  %v2127_v29 = vadd.f32 %v2126_v42, %v5441_v7  ;;  %2231 = vmatmul.mubr.bf16.gmra.mxu0 %v1966_v54 }
 0x3b3   : > { %v2459_v61 = vmax.f32 %v2458_v40, %v1948_v51  ;;  %v2128_v58 = vpop.f32.mrf.mxu0  ;;  %2240 = vmatprep.mubr.bf16.mxu0 %v4624_v8 }
 0x3b4   : > { %v2485_v11 = vmax.f32 %v2484_v48, %v2276_v47  ;;  %v2277_v31 = vmax.f32 %v2127_v29, 0.0  ;;  %v2129_v25 = vadd.f32 %v2128_v58, %v5444_v12 }
 0x3b5   : > { %v2460_v53 = vmax.f32 %v2459_v61, %v1949_v60 }
 0x3b6   : > { %v2473_v20 = vmax.f32 %v2472_v41, %v2277_v31  ;;  %v2278_v52 = vmax.f32 %v2129_v25, 0.0 }
 0x3b8   : > { %v2486_v59 = vmax.f32 %v2485_v11, %v2278_v52 }
 0x3ba   : > { %2241 = vmatmul.mubr.bf16.gmra.mxu0 %v1967_v63 }
 0x3bb   : > { %2250 = vmatprep.mubr.bf16.mxu0 %v4624_v8 }
 0x3c6   : > { %v3943_v26 = vpop.f32.mrf.mxu1  ;;  %v2132_v44 = vpop.f32.mrf.mxu0 }
 0x3c7   : > { %v2133_v62 = vadd.f32 %v2132_v44, %v5441_v7  ;;  %v1916_v6 = vadd.f32 %v3943_v26, %v5374_v13 }
 0x3c8   : > { %v1907_v0 = vpop.f32.mrf.mxu1  ;;  %v2134_v57 = vpop.f32.mrf.mxu0 }
 0x3c9   : > { %v2279_v24 = vmax.f32 %v2133_v62, 0.0  ;;  %v1908_v2 = vadd.f32 %v5374_v13, %v1907_v0  ;;  %v2135_v10 = vadd.f32 %v2134_v57, %v5444_v12  ;;  %v1952_v23 = vmax.f32 %v1916_v6, 0.0 }
 0x3ca   : > { %v3944_v28 = vpop.f32.mrf.mxu1  ;;  %v2136_v39 = vpop.f32.mrf.mxu0 }
 0x3cb   : > { %v2474_v3 = vmax.f32 %v2473_v20, %v2279_v24  ;;  %v1950_v56 = vmax.f32 %v1908_v2, 0.0  ;;  %v2280_v34 = vmax.f32 %v2135_v10, 0.0  ;;  %v2137_v16 = vadd.f32 %v2136_v39, %v5441_v7 }
 0x3cc   : > { %v1910_v43 = vpop.f32.mrf.mxu1  ;;  %v2138_v30 = vpop.f32.mrf.mxu0  ;;  %v1919_v33 = vadd.f32 %v3944_v28, %v5374_v13 }
 0x3cd   : > { %v2461_v17 = vmax.f32 %v2460_v53, %v1950_v56  ;;  %v2487_v15 = vmax.f32 %v2486_v59, %v2280_v34  ;;  %v1911_v14 = vadd.f32 %v5374_v13, %v1910_v43  ;;  %v2281_v18 = vmax.f32 %v2137_v16, 0.0 }
 0x3ce   : > { %v2139_v19 = vadd.f32 %v2138_v30, %v5444_v12  ;;  %v2142_v21 = vpop.f32.mrf.mxu0  ;;  %v1953_v9 = vmax.f32 %v1919_v33, 0.0 }
 0x3cf   : > { %v1951_v22 = vmax.f32 %v1911_v14, 0.0  ;;  %v2143_v4 = vadd.f32 %v2142_v21, %v5441_v7  ;;  %v2475_v27 = vmax.f32 %v2474_v3, %v2281_v18 }
 0x3d0   : > { %v2282_v32 = vmax.f32 %v2139_v19, 0.0  ;;  %v2144_v35 = vpop.f32.mrf.mxu0  ;;  %v1969_v11 = vpack.c.bf16 %v1953_v9, %v1952_v23 }
 0x3d1   : > { %v1968_v36 = vpack.c.bf16 %v1951_v22, %v1950_v56  ;;  %v2462_v37 = vmax.f32 %v2461_v17, %v1951_v22  ;;  %v2283_v38 = vmax.f32 %v2143_v4, 0.0  ;;  %v2145_v1 = vadd.f32 %v2144_v35, %v5444_v12  ;;  %v4189_v4 = vld [vmem:[%s5813_s9 + $0x74] ss:$8 sps:$4 sm:$0xff]  }
 0x3d2   : > { %v2488_v48 = vmax.f32 %v2487_v15, %v2282_v32  ;;  %v2146_v55 = vpop.f32.mrf.mxu0  ;;  %v4187_v32 = vld [vmem:[%s5813_s9 + $0x70] ss:$8 sps:$4 sm:$0xff]   ;;  %2965 = vmatprep.subr.bf16.mxu1 %v4189_v4 }
 0x3d3   : > { %v2463_v13 = vmax.f32 %v2462_v37, %v1952_v23  ;;  %v2476_v5 = vmax.f32 %v2475_v27, %v2283_v38  ;;  %v2284_v51 = vmax.f32 %v2145_v1, 0.0  ;;  %v2147_v54 = vadd.f32 %v2146_v55, %v5441_v7  ;;  %2251 = vmatmul.mubr.bf16.gmra.mxu0 %v1968_v36  ;;  %2966 = vmatpush1.bf16.msra.mxu1 %v4187_v32  ;;  %v4192_v36 = vld [vmem:[%s5813_s9 + $0x64] ss:$8 sps:$4 sm:$0xff]   ;;  %v4190_v37 = vld [vmem:[%s5813_s9 + $0x60] ss:$8 sps:$4 sm:$0xff]  }
 0x3d4   : > { %v2148_v40 = vpop.f32.mrf.mxu0  ;;  %2260 = vmatprep.mubr.bf16.mxu0 %v4624_v8  ;;  %2967 = vmatprep.subr.bf16.mxu1 %v4192_v36  ;;  %v4195_v38 = vld [vmem:[%s5813_s9 + $0x54] ss:$8 sps:$4 sm:$0xff]   ;;  %v4193_v1 = vld [vmem:[%s5813_s9 + $0x50] ss:$8 sps:$4 sm:$0xff]   ;;  %v4214_v32 = vld [vmem:[%s5813_s9 + $0xe0] ss:$8 sps:$4 sm:$0xff]  }
 0x3d5   : > { %v2464_v42 = vmax.f32 %v2463_v13, %v1953_v9  ;;  %v2489_v41 = vmax.f32 %v2488_v48, %v2284_v51  ;;  %v2285_v47 = vmax.f32 %v2147_v54, 0.0  ;;  %v2149_v29 = vadd.f32 %v2148_v40, %v5444_v12  ;;  %v4198_v9 = vld [vmem:[%s5813_s9 + $0x44] ss:$8 sps:$4 sm:$0xff]   ;;  %v4196_v48 = vld [vmem:[%s5813_s9 + $0x40] ss:$8 sps:$4 sm:$0xff]  }
 0x3d6   : > { %v4199_v55 = vld [vmem:[%s5813_s9 + $0x30] ss:$8 sps:$4 sm:$0xff]   ;;  %v4201_v13 = vld [vmem:[%s5813_s9 + $0x34] ss:$8 sps:$4 sm:$0xff]   ;;  %v4204_v51 = vld [vmem:[%s5813_s9 + $0x24] ss:$8 sps:$4 sm:$0xff]  }
 0x3d7   : > { %v2465_v60 = vrot.slane %v2464_v42, 4  ;;  %v5473_v61 = vmax.f32 %v2476_v5, %v2285_v47  ;;  %v2286_v58 = vmax.f32 %v2149_v29, 0.0  ;;  %2968 = vmatpush1.bf16.msra.mxu1 %v4190_v37  ;;  %v4207_v29 = vld [vmem:[%s5813_s9 + $0x14] ss:$8 sps:$4 sm:$0xff]  }
 0x3d8   : > { %2969 = vmatprep.subr.bf16.mxu1 %v4195_v38 }
 0x3d9   : > { %v2466_v31 = vmax.f32 %v2464_v42, %v2465_v60  ;;  %v5475_v25 = vmax.f32 %v2489_v41, %v2286_v58  ;;  %v4202_v42 = vld [vmem:[%s5813_s9 + $0x20] ss:$8 sps:$4 sm:$0xff]  }
 0x3db   : > { %v2467_v53 = vrot.slane %v2466_v31, 2  ;;  %2261 = vmatmul.mubr.bf16.gmra.mxu0 %v1969_v11  ;;  %2970 = vmatpush1.bf16.msra.mxu1 %v4193_v1 }
 0x3dc   : > { %2971 = vmatprep.subr.bf16.mxu1 %v4198_v9 }
 0x3dd   : > { %v2468_v20 = vmax.f32 %v2466_v31, %v2467_v53 }
 0x3df   : > { %v2469_v52 = vrot.slane %v2468_v20, 1  ;;  %2972 = vmatpush1.bf16.msra.mxu1 %v4196_v48  ;;  %v4219_v48 = vld [vmem:[%s5813_s9 + $0xd4] ss:$8 sps:$4 sm:$0xff]  }
 0x3e0   : > { %2973 = vmatprep.subr.bf16.mxu1 %v4201_v13 }
 0x3e1   : > { %v2470_v59 = vmax.f32 %v2468_v20, %v2469_v52  ;;  %v4205_v20 = vld [vmem:[%s5813_s9 + $0x10] ss:$8 sps:$4 sm:$0xff]  }
 0x3e3   : > { %v5479_v8 = vsel %vm2587_vm3, %v2470_v59, %v5438_v50  ;;  %2974 = vmatpush1.bf16.msra.mxu1 %v4199_v55  ;;  %v4217_v55 = vld [vmem:[%s5813_s9 + $0xd0] ss:$8 sps:$4 sm:$0xff]  }
 0x3e4   : > { %2975 = vmatprep.subr.bf16.mxu1 %v4204_v51 }
 0x3e6   : > { %v2152_v63 = vpop.f32.mrf.mxu0 }
 0x3e7   : > { %v2153_v44 = vadd.f32 %v2152_v63, %v5441_v7  ;;  %2976 = vmatpush1.bf16.msra.mxu1 %v4202_v42 }
 0x3e8   : > { %v2154_v26 = vpop.f32.mrf.mxu0  ;;  %2977 = vmatprep.subr.bf16.mxu1 %v4207_v29 }
 0x3e9   : > { %v2155_v0 = vadd.f32 %v2154_v26, %v5444_v12  ;;  %v2287_v2 = vmax.f32 %v2153_v44, 0.0  ;;  %v2478_v44 = vrot.slane %v5473_v61, 4 }
 0x3ea   : > { %v2156_v62 = vpop.f32.mrf.mxu0 }
 0x3eb   : > { %v2157_v57 = vadd.f32 %v2156_v62, %v5441_v7  ;;  %v2288_v3 = vmax.f32 %v2155_v0, 0.0  ;;  %2978 = vmatpush1.bf16.msra.mxu1 %v4205_v20 }
 0x3ec   : > { %v2158_v24 = vpop.f32.mrf.mxu0 }
 0x3ed   : > { %v2289_v10 = vmax.f32 %v2157_v57, 0.0  ;;  %v2159_v28 = vadd.f32 %v2158_v24, %v5444_v12 }
 0x3ee   : > { %v2162_v39 = vpop.f32.mrf.mxu0 }
 0x3ef   : > { %v2497_v56 = vmax.f32 %v2287_v2, %v2289_v10  ;;  %v2290_v34 = vmax.f32 %v2159_v28, 0.0  ;;  %v2163_v50 = vadd.f32 %v2162_v39, %v5441_v7  ;;  %v2491_v2 = vrot.slane %v5475_v25, 4 }
 0x3f0   : > { %v2164_v6 = vpop.f32.mrf.mxu0 }
 0x3f1   : > { %v2510_v16 = vmax.f32 %v2288_v3, %v2290_v34  ;;  %v2291_v43 = vmax.f32 %v2163_v50, 0.0  ;;  %v2165_v30 = vadd.f32 %v2164_v6, %v5444_v12  ;;  %v4210_v3 = vld [vmem:[%s5813_s9 + $0x4] ss:$8 sps:$4 sm:$0xff]   ;;  %v4208_v34 = vld [vmem:[%s5813_s9] ss:$8 sps:$4 sm:$0xff]   ;;  %v2479_v50 = vmax.f32 %v5473_v61, %v2478_v44 }
 0x3f2   : > { %v2166_v17 = vpop.f32.mrf.mxu0  ;;  %2979 = vmatprep.subr.bf16.mxu1 %v4210_v3  ;;  %v4211_v61 = vld [vmem:[%s5813_s9 + $0xf0] ss:$8 sps:$4 sm:$0xff]   ;;  %v4231_v44 = vld [vmem:[%s5813_s9 + $0x94] ss:$8 sps:$4 sm:$0xff]  }
 0x3f3   : > { %v2498_v15 = vmax.f32 %v2497_v56, %v2291_v43  ;;  %v2292_v14 = vmax.f32 %v2165_v30, 0.0  ;;  %v2167_v33 = vadd.f32 %v2166_v17, %v5441_v7  ;;  %2980 = vmatpush1.bf16.msra.mxu1 %v4208_v34  ;;  %v2492_v17 = vmax.f32 %v5475_v25, %v2491_v2 }
 0x3f4   : > { %v2168_v18 = vpop.f32.mrf.mxu0 }
 0x3f5   : > { %v2511_v19 = vmax.f32 %v2510_v16, %v2292_v14  ;;  %v2293_v21 = vmax.f32 %v2167_v33, 0.0  ;;  %v2169_v22 = vadd.f32 %v2168_v18, %v5444_v12  ;;  %v4213_v18 = vld [vmem:[%s5813_s9 + $0xf4] ss:$8 sps:$4 sm:$0xff]   ;;  %v2493_v4 = vrot.slane %v2492_v17, 2 }
 0x3f6   : > { %2981 = vmatprep.subr.bf16.mxu1 %v4213_v18 }
 0x3f7   : > { %v2499_v23 = vmax.f32 %v2498_v15, %v2293_v21  ;;  %v2294_v27 = vmax.f32 %v2169_v22, 0.0  ;;  %2982 = vmatpush2.bf16.msra.mxu1 %v4211_v61  ;;  %v2494_v38 = vmax.f32 %v2492_v17, %v2493_v4 }
 0x3f9   : > { %v2512_v35 = vmax.f32 %v2511_v19, %v2294_v27  ;;  %v2480_v19 = vrot.slane %v2479_v50, 2  ;;  %v4216_v27 = vld [vmem:[%s5813_s9 + $0xe4] ss:$8 sps:$4 sm:$0xff]  }
 0x3fa   : > { %2983 = vmatprep.subr.bf16.mxu1 %v4216_v27 }
 0x3fb   : > { %2984 = vmatpush2.bf16.msra.mxu1 %v4214_v32 }
 0x3fc   : > { %2985 = vmatprep.subr.bf16.mxu1 %v4219_v48 }
 0x3ff   : > { %2986 = vmatpush2.bf16.msra.mxu1 %v4217_v55 }
 0x407   : > { %v2172_v5 = vpop.f32.mrf.mxu0 }
 0x408   : > { %v2173_v54 = vadd.f32 %v2172_v5, %v5441_v7 }
 0x409   : > { %v2174_v40 = vpop.f32.mrf.mxu0 }
 0x40a   : > { %v2295_v41 = vmax.f32 %v2173_v54, 0.0  ;;  %v2175_v47 = vadd.f32 %v2174_v40, %v5444_v12  ;;  %v2495_v54 = vrot.slane %v2494_v38, 1 }
 0x40b   : > { %v2176_v60 = vpop.f32.mrf.mxu0 }
 0x40c   : > { %v2500_v58 = vmax.f32 %v2499_v23, %v2295_v41  ;;  %v2296_v11 = vmax.f32 %v2175_v47, 0.0  ;;  %v2177_v31 = vadd.f32 %v2176_v60, %v5441_v7  ;;  %v4222_v41 = vld [vmem:[%s5813_s9 + $0xc4] ss:$8 sps:$4 sm:$0xff]   ;;  %v4220_v47 = vld [vmem:[%s5813_s9 + $0xc0] ss:$8 sps:$4 sm:$0xff]  }
 0x40d   : > { %v2178_v53 = vpop.f32.mrf.mxu0  ;;  %2987 = vmatprep.subr.bf16.mxu1 %v4222_v41 }
 0x40e   : > { %v2513_v52 = vmax.f32 %v2512_v35, %v2296_v11  ;;  %v2297_v59 = vmax.f32 %v2177_v31, 0.0  ;;  %v2179_v63 = vadd.f32 %v2178_v53, %v5444_v12  ;;  %v2481_v35 = vmax.f32 %v2479_v50, %v2480_v19  ;;  %2988 = vmatpush2.bf16.msra.mxu1 %v4220_v47  ;;  %v4225_v53 = vld [vmem:[%s5813_s9 + $0xb4] ss:$8 sps:$4 sm:$0xff]  }
 0x40f   : > { %v2182_v26 = vpop.f32.mrf.mxu0  ;;  %v2496_v11 = vmax.f32 %v2494_v38, %v2495_v54  ;;  %2989 = vmatprep.subr.bf16.mxu1 %v4225_v53 }
 0x410   : > { %v2501_v62 = vmax.f32 %v2500_v58, %v2297_v59  ;;  %v2298_v0 = vmax.f32 %v2179_v63, 0.0  ;;  %v2183_v57 = vadd.f32 %v2182_v26, %v5441_v7  ;;  %v2482_v13 = vrot.slane %v2481_v35, 1  ;;  %v4228_v63 = vld [vmem:[%s5813_s9 + $0xa4] ss:$8 sps:$4 sm:$0xff]   ;;  %v4226_v26 = vld [vmem:[%s5813_s9 + $0xa0] ss:$8 sps:$4 sm:$0xff]  }
 0x411   : > { %v2184_v24 = vpop.f32.mrf.mxu0 }
 0x412   : > { %v2514_v10 = vmax.f32 %v2513_v52, %v2298_v0  ;;  %v2299_v28 = vmax.f32 %v2183_v57, 0.0  ;;  %v2185_v39 = vadd.f32 %v2184_v24, %v5444_v12  ;;  %v2483_v29 = vmax.f32 %v2481_v35, %v2482_v13  ;;  %v4223_v52 = vld [vmem:[%s5813_s9 + $0xb0] ss:$8 sps:$4 sm:$0xff]   ;;  %v4234_v0 = vld [vmem:[%s5813_s9 + $0x84] ss:$8 sps:$4 sm:$0xff]  }
 0x413   : > { %v2186_v56 = vpop.f32.mrf.mxu0  ;;  %2990 = vmatpush2.bf16.msra.mxu1 %v4223_v52  ;;  %v4232_v57 = vld [vmem:[%s5813_s9 + $0x80] ss:$8 sps:$4 sm:$0xff]   ;;  %v4237_v24 = vld [vmem:[%s5813_s9 + $0x174] ss:$8 sps:$4 sm:$0xff]  }
 0x414   : > { %v2502_v6 = vmax.f32 %v2501_v62, %v2299_v28  ;;  %v2300_v16 = vmax.f32 %v2185_v39, 0.0  ;;  %v2187_v43 = vadd.f32 %v2186_v56, %v5441_v7  ;;  %2991 = vmatprep.subr.bf16.mxu1 %v4228_v63  ;;  %v4229_v62 = vld [vmem:[%s5813_s9 + $0x90] ss:$8 sps:$4 sm:$0xff]  }
 0x415   : > { %v2188_v30 = vpop.f32.mrf.mxu0 }
 0x416   : > { %v2515_v15 = vmax.f32 %v2514_v10, %v2300_v16  ;;  %v2301_v14 = vmax.f32 %v2187_v43, 0.0  ;;  %v2189_v33 = vadd.f32 %v2188_v30, %v5444_v12 }
 0x417   : > { %2992 = vmatpush2.bf16.msra.mxu1 %v4226_v26 }
 0x418   : > { %v2503_v21 = vmax.f32 %v2502_v6, %v2301_v14  ;;  %v2302_v22 = vmax.f32 %v2189_v33, 0.0  ;;  %2993 = vmatprep.subr.bf16.mxu1 %v4231_v44 }
 0x41a   : > { %v2504_v23 = vrot.slane %v2503_v21, 4  ;;  %v2516_v25 = vmax.f32 %v2515_v15, %v2302_v22 }
 0x41b   : > { %2994 = vmatpush2.bf16.msra.mxu1 %v4229_v62 }
 0x41c   : > { %v2505_v36 = vmax.f32 %v2503_v21, %v2504_v23  ;;  %v2517_v37 = vrot.slane %v2516_v25, 4  ;;  %2995 = vmatprep.subr.bf16.mxu1 %v4234_v0 }
 0x41e   : > { %v2506_v1 = vrot.slane %v2505_v36, 2  ;;  %v2518_v9 = vmax.f32 %v2516_v25, %v2517_v37 }
 0x41f   : > { %2996 = vmatpush2.bf16.msra.mxu1 %v4232_v57 }
 0x420   : > { %v2507_v5 = vmax.f32 %v2505_v36, %v2506_v1  ;;  %v2519_v51 = vrot.slane %v2518_v9, 2  ;;  %3006 = vmatprep.subr.bf16.mxu1 %v4237_v24 }
 0x422   : > { %v2508_v40 = vrot.slane %v2507_v5, 1  ;;  %v2520_v42 = vmax.f32 %v2518_v9, %v2519_v51 }
 0x424   : > { %v2509_v60 = vmax.f32 %v2507_v5, %v2508_v40  ;;  %v2521_v58 = vrot.slane %v2520_v42, 1 }
 0x426   : > { %v2522_v31 = vmax.f32 %v2520_v42, %v2521_v58  ;;  %v5577_v20 = vsel %vm2583_vm1, %v2509_v60, %v2483_v29 }
 0x428   : > { %v5583_v59 = vsel %vm2583_vm1, %v2522_v31, %v2496_v11 }
 0x42c   : > { %v2192_v2 = vpop.f32.mrf.mxu0 }
 0x42d   : > { %v2193_v23 = vadd.f32 %v2192_v2, %v5441_v7 }
 0x42e   : > { %v2194_v10 = vpop.f32.mrf.mxu0 }
 0x42f   : > { %v2195_v27 = vadd.f32 %v2194_v10, %v5444_v12  ;;  %v2303_v9 = vmax.f32 %v2193_v23, 0.0 }
 0x430   : > { %v2196_v28 = vpop.f32.mrf.mxu0 }
 0x431   : > { %v2197_v21 = vadd.f32 %v2196_v28, %v5441_v7  ;;  %v2304_v13 = vmax.f32 %v2195_v27, 0.0 }
 0x432   : > { %v2198_v39 = vpop.f32.mrf.mxu0 }
 0x433   : > { %v2199_v4 = vadd.f32 %v2198_v39, %v5444_v12  ;;  %v2305_v35 = vmax.f32 %v2197_v21, 0.0 }
 0x434   : > { %v2202_v3 = vpop.f32.mrf.mxu0 }
 0x435   : > { %v2203_v25 = vadd.f32 %v2202_v3, %v5441_v7  ;;  %v2306_v38 = vmax.f32 %v2199_v4, 0.0  ;;  %v2523_v54 = vmax.f32 %v2303_v9, %v2305_v35 }
 0x436   : > { %v2204_v56 = vpop.f32.mrf.mxu0 }
 0x437   : > { %v2205_v32 = vadd.f32 %v2204_v56, %v5444_v12  ;;  %v2307_v48 = vmax.f32 %v2203_v25, 0.0  ;;  %v2536_v47 = vmax.f32 %v2304_v13, %v2306_v38 }
 0x438   : > { %v2206_v34 = vpop.f32.mrf.mxu0 }
 0x439   : > { %v2207_v36 = vadd.f32 %v2206_v34, %v5441_v7  ;;  %v2308_v5 = vmax.f32 %v2205_v32, 0.0  ;;  %v2524_v58 = vmax.f32 %v2523_v54, %v2307_v48 }
 0x43a   : > { %v2208_v50 = vpop.f32.mrf.mxu0 }
 0x43b   : > { %v2209_v1 = vadd.f32 %v2208_v50, %v5444_v12  ;;  %v2309_v40 = vmax.f32 %v2207_v36, 0.0  ;;  %v2537_v53 = vmax.f32 %v2536_v47, %v2308_v5 }
 0x43d   : > { %v2310_v29 = vmax.f32 %v2209_v1, 0.0  ;;  %v2525_v63 = vmax.f32 %v2524_v58, %v2309_v40 }
 0x43f   : > { %v2538_v57 = vmax.f32 %v2537_v53, %v2310_v29 }
 0x44d   : > { %v2212_v6 = vpop.f32.mrf.mxu0 }
 0x44e   : > { %v2213_v55 = vadd.f32 %v2212_v6, %v5441_v7 }
 0x44f   : > { %v2214_v16 = vpop.f32.mrf.mxu0 }
 0x450   : > { %v2215_v51 = vadd.f32 %v2214_v16, %v5444_v12  ;;  %v2311_v11 = vmax.f32 %v2213_v55, 0.0 }
 0x451   : > { %v2216_v43 = vpop.f32.mrf.mxu0 }
 0x452   : > { %v2217_v42 = vadd.f32 %v2216_v43, %v5441_v7  ;;  %v2312_v52 = vmax.f32 %v2215_v51, 0.0  ;;  %v2526_v2 = vmax.f32 %v2525_v63, %v2311_v11 }
 0x453   : > { %v2218_v30 = vpop.f32.mrf.mxu0 }
 0x454   : > { %v2219_v60 = vadd.f32 %v2218_v30, %v5444_v12  ;;  %v2313_v26 = vmax.f32 %v2217_v42, 0.0  ;;  %v2539_v39 = vmax.f32 %v2538_v57, %v2312_v52 }
 0x455   : > { %v2222_v17 = vpop.f32.mrf.mxu0 }
 0x456   : > { %v2223_v31 = vadd.f32 %v2222_v17, %v5441_v7  ;;  %v2314_v24 = vmax.f32 %v2219_v60, 0.0  ;;  %v2527_v56 = vmax.f32 %v2526_v2, %v2313_v26 }
 0x457   : > { %v2224_v15 = vpop.f32.mrf.mxu0 }
 0x458   : > { %v2225_v44 = vadd.f32 %v2224_v15, %v5444_v12  ;;  %v2315_v10 = vmax.f32 %v2223_v31, 0.0  ;;  %v2540_v43 = vmax.f32 %v2539_v39, %v2314_v24 }
 0x459   : > { %v2226_v14 = vpop.f32.mrf.mxu0 }
 0x45a   : > { %v2227_v62 = vadd.f32 %v2226_v14, %v5441_v7  ;;  %v2316_v34 = vmax.f32 %v2225_v44, 0.0  ;;  %v2528_v15 = vmax.f32 %v2527_v56, %v2315_v10 }
 0x45b   : > { %v2228_v33 = vpop.f32.mrf.mxu0 }
 0x45c   : > { %v2229_v28 = vadd.f32 %v2228_v33, %v5444_v12  ;;  %v2317_v50 = vmax.f32 %v2227_v62, 0.0  ;;  %v2541_v25 = vmax.f32 %v2540_v43, %v2316_v34 }
 0x45e   : > { %v2318_v14 = vmax.f32 %v2229_v28, 0.0  ;;  %v2529_v27 = vmax.f32 %v2528_v15, %v2317_v50 }
 0x460   : > { %v2542_v38 = vmax.f32 %v2541_v25, %v2318_v14  ;;  %v2530_v51 = vrot.slane %v2529_v27, 4 }
 0x462   : > { %v2543_v60 = vrot.slane %v2542_v38, 4  ;;  %v2531_v26 = vmax.f32 %v2529_v27, %v2530_v51 }
 0x464   : > { %v2544_v10 = vmax.f32 %v2542_v38, %v2543_v60  ;;  %v2532_v50 = vrot.slane %v2531_v26, 2  ;;  %v4241_v60 = vld [vmem:[%s5813_s9 + $0x150] ss:$8 sps:$4 sm:$0xff]  }
 0x466   : > { %v2545_v15 = vrot.slane %v2544_v10, 2 }
 0x468   : > { %v2546_v25 = vmax.f32 %v2544_v10, %v2545_v15  ;;  %v4267_v10 = vld [vmem:[%s5813_s9 + $0x194] ss:$8 sps:$4 sm:$0xff]  }
 0x469   : > { %v4278_v15 = vld [vmem:[#allocation14 + $0x20] sm:$0xff]  }
 0x472   : > { %v2232_v18 = vpop.f32.mrf.mxu0 }
 0x473   : > { %v2233_v30 = vadd.f32 %v2232_v18, %v5441_v7 }
 0x474   : > { %v2234_v61 = vpop.f32.mrf.mxu0 }
 0x475   : > { %v2235_v21 = vadd.f32 %v2234_v61, %v5444_v12  ;;  %v2319_v36 = vmax.f32 %v2233_v30, 0.0 }
 0x476   : > { %v2236_v19 = vpop.f32.mrf.mxu0 }
 0x477   : > { %v2237_v3 = vadd.f32 %v2236_v19, %v5441_v7  ;;  %v2320_v1 = vmax.f32 %v2235_v21, 0.0 }
 0x478   : > { %v2238_v22 = vpop.f32.mrf.mxu0 }
 0x479   : > { %v2239_v6 = vadd.f32 %v2238_v22, %v5444_v12  ;;  %v2321_v23 = vmax.f32 %v2237_v3, 0.0 }
 0x47a   : > { %v2242_v37 = vpop.f32.mrf.mxu0 }
 0x47b   : > { %v2243_v17 = vadd.f32 %v2242_v37, %v5441_v7  ;;  %v2322_v32 = vmax.f32 %v2239_v6, 0.0  ;;  %v2549_v48 = vmax.f32 %v2319_v36, %v2321_v23  ;;  %v2547_v36 = vrot.slane %v2546_v25, 1 }
 0x47c   : > { %v2244_v41 = vpop.f32.mrf.mxu0 }
 0x47d   : > { %v2245_v33 = vadd.f32 %v2244_v41, %v5444_v12  ;;  %v2323_v18 = vmax.f32 %v2243_v17, 0.0  ;;  %v2562_v54 = vmax.f32 %v2320_v1, %v2322_v32 }
 0x47e   : > { %v2246_v0 = vpop.f32.mrf.mxu0 }
 0x47f   : > { %v2247_v19 = vadd.f32 %v2246_v0, %v5441_v7  ;;  %v2324_v9 = vmax.f32 %v2245_v33, 0.0  ;;  %v2550_v41 = vmax.f32 %v2549_v48, %v2323_v18 }
 0x480   : > { %v2248_v16 = vpop.f32.mrf.mxu0 }
 0x481   : > { %v2249_v22 = vadd.f32 %v2248_v16, %v5444_v12  ;;  %v2325_v55 = vmax.f32 %v2247_v19, 0.0  ;;  %v2563_v58 = vmax.f32 %v2562_v54, %v2324_v9 }
 0x483   : > { %v2326_v40 = vmax.f32 %v2249_v22, 0.0  ;;  %v2551_v31 = vmax.f32 %v2550_v41, %v2325_v55 }
 0x485   : > { %v2564_v44 = vmax.f32 %v2563_v58, %v2326_v40  ;;  %v4244_v58 = vld [vmem:[%s5813_s9 + $0x140] ss:$8 sps:$4 sm:$0xff]  }
 0x493   : > { %v2252_v4 = vpop.f32.mrf.mxu0 }
 0x494   : > { %v2253_v37 = vadd.f32 %v2252_v4, %v5441_v7  ;;  %v2533_v4 = vmax.f32 %v2531_v26, %v2532_v50  ;;  %v4253_v26 = vld [vmem:[%s5813_s9 + $0x110] ss:$8 sps:$4 sm:$0xff]   ;;  %v4272_v50 = vld [vmem:[#allocation14 + $0x38] sm:$0xff]  }
 0x495   : > { %v2254_v35 = vpop.f32.mrf.mxu0 }
 0x496   : > { %v2255_v13 = vadd.f32 %v2254_v35, %v5444_v12  ;;  %v2327_v47 = vmax.f32 %v2253_v37, 0.0  ;;  %v2534_v22 = vrot.slane %v2533_v4, 1 }
 0x497   : > { %v2256_v61 = vpop.f32.mrf.mxu0 }
 0x498   : > { %v2257_v5 = vadd.f32 %v2256_v61, %v5441_v7  ;;  %v2328_v53 = vmax.f32 %v2255_v13, 0.0  ;;  %v2552_v0 = vmax.f32 %v2551_v31, %v2327_v47  ;;  %v2535_v38 = vmax.f32 %v2533_v4, %v2534_v22  ;;  %v4240_v47 = vld [vmem:[%s5813_s9 + $0x164] ss:$8 sps:$4 sm:$0xff]   ;;  %v4247_v31 = vld [vmem:[%s5813_s9 + $0x130] ss:$8 sps:$4 sm:$0xff]  }
 0x499   : > { %v2258_v42 = vpop.f32.mrf.mxu0  ;;  %v4283_v4 = vld [vmem:[#allocation14 + $0x48] sm:$0xff]  }
 0x49a   : > { %v2259_v29 = vadd.f32 %v2258_v42, %v5444_v12  ;;  %v2329_v52 = vmax.f32 %v2257_v5, 0.0  ;;  %v2565_v39 = vmax.f32 %v2564_v44, %v2328_v53  ;;  %v2586_v13 = vsel %vm2585_vm2, %v2535_v38, %v5577_v20  ;;  %v4235_v42 = vld [vmem:[%s5813_s9 + $0x170] ss:$8 sps:$4 sm:$0xff]   ;;  %v4252_v53 = vld [vmem:[%s5813_s9 + $0x124] ss:$8 sps:$4 sm:$0xff]  }
 0x49b   : > { %v2262_v11 = vpop.f32.mrf.mxu0  ;;  %v2613_v20 = vpack.c.bf16 %v5410_v46, %v5410_v46  ;;  %v4246_v46 = vld [vmem:[%s5813_s9 + $0x144] ss:$8 sps:$4 sm:$0xff]  }
 0x49c   : > { %v2263_v63 = vadd.f32 %v2262_v11, %v5441_v7  ;;  %v2330_v57 = vmax.f32 %v2259_v29, 0.0  ;;  %v2553_v3 = vmax.f32 %v2552_v0, %v2329_v52  ;;  %v4243_v29 = vld [vmem:[%s5813_s9 + $0x154] ss:$8 sps:$4 sm:$0xff]   ;;  %v4250_v52 = vld [vmem:[%s5813_s9 + $0x120] ss:$8 sps:$4 sm:$0xff]  }
 0x49d   : > { %v2264_v62 = vpop.f32.mrf.mxu0  ;;  %v4249_v11 = vld [vmem:[%s5813_s9 + $0x134] ss:$8 sps:$4 sm:$0xff]   ;;  %v4258_v44 = vld [vmem:[%s5813_s9 + $0x104] ss:$8 sps:$4 sm:$0xff]  }
 0x49e   : > { %v2331_v24 = vmax.f32 %v2263_v63, 0.0  ;;  %v2265_v2 = vadd.f32 %v2264_v62, %v5444_v12  ;;  %v2566_v16 = vmax.f32 %v2565_v39, %v2330_v57  ;;  %v4255_v63 = vld [vmem:[%s5813_s9 + $0x114] ss:$8 sps:$4 sm:$0xff]   ;;  %v4256_v62 = vld [vmem:[%s5813_s9 + $0x100] ss:$8 sps:$4 sm:$0xff]  }
 0x49f   : > { %v2266_v28 = vpop.f32.mrf.mxu0  ;;  %v4261_v0 = vld [vmem:[%s5813_s9 + $0x1b4] ss:$8 sps:$4 sm:$0xff]   ;;  %v4259_v57 = vld [vmem:[%s5813_s9 + $0x1b0] ss:$8 sps:$4 sm:$0xff]   ;;  %v4270_v39 = vld [vmem:[%s5813_s9 + $0x184] ss:$8 sps:$4 sm:$0xff]  }
 0x4a0   : > { %v2332_v56 = vmax.f32 %v2265_v2, 0.0  ;;  %v2267_v34 = vadd.f32 %v2266_v28, %v5441_v7  ;;  %v2554_v43 = vmax.f32 %v2553_v3, %v2331_v24  ;;  %v4264_v24 = vld [vmem:[%s5813_s9 + $0x1a4] ss:$8 sps:$4 sm:$0xff]   ;;  %v4262_v2 = vld [vmem:[%s5813_s9 + $0x1a0] ss:$8 sps:$4 sm:$0xff]  }
 0x4a1   : > { %v2268_v6 = vpop.f32.mrf.mxu0  ;;  %v4265_v28 = vld [vmem:[%s5813_s9 + $0x190] ss:$8 sps:$4 sm:$0xff]   ;;  %v4268_v3 = vld [vmem:[%s5813_s9 + $0x180] ss:$8 sps:$4 sm:$0xff]  }
 0x4a2   : > { %v2333_v30 = vmax.f32 %v2267_v34, 0.0  ;;  %v2269_v17 = vadd.f32 %v2268_v6, %v5444_v12  ;;  %v2567_v14 = vmax.f32 %v2566_v16, %v2332_v56  ;;  %v2548_v12 = vmax.f32 %v2546_v25, %v2547_v36  ;;  %v4271_v34 = vld [vmem:[#allocation14 + $0x78] sm:$0xff]   ;;  %v4273_v6 = vld [vmem:[#allocation14 + $0x70] sm:$0xff]   ;;  %v4286_v25 = vld [vmem:[#allocation14] sm:$0xff]  }
 0x4a3   : > { %v2612_v56 = vpack.c.bf16 %v5479_v8, %v5479_v8  ;;  %v4274_v16 = vld [vmem:[#allocation14 + $0x30] sm:$0xff]   ;;  %v2670_v36 = vld [vmem:[#allocation12] sm:$0x3] }
 0x4a4   : > { %v2555_v21 = vmax.f32 %v2554_v43, %v2333_v30  ;;  %v2334_v33 = vmax.f32 %v2269_v17, 0.0  ;;  %v2590_v5 = vsel %vm2585_vm2, %v2548_v12, %v5583_v59  ;;  %v4238_v59 = vld [vmem:[%s5813_s9 + $0x160] ss:$8 sps:$4 sm:$0xff]   ;;  %v4275_v43 = vld [vmem:[#allocation14 + $0x68] sm:$0xff]   ;;  %v4277_v17 = vld [vmem:[#allocation14 + $0x60] sm:$0xff]  }
 0x4a5   : > { %v4276_v30 = vld [vmem:[#allocation14 + $0x28] sm:$0xff]   ;;  %v4281_v8 = vld [vmem:[#allocation14 + $0x50] sm:$0xff]  }
 0x4a6   : > { %v2556_v23 = vrot.slane %v2555_v21, 4  ;;  %v2568_v19 = vmax.f32 %v2567_v14, %v2334_v33  ;;  %v4279_v14 = vld [vmem:[#allocation14 + $0x58] sm:$0xff]   ;;  %v4282_v33 = vld [vmem:[#allocation14 + $0x10] sm:$0xff]  }
 0x4a8   : > { %v2557_v27 = vmax.f32 %v2555_v21, %v2556_v23  ;;  %v2569_v32 = vrot.slane %v2568_v19, 4  ;;  %v4280_v21 = vld [vmem:[#allocation14 + $0x18] sm:$0xff]   ;;  %v4284_v23 = vld [vmem:[#allocation14 + $0x8] sm:$0xff]  }
 0x4aa   : > { %v2558_v35 = vrot.slane %v2557_v27, 2  ;;  %v2570_v7 = vmax.f32 %v2568_v19, %v2569_v32  ;;  %v4285_v19 = vld [vmem:[#allocation14 + $0x40] sm:$0xff]  }
 0x4ac   : > { %v2559_v18 = vmax.f32 %v2557_v27, %v2558_v35  ;;  %v2571_v37 = vrot.slane %v2570_v7, 2  ;;  %v4625_v27 = vmov 0.0  }
 0x4ae   : > { %v2560_v1 = vrot.slane %v2559_v18, 1  ;;  %v2572_v9 = vmax.f32 %v2570_v7, %v2571_v37  ;;  %v2679_v37 = vrot.slane %v2670_v36, %v4993_v45  ;;  %v4288_v45 = vld [vmem:[%s5817_s13 + $0x30] sm:$0xff]  }
 0x4b0   : > { %v2561_v61 = vmax.f32 %v2559_v18, %v2560_v1  ;;  %v2573_v48 = vrot.slane %v2572_v9, 1  ;;  %v2675_v18 = vrot.slane %v2670_v36, %v5000_v49 }
 0x4b2   : > { %v2574_v55 = vmax.f32 %v2572_v9, %v2573_v48  ;;  %v2588_v51 = vsel %vm2587_vm3, %v2561_v61, %v2586_v13 }
 0x4b3   : > { %v2610_v41 = vpack.c.bf16 %v2588_v51, %v2588_v51 }
 0x4b4   : > { %v2591_v54 = vsel %vm2587_vm3, %v2574_v55, %v2590_v5 }
 0x4b5   : > { %v2611_v40 = vpack.c.bf16 %v2591_v54, %v2591_v54 }
 0x4b7   : > { %2997 = vmatprep.mubr.bf16.mxu1 %v2611_v40  ;;  %v4287_v40 = vld [vmem:[%s5817_s13 + $0x38] sm:$0xff]  }
 0x4b8   : > { %2998 = vmatmul.mubr.bf16.vlgmr.msra.gmra.mxu1 %v2610_v41  ;;  %v4289_v41 = vld [vmem:[%s5817_s13 + $0x28] sm:$0xff]  }
 0x4b9   : > { %3007 = vmatpush1.bf16.msra.mxu1 %v4235_v42  ;;  %3759 = vmatprep.mubr.msk.bf16.mxu1 %vm1416_vm0, %v2613_v20  ;;  %v4291_v20 = vld [vmem:[%s5817_s13 + $0x18] sm:$0xff]  }
 0x4ba   : > { %3008 = vmatprep.subr.bf16.mxu1 %v4240_v47  ;;  %v4290_v47 = vld [vmem:[%s5817_s13 + $0x20] sm:$0xff]  }
 0x4bd   : > { %3009 = vmatpush1.bf16.msra.mxu1 %v4238_v59  ;;  %v4292_v59 = vld [vmem:[%s5817_s13 + $0x10] sm:$0xff]  }
 0x4be   : > { %3010 = vmatprep.subr.bf16.mxu1 %v4243_v29  ;;  %v4293_v29 = vld [vmem:[%s5817_s13 + $0x8] sm:$0xff]  }
 0x4c1   : > { %3011 = vmatpush1.bf16.msra.mxu1 %v4241_v60  ;;  %v4294_v60 = vld [vmem:[%s5817_s13] sm:$0xff]  }
 0x4c2   : > { %3012 = vmatprep.subr.bf16.mxu1 %v4246_v46  ;;  %v3340_v46 = vld [vmem:[%s5819_s15] sm:$0xff] }
 0x4c3   : > { %3352 = vxpose.xlu1.b32.start [1/2] (short) (narrow) %v3340_v46, 8 }
 0x4c5   : > { %3013 = vmatpush1.bf16.msra.mxu1 %v4244_v58  ;;  %v3341_v58 = vld [vmem:[%s5819_s15 + $0x8] sm:$0xff] }
 0x4c6   : > { %3014 = vmatprep.subr.bf16.mxu1 %v4249_v11 }
 0x4c7   : > { %3353 = vxpose.xlu1.b32.end [2/2] (short) (narrow) %v3341_v58, 8 }
 0x4c9   : > { %3015 = vmatpush1.bf16.msra.mxu1 %v4247_v31  ;;  %v3760_v31 = vld [vmem:[#allocation15] ss:$0 sm:$0xff] }
 0x4ca   : > { %3016 = vmatprep.subr.bf16.mxu1 %v4252_v53 }
 0x4cd   : > { %3017 = vmatpush1.bf16.msra.mxu1 %v4250_v52 }
 0x4ce   : > { %3018 = vmatprep.subr.bf16.mxu1 %v4255_v63 }
 0x4d1   : > { %3019 = vmatpush1.bf16.msra.mxu1 %v4253_v26 }
 0x4d2   : > { %3020 = vmatprep.subr.bf16.mxu1 %v4258_v44 }
 0x4d5   : > { %3021 = vmatpush1.bf16.msra.mxu1 %v4256_v62 }
 0x4d6   : > { %3030 = vmatprep.subr.bf16.mxu1 %v4261_v0 }
 0x4d9   : > { %3031 = vmatpush2.bf16.msra.mxu1 %v4259_v57  ;;  %v3342_v57 = vld [vmem:[#allocation2] sm:$0x1] }
 0x4da   : > { %3032 = vmatprep.subr.bf16.mxu1 %v4264_v24  ;;  %3345 = vperm.xlu0 %4154, %v3342_v57   ;;  %v3777_v24 = vld [vmem:[#allocation17] ss:$0 sm:$0xff] }
 0x4dd   : > { %3033 = vmatpush2.bf16.msra.mxu1 %v4262_v2 }
 0x4de   : > { %3034 = vmatprep.subr.bf16.mxu1 %v4267_v10 }
 0x4e1   : > { %3035 = vmatpush2.bf16.msra.mxu1 %v4265_v28 }
 0x4e2   : > { %3036 = vmatprep.subr.bf16.mxu1 %v4270_v39 }
 0x4e5   : > { %3037 = vmatpush2.bf16.msra.mxu1 %v4268_v3 }
 0x4e6   : > { %3832 = vmatprep.subr.bf16.mxu1 %v4271_v34 }
 0x4e8   : > { %3039 = vmatmul.mubr.bf16.vlgmr.msra.gmra.mxu1 %v2612_v56 }
 0x4e9   : > { %3833 = vmatpush3.bf16.msra.mxu1 %v4272_v50 }
 0x4ea   : > { %3834 = vmatprep.subr.bf16.mxu1 %v4273_v6 }
 0x4ed   : > { %3835 = vmatpush3.bf16.msra.mxu1 %v4274_v16 }
 0x4ee   : > { %3836 = vmatprep.subr.bf16.mxu1 %v4275_v43 }
 0x4f1   : > { %3837 = vmatpush3.bf16.msra.mxu1 %v4276_v30 }
 0x4f2   : > { %3838 = vmatprep.subr.bf16.mxu1 %v4277_v17 }
 0x4f5   : > { %3839 = vmatpush3.bf16.msra.mxu1 %v4278_v15 }
 0x4f6   : > { %3840 = vmatprep.subr.bf16.mxu1 %v4279_v14 }
 0x4f9   : > { %3841 = vmatpush3.bf16.msra.mxu1 %v4280_v21 }
 0x4fa   : > { %3842 = vmatprep.subr.bf16.mxu1 %v4281_v8 }
 0x4fd   : > { %3843 = vmatpush3.bf16.msra.mxu1 %v4282_v33 }
 0x4fe   : > { %3844 = vmatprep.subr.bf16.mxu1 %v4283_v4 }
 0x501   : > { %3845 = vmatpush3.bf16.msra.mxu1 %v4284_v23 }
 0x502   : > { %3846 = vmatprep.subr.bf16.mxu1 %v4285_v19 }
 0x505   : > { %3847 = vmatpush3.bf16.msra.mxu1 %v4286_v25 }
 0x506   : > { %3945 = vmatprep.subr.bf16.mxu1 %v4625_v27 }
 0x53f   : > { %v3368_v56 = vpop.trf.xlu1 }
 0x555   : > { %v3346_v50 = vpop.permute.xlu0 %3345 }
 0x556   : > { %v3351_v6 = vrot.slane %v3346_v50, %v5000_v49 }
 0x578   : > { %v2999_v32 = vpop.f32.mrf.mxu1 }
 0x579   : > { %v3000_v38 = vadd.f32 %v2999_v32, %v2675_v18 }
 0x57a   : > { %v3001_v22 = vpop.f32.mrf.mxu1 }
 0x57b   : > { %v3002_v9 = vadd.f32 %v3001_v22, %v2679_v37 }
 0x57c   : > { %v3003_v35 = vpop.f32.mrf.mxu1 }
 0x57e   : > { %v3004_v7 = vpop.f32.mrf.mxu1 }
 0x5a8   : > { %v3040_v1 = vpop.f32.mrf.mxu1 }
 0x5a9   : > { %v3041_v12 = vadd.f32 %v3040_v1, %v3000_v38 }
 0x5aa   : > { %v3042_v61 = vpop.f32.mrf.mxu1 }
 0x5ab   : > { %v3043_v48 = vadd.f32 %v3042_v61, %v3002_v9  ;;  %v3047_v55 = vmax.f32 %v3041_v12, 0.0 }
 0x5ac   : > { %v3044_v13 = vpop.f32.mrf.mxu1 }
 0x5ad   : > { %v3048_v5 = vmax.f32 %v3043_v48, 0.0  ;;  %v3049_v42 = vpack.c.bf16 %v3047_v55, %v3047_v55 }
 0x5ae   : > { %v3045_v51 = vpop.f32.mrf.mxu1 }
 0x5af   : > { %v3050_v54 = vpack.c.bf16 %v3048_v5, %v3048_v5 }
 0x5b1   : > { %3218 = vmatprep.mubr.bf16.mxu1 %v3050_v54 }
 0x5b2   : > { %3219 = vmatmul.mubr.bf16.vlgmr.msra.gmra.mxu1 %v3049_v42 }
 0x5b3   : > { %3946 = vmatpush3.bf16.msra.mxu1 %v4287_v40  ;;  %3961 = vmatprep.mubr.msk.bf16.mxu1 %vm4626_vm4, %v4625_v27 }
 0x5b4   : > { %3947 = vmatprep.subr.bf16.mxu1 %v4625_v27 }
 0x5b7   : > { %3948 = vmatpush3.bf16.msra.mxu1 %v4288_v45 }
 0x5b8   : > { %3949 = vmatprep.subr.bf16.mxu1 %v4625_v27 }
 0x5bb   : > { %3950 = vmatpush3.bf16.msra.mxu1 %v4289_v41 }
 0x5bc   : > { %3951 = vmatprep.subr.bf16.mxu1 %v4625_v27 }
 0x5bf   : > { %3952 = vmatpush3.bf16.msra.mxu1 %v4290_v47 }
 0x5c0   : > { %3953 = vmatprep.subr.bf16.mxu1 %v4625_v27 }
 0x5c3   : > { %3954 = vmatpush3.bf16.msra.mxu1 %v4291_v20 }
 0x5c4   : > { %3955 = vmatprep.subr.bf16.mxu1 %v4625_v27 }
 0x5c7   : > { %3956 = vmatpush3.bf16.msra.mxu1 %v4292_v59 }
 0x5c8   : > { %3957 = vmatprep.subr.bf16.mxu1 %v4625_v27 }
 0x5cb   : > { %3958 = vmatpush3.bf16.msra.mxu1 %v4293_v29 }
 0x5cc   : > { %3959 = vmatprep.subr.bf16.mxu1 %v4625_v27 }
 0x5cf   : > { %3960 = vmatpush3.bf16.msra.mxu1 %v4294_v60 }
 0x5d0   : > { %3965 = vmatprep.subr.mxu1 %v4625_v27 }
 0x672   : > { %v3848_v11 = vpop.f32.mrf.mxu1 }
 0x674   : > { %v3849_v53 = vpop.f32.mrf.mxu1 }
 0x675   : > { %v3850_v52 = vadd.f32 %v3849_v53, %v3848_v11 }
 0x676   : > { %v3851_v63 = vpop.f32.mrf.mxu1 }
 0x677   : > { %v3221_v26 = vadd.f32 %v3850_v52, %v3760_v31 }
 0x678   : > { %v3852_v44 = vpop.f32.mrf.mxu1 }
 0x679   : > { %v3226_v62 = vmax.f32 %v3221_v26, 0.0 }
 0x67b   : > { %v3227_v0 = vpack.c.bf16 %v3226_v62, %v3226_v62 }
 0x67d   : > { %3962 = vmatmul.mubr.bf16.vlgmr.msra.gmra.mxu1 %v3227_v0 }
 0x67e   : > { %3967 = vmatprep.mubr.msk.f32.mxu1 %vm4626_vm4, %v4625_v27 }
 0x73d   : > { %v3333_v2 = vpop.f32.mrf.mxu1 }
 0x73e   : > { %v3334_v10 = vadd.f32 %v3777_v24, %v3333_v2 }
 0x73f   : > { %v3963_v28 = vpop.f32.mrf.mxu1 }
 0x740   : > { %v3339_v39 = vmax.f32 %v3334_v10, 0.0 }
 0x741   : > { %v3336_v3 = vpop.f32.mrf.mxu1 }
 0x742   : > { %3966 = vmatpush3.xpose.msk.msra.mxu1 %vm3384_vm5, %v3339_v39 }
 0x743   : > { %v3964_v34 = vpop.f32.mrf.mxu1 }
 0x745   : > { %3968 = vmatmul.mubr.msk.f32.vlgmr.msra.gmra.mxu1 %vm3384_vm5, %v3368_v56 }
 0x805   : > { %v3457_v16 = vpop.f32.mrf.mxu1 }
 0x806   : > { %v3458_v43 = vadd.f32 %v3457_v16, %v3351_v6 }
 0x807   : > { %v3969_v30 = vpop.f32.mrf.mxu1 }
 0x808   : > { %3462 = vst.msk [vmem:[%s660_s24] sm:$0x1] %vm3461_vm6, %v3458_v43 }
 0x809   : > { %4542 = shalt.err (!%p4539_p5)
}
 0x80a   : > { %s4543_s28 = scalar_lea.hbm %s5769_s2, 16  ;;  %s4547_s0 = scalar_lea.hbm %s5821_s17, 32 }
 0x80b   : > { %p4544_p12 = scmp.ne.s32.totalorder %s5769_s2, %s4543_s28  ;;  %p4548_p8 = scmp.lt.s32.totalorder %s5769_s2, %s5821_s17 }
 0x80c   : > { %p4549_p11 = scmp.lt.s32.totalorder %s4547_s0, %s4543_s28 }
 0x80d   : > { %p4545_p6 = pnand %p4544_p12, %p5859_p2 }
 0x80e   : > { %p4550_p0 = por %p4549_p11, %p4548_p8 }
 0x80f   : > { %p4546_p10 = pneg %p4545_p6 }
 0x811   : > { %p4551_p1 = pnand %p4550_p0, %p4546_p10 }
 0x813   : > { %4554 = shalt.err (!%p4551_p1)
}
 0x814   : > { %4006 = dma.vmem_to_hbm [thread:$0]  (%p5859_p2), %s3477_s23, 16, %s5769_s2, %s3464_s25  }
 0x815 PF: > { %s5860_s1 = sld [smem:[#allocation25_spill]]  ;;  %p4058_p9 = scmp.ge.s32.totalorder %s4609_s29, 2 }
 0x816   : > { %s5861_s19 = sld [smem:[#allocation29_spill]] }
 0x81b   : > { %s3488_s30 = sand.u32 1, %s5860_s1  }
 0x81c   : > { %p5862_p3 = scmp.ne.s32.totalorder %s5861_s19, 0  ;;  %s3489_s16 = scalar_lea.sflag [#allocation5], %s3488_s30 }
 0x81e   : > { %p4037_p13 = pnand %p4058_p9, %p5862_p3 }
 0x820   : > { %p4038_p4 = pneg %p4037_p13 }
 0x822   : > { %4592 = dma.done.wait (%p4038_p4), %s3489_s16, 16  }
 0x823   : > { %4594 = vsyncadd (%p4038_p4), %s3489_s16, 4294967280  ;;  %s5863_s29 = sld [smem:[#allocation27_spill]]  ;;  %s5866_s26 = smov %s4601_s27 }
 0x824   : > { %s5864_s4 = sld [smem:[#allocation26_spill]] }
 0x825   : > { %s5865_s28 = sld [smem:[#allocation28_spill]] }
 0x829   : > { %p34_p7 = scmp.ge.s32.totalorder %s5863_s29, 4  }
 0x82a   : > { %s5867_s27 = smov %s5864_s4 }
 0x82b   :  { %36 = sbr.rel (!%p34_p7) target bundleno = 13 (0xd), region = 160 }
 0x830   :  { %3493 = vsyncpa [#allocation4], 1 }
 0x831   :  { %3495 = vsyncpa [#allocation4 + $0x1], 1 }
 0x832   :  { %3496 = vsyncpa [#allocation7], 1 }
 0x833   :  { %3497 = vsyncpa [#allocation10], 1 }
 0x834   :  { %3498 = vsyncpa [#allocation13], 1 }
 0x835   :  { %3499 = vsyncpa [#allocation16], 1 }
 0x836   :  { %3500 = vsyncpa [#allocation5], 1 }
 0x837   :  { %3502 = vsyncpa [#allocation5 + $0x1], 1 }

</bundles_post_ra>
